<compile_context>
chip_gen: v7x
topology: tpu7x:2x2x1
jax: 0.10.0
libtpu: 0.0.40
codegen_flags: <defaults>
</compile_context>

<pallas_src>
import jax
import jax.numpy as jnp
from jax import lax
from jax.experimental import pallas as pl
from jax.experimental.pallas import tpu as pltpu

EPS = 1e-5  # PyTorch BatchNorm2d default eps


def _full_spec(shape):
    nd = len(shape)

    def idx(i):
        return (0,) * nd

    return pl.BlockSpec(shape, idx)


def _make_bands(w, W):
    """w: (3, 3, Cin, Cout) conv weight (ky, kx, cin, cout).
    Returns the dy-stacked banded matrix (3*W*Cin, W*Cout): one band per ky,
    with the kx taps and the padding=1 along x folded in."""
    _, _, Cin, Cout = w.shape
    eye = jnp.eye(W, dtype=w.dtype)
    bands = []
    for dy in range(3):
        band = jnp.zeros(((W + 2) * Cin, W * Cout), w.dtype)
        for dx in range(3):
            block = jnp.kron(eye, w[dy, dx])                       # (W*Cin, W*Cout)
            band = band + jnp.pad(block, ((dx * Cin, (2 - dx) * Cin), (0, 0)))
        bands.append(band[Cin:(W + 1) * Cin, :])                   # drop x-pad rows
    return jnp.concatenate(bands, axis=0)                          # (3*W*Cin, W*Cout)


def _make_fused_kernel(N, H, W):
    C0, C1, C2, C3 = 3, 16, 32, 16
    NH = N * H
    Hp, Wp = H // 2, W // 2
    M = N * Hp * Wp
    TAPS = 4  # 2x2 ConvTranspose taps

    def _bn_relu(acc, gamma_full, beta_full, C, count):
        """Train-mode BatchNorm (batch stats, biased var) + ReLU on (rows, W*C),
        fully lane-dense: channel sum+broadcast via log-step lane rolls."""
        s = jnp.sum(acc, axis=0, keepdims=True)                    # (1, W*C)
        ss = jnp.sum(acc * acc, axis=0, keepdims=True)             # (1, W*C)
        st = jnp.concatenate([s, ss], axis=0)                      # (2, W*C)
        shift = C
        while shift < W * C:                                       # covers all W x-positions
            st = st + pltpu.roll(st, shift, axis=1)                # XLU, sign-agnostic
            shift *= 2
        mean = st[0:1, :] / count
        var = jnp.maximum(st[1:2, :] / count - mean * mean, 0.0)
        scale = gamma_full * lax.rsqrt(var + EPS)                  # (1, W*C)
        offs = beta_full - mean * scale
        return jnp.maximum(acc * scale + offs, 0.0)

    def body(x_ref, band1_ref, g1_ref, be1_ref, band2_hbm, g2_ref, be2_ref,
             wt4t_ref, g3_ref, be3_ref, wc4t_ref, bc_ref, o_ref,
             band2_vmem, band2_sem):
        # Kick off the big band2 pull so it overlaps all of layer-1 compute.
        band2_cp = pltpu.make_async_copy(band2_hbm, band2_vmem, band2_sem)
        band2_cp.start()

        # Row-shift matrices (1 vreg each, boundary masking folded in):
        #   (P @ a)[n*H+y] = a[n*H+y-1]  (zero when y == 0)
        #   (Q @ a)[n*H+y] = a[n*H+y+1]  (zero when y == H-1)
        r = lax.broadcasted_iota(jnp.int32, (NH, NH), 0)
        c = lax.broadcasted_iota(jnp.int32, (NH, NH), 1)
        P = ((c == r - 1) & (r % H != 0)).astype(jnp.float32)
        Q = ((c == r + 1) & (r % H != H - 1)).astype(jnp.float32)

        # ---- Layer 1: Conv2d(3->16, 3x3, pad=1) + BN + ReLU (one fused matmul) --
        x = x_ref[...]                                             # (NH, W*C0)
        lhs1 = jnp.concatenate(
            [jnp.dot(P, x, preferred_element_type=jnp.float32),
             x,
             jnp.dot(Q, x, preferred_element_type=jnp.float32)], axis=1)   # (NH, 3*W*C0)
        acc1 = jnp.dot(lhs1, band1_ref[...],
                       preferred_element_type=jnp.float32)         # (NH, W*C1)
        h1 = _bn_relu(acc1, g1_ref[...], be1_ref[...], C1, float(N * H * W))

        # ---- Layer 2: Conv2d(16->32, 3x3, pad=1) + BN + ReLU + MaxPool(2) -------
        lhs2 = jnp.concatenate(
            [jnp.dot(P, h1, preferred_element_type=jnp.float32),
             h1,
             jnp.dot(Q, h1, preferred_element_type=jnp.float32)], axis=1)  # (NH, 3*W*C1)
        band2_cp.wait()                                            # band2 now in VMEM
        acc2 = jnp.dot(lhs2, band2_vmem[...],
                       preferred_element_type=jnp.float32)         # (NH, W*C2)
        h2 = _bn_relu(acc2, g2_ref[...], be2_ref[...], C2, float(N * H * W))

        # 2x2 max-pool fully in registers
        h2r = h2.reshape(N * Hp, 2, W * C2)
        ymax = jnp.maximum(h2r[:, 0, :], h2r[:, 1, :])             # pool over y
        xy = ymax.reshape(N * Hp, Wp, 2 * C2)
        pooled = jnp.maximum(xy[:, :, :C2], xy[:, :, C2:])         # pool over x  (N*Hp, Wp, C2)
        pooled_t = pooled.reshape(M, C2).T                         # (C2, M): M on lanes

        # ---- Decoder: ConvT(32->16,2,2) + BN + ReLU + Conv1x1 + Sigmoid ---------
        hd = jnp.dot(wt4t_ref[...], pooled_t,
                     preferred_element_type=jnp.float32)           # (4*C3, M) = (64, 128)
        s = jnp.sum(hd, axis=1, keepdims=True)                     # (64, 1)
        ss = jnp.sum(hd * hd, axis=1, keepdims=True)

        def tap_sum(v):                                            # combine 4 ConvT taps / channel
            return v[0:C3] + v[C3:2 * C3] + v[2 * C3:3 * C3] + v[3 * C3:4 * C3]

        cnt = float(TAPS * M)
        mean = tap_sum(s) / cnt                                    # (C3, 1)
        var = jnp.maximum(tap_sum(ss) / cnt - mean * mean, 0.0)
        scale = g3_ref[...] * lax.rsqrt(var + EPS)                 # (C3, 1)
        offs = be3_ref[...] - mean * scale
        hd = jnp.maximum(hd * jnp.tile(scale, (TAPS, 1))
                         + jnp.tile(offs, (TAPS, 1)), 0.0)
        z = jnp.dot(wc4t_ref[...], hd,
                    preferred_element_type=jnp.float32) + bc_ref[...]   # (4, M) lane-dense
        o_ref[...] = 0.5 * jnp.tanh(0.5 * z) + 0.5                 # sigmoid (overflow-safe)

    return body


def tiny_cnn_forward(x_nchw, p):
    N, Cin, H, W = x_nchw.shape
    Hp, Wp = H // 2, W // 2
    M = N * Hp * Wp
    x2d = jnp.transpose(x_nchw, (0, 2, 3, 1)).reshape(N * H, W * Cin)   # NCHW -> lane-flat NHWC
    args = (x2d, p["band1"], p["g1"], p["be1"], p["band2"], p["g2"], p["be2"],
            p["wt4t"], p["g3"], p["be3"], p["wc4t"], p["bc"])
    in_specs = [_full_spec(a.shape) for a in args]
    in_specs[4] = pl.BlockSpec(memory_space=pl.ANY)    # band2 stays in HBM; DMA'd in-kernel
    out = pl.pallas_call(
        _make_fused_kernel(N, H, W),
        out_shape=jax.ShapeDtypeStruct((4, M), jnp.float32),
        grid=(1,),
        in_specs=in_specs,
        out_specs=_full_spec((4, M)),
        scratch_shapes=[pltpu.VMEM(p["band2"].shape, jnp.float32),  # band2 landing buffer
                        pltpu.SemaphoreType.DMA],
        compiler_params=pltpu.CompilerParams(dimension_semantics=("arbitrary",)),
    )(*args)
    # glue: re-interleave the 4 stride-2 ConvT taps onto the 2x-upsampled grid
    y = out.reshape(2, 2, N, Hp, Wp)           # [dy, dx, n, yp, xp]
    y = jnp.transpose(y, (2, 3, 0, 4, 1))      # [n, yp, dy, xp, dx]
    return y.reshape(N, 1, 2 * Hp, 2 * Wp)     # NCHW (N, 1, H, W)


def init_params():
    W = 16
    keys = jax.random.split(jax.random.PRNGKey(1), 5)
    # PyTorch-shaped weights (deterministic), repacked to the kernel layout.
    w1_pt = 0.2 * jax.random.normal(keys[0], (16, 3, 3, 3), jnp.float32)   # Conv2d(3,16,3)
    w2_pt = 0.1 * jax.random.normal(keys[1], (32, 16, 3, 3), jnp.float32)  # Conv2d(16,32,3)
    wt_pt = 0.1 * jax.random.normal(keys[2], (32, 16, 2, 2), jnp.float32)  # ConvT(32,16,2,2)
    wc_pt = 0.2 * jax.random.normal(keys[3], (1, 16, 1, 1), jnp.float32)   # Conv2d(16,1,1)
    bc = 0.05 * jax.random.normal(keys[4], (1, 1), jnp.float32)
    # NOTE: conv/convT biases are omitted on purpose -- exactly cancelled by the
    # batch-mean subtraction of the train-mode BatchNorm that follows them.
    w1 = jnp.transpose(w1_pt, (2, 3, 1, 0))            # (ky,kx,cin,cout) = (3,3,3,16)
    w2 = jnp.transpose(w2_pt, (2, 3, 1, 0))            # (3,3,16,32)
    wt4 = jnp.transpose(wt_pt, (0, 2, 3, 1)).reshape(32, 64)   # col = (dy*2+dx)*16 + co
    wc4t = jnp.kron(jnp.eye(4, dtype=jnp.float32), wc_pt.reshape(1, 16))   # (4, 64)
    g1_c, be1_c = jnp.ones((1, 16), jnp.float32), jnp.zeros((1, 16), jnp.float32)
    g2_c, be2_c = jnp.ones((1, 32), jnp.float32), jnp.zeros((1, 32), jnp.float32)
    g3_c, be3_c = jnp.ones((16, 1), jnp.float32), jnp.zeros((16, 1), jnp.float32)
    kernel_params = {
        "band1": _make_bands(w1, W),                   # (144, 256)  dy-stacked
        "band2": _make_bands(w2, W),                   # (768, 512)  dy-stacked (manual DMA)
        "g1": jnp.tile(g1_c, (1, W)), "be1": jnp.tile(be1_c, (1, W)),   # pre-tiled (1, 256)
        "g2": jnp.tile(g2_c, (1, W)), "be2": jnp.tile(be2_c, (1, W)),   # pre-tiled (1, 512)
        "g3": g3_c, "be3": be3_c,                      # (16, 1) columns
        "wt4t": wt4.T,                                 # (64, 32)
        "wc4t": wc4t,                                  # (4, 64)
        "bc": bc,
    }
    torch_params = {
        "w1": w1_pt, "w2": w2_pt, "wt": wt_pt, "wc": wc_pt, "bc": bc,
        "g1": g1_c.reshape(-1), "b1": be1_c.reshape(-1),
        "g2": g2_c.reshape(-1), "b2": be2_c.reshape(-1),
        "g3": g3_c.reshape(-1), "b3": be3_c.reshape(-1),
    }
    return kernel_params, torch_params


def _reference_forward(x, tp):
    """Pure-JAX reference of the PyTorch module (train-mode BN, biased var)."""
    hi = lax.Precision.HIGHEST

    def conv3x3(inp, w):                               # pad=1; bias-free (cancelled by BN)
        Hh, Ww = inp.shape[2], inp.shape[3]
        xp = jnp.pad(inp, ((0, 0), (0, 0), (1, 1), (1, 1)))
        out = jnp.zeros((inp.shape[0], w.shape[0], Hh, Ww), jnp.float32)
        for dy in range(3):
            for dx in range(3):
                out = out + jnp.einsum("ncyx,oc->noyx",
                                       xp[:, :, dy:dy + Hh, dx:dx + Ww],
                                       w[:, :, dy, dx], precision=hi)
        return out

    def bn_relu(inp, gamma, beta):
        mean = jnp.mean(inp, axis=(0, 2, 3), keepdims=True)
        var = jnp.mean((inp - mean) ** 2, axis=(0, 2, 3), keepdims=True)
        out = (inp - mean) * lax.rsqrt(var + EPS)
        return jnp.maximum(gamma.reshape(1, -1, 1, 1) * out + beta.reshape(1, -1, 1, 1), 0.0)

    h = bn_relu(conv3x3(x, tp["w1"]), tp["g1"], tp["b1"])
    h = bn_relu(conv3x3(h, tp["w2"]), tp["g2"], tp["b2"])
    n, cc, hh, ww = h.shape
    h = h.reshape(n, cc, hh // 2, 2, ww // 2, 2).max(axis=(3, 5))
    t = jnp.einsum("niyx,ioab->noyaxb", h, tp["wt"], precision=hi)
    t = t.reshape(n, tp["wt"].shape[1], hh, ww)
    t = bn_relu(t, tp["g3"], tp["b3"])
    y = jnp.einsum("ncyx,oc->noyx", t, tp["wc"][:, :, 0, 0], precision=hi) + tp["bc"].reshape(())
    return jax.nn.sigmoid(y)


if __name__ == "__main__":
    params, torch_params = init_params()
    x = jax.random.normal(jax.random.PRNGKey(0), (2, 3, 16, 16), jnp.float32)
    y = jax.jit(tiny_cnn_forward)(x, params)
    y = jax.block_until_ready(y)
    assert y.shape == (2, 1, 16, 16), y.shape
    assert bool(jnp.all(jnp.isfinite(y)))
    assert bool(jnp.all((y >= 0.0) & (y <= 1.0)))          # sigmoid output range
    y_ref = _reference_forward(x, torch_params)            # pure-JAX correctness check
    err = float(jnp.max(jnp.abs(y - y_ref)))
    assert err < 1e-3, f"max |kernel - reference| = {err}"
    print("KERNEL_OK")
</pallas_src>

<mosaic_0001>
module attributes {stable_mosaic.version = 11 : i64} {
  func.func @body(%arg0: i32, %arg1: memref<32x48xf32, #tpu.memory_space<vmem>>, %arg2: memref<144x256xf32, #tpu.memory_space<vmem>>, %arg3: memref<1x256xf32, #tpu.memory_space<vmem>>, %arg4: memref<1x256xf32, #tpu.memory_space<vmem>>, %arg5: memref<768x512xf32, #tpu.memory_space<any>>, %arg6: memref<1x512xf32, #tpu.memory_space<vmem>>, %arg7: memref<1x512xf32, #tpu.memory_space<vmem>>, %arg8: memref<64x32xf32, #tpu.memory_space<vmem>>, %arg9: memref<16x1xf32, #tpu.memory_space<vmem>>, %arg10: memref<16x1xf32, #tpu.memory_space<vmem>>, %arg11: memref<4x64xf32, #tpu.memory_space<vmem>>, %arg12: memref<1x1xf32, #tpu.memory_space<vmem>>, %arg13: memref<4x128xf32, #tpu.memory_space<vmem>>, %arg14: memref<768x512xf32, #tpu.memory_space<vmem>>, %arg15: memref<!tpu.dma_semaphore, #tpu.memory_space<semaphore_mem>>) attributes {dimension_semantics = [#tpu.dimension_semantics<arbitrary>], iteration_bounds = array<i64: 1>, scalar_prefetch = 0 : i64, scratch_operands = 2 : i64, tpu.core_type = #tpu.core_type<tc>, window_params = [{pipeline_mode = #tpu.pipeline_mode<synchronous>, transform_indices = @transform_0, window_bounds = array<i64: 32, 48>}, {pipeline_mode = #tpu.pipeline_mode<synchronous>, transform_indices = @transform_1, window_bounds = array<i64: 144, 256>}, {pipeline_mode = #tpu.pipeline_mode<synchronous>, transform_indices = @transform_2, window_bounds = array<i64: 1, 256>}, {pipeline_mode = #tpu.pipeline_mode<synchronous>, transform_indices = @transform_3, window_bounds = array<i64: 1, 256>}, {}, {pipeline_mode = #tpu.pipeline_mode<synchronous>, transform_indices = @transform_5, window_bounds = array<i64: 1, 512>}, {pipeline_mode = #tpu.pipeline_mode<synchronous>, transform_indices = @transform_6, window_bounds = array<i64: 1, 512>}, {pipeline_mode = #tpu.pipeline_mode<synchronous>, transform_indices = @transform_7, window_bounds = array<i64: 64, 32>}, {pipeline_mode = #tpu.pipeline_mode<synchronous>, transform_indices = @transform_8, window_bounds = array<i64: 16, 1>}, {pipeline_mode = #tpu.pipeline_mode<synchronous>, transform_indices = @transform_9, window_bounds = array<i64: 16, 1>}, {pipeline_mode = #tpu.pipeline_mode<synchronous>, transform_indices = @transform_10, window_bounds = array<i64: 4, 64>}, {pipeline_mode = #tpu.pipeline_mode<synchronous>, transform_indices = @transform_11, window_bounds = array<i64: 1, 1>}, {pipeline_mode = #tpu.pipeline_mode<synchronous>, transform_indices = @transform_12, window_bounds = array<i64: 4, 128>}]} {
    tpu.enqueue_dma source(%arg5 : memref<768x512xf32, #tpu.memory_space<any>>) target(%arg14 : memref<768x512xf32, #tpu.memory_space<vmem>>) target_semaphore(%arg15 : memref<!tpu.dma_semaphore, #tpu.memory_space<semaphore_mem>>)
    %0 = tpu.iota {dimensions = array<i32: 0>} : vector<32x32xi32>
    %1 = tpu.iota {dimensions = array<i32: 1>} : vector<32x32xi32>
    %c1_i32 = arith.constant 1 : i32
    %2 = vector.broadcast %c1_i32 : i32 to vector<32x32xi32>
    %3 = arith.subi %0, %2 : vector<32x32xi32>
    %4 = arith.cmpi eq, %1, %3 : vector<32x32xi32>
    %c16_i32 = arith.constant 16 : i32
    %c0_i32 = arith.constant 0 : i32
    %5 = arith.cmpi eq, %c16_i32, %c0_i32 : i32
    %c1_i32_0 = arith.constant 1 : i32
    %6 = arith.select %5, %c1_i32_0, %c16_i32 : i32
    %7 = vector.broadcast %6 : i32 to vector<32x32xi32>
    %8 = arith.remsi %0, %7 : vector<32x32xi32>
    %c0_i32_1 = arith.constant 0 : i32
    %9 = vector.broadcast %c0_i32_1 : i32 to vector<32x32xi32>
    %10 = arith.cmpi ne, %8, %9 : vector<32x32xi32>
    %c0_i32_2 = arith.constant 0 : i32
    %11 = vector.broadcast %c0_i32_2 : i32 to vector<32x32xi32>
    %12 = arith.cmpi slt, %8, %11 : vector<32x32xi32>
    %c0_i32_3 = arith.constant 0 : i32
    %13 = arith.cmpi slt, %6, %c0_i32_3 : i32
    %14 = vector.broadcast %13 : i1 to vector<32x32xi1>
    %15 = vector.broadcast %14 : vector<32x32xi1> to vector<32x32xi1>
    %16 = arith.xori %12, %15 : vector<32x32xi1>
    %17 = arith.andi %16, %10 : vector<32x32xi1>
    %18 = vector.broadcast %6 : i32 to vector<32x32xi32>
    %19 = arith.addi %8, %18 : vector<32x32xi32>
    %20 = arith.select %17, %19, %8 : vector<32x32xi1>, vector<32x32xi32>
    %c0_i32_4 = arith.constant 0 : i32
    %21 = vector.broadcast %c0_i32_4 : i32 to vector<32x32xi32>
    %22 = arith.cmpi ne, %20, %21 : vector<32x32xi32>
    %23 = arith.andi %4, %22 : vector<32x32xi1>
    %24 = arith.extui %23 : vector<32x32xi1> to vector<32x32xi32>
    %25 = arith.sitofp %24 : vector<32x32xi32> to vector<32x32xf32>
    %c1_i32_5 = arith.constant 1 : i32
    %26 = vector.broadcast %c1_i32_5 : i32 to vector<32x32xi32>
    %27 = arith.addi %0, %26 : vector<32x32xi32>
    %28 = arith.cmpi eq, %1, %27 : vector<32x32xi32>
    %c16_i32_6 = arith.constant 16 : i32
    %c0_i32_7 = arith.constant 0 : i32
    %29 = arith.cmpi eq, %c16_i32_6, %c0_i32_7 : i32
    %c1_i32_8 = arith.constant 1 : i32
    %30 = arith.select %29, %c1_i32_8, %c16_i32_6 : i32
    %31 = vector.broadcast %30 : i32 to vector<32x32xi32>
    %32 = arith.remsi %0, %31 : vector<32x32xi32>
    %c0_i32_9 = arith.constant 0 : i32
    %33 = vector.broadcast %c0_i32_9 : i32 to vector<32x32xi32>
    %34 = arith.cmpi ne, %32, %33 : vector<32x32xi32>
    %c0_i32_10 = arith.constant 0 : i32
    %35 = vector.broadcast %c0_i32_10 : i32 to vector<32x32xi32>
    %36 = arith.cmpi slt, %32, %35 : vector<32x32xi32>
    %c0_i32_11 = arith.constant 0 : i32
    %37 = arith.cmpi slt, %30, %c0_i32_11 : i32
    %38 = vector.broadcast %37 : i1 to vector<32x32xi1>
    %39 = vector.broadcast %38 : vector<32x32xi1> to vector<32x32xi1>
    %40 = arith.xori %36, %39 : vector<32x32xi1>
    %41 = arith.andi %40, %34 : vector<32x32xi1>
    %42 = vector.broadcast %30 : i32 to vector<32x32xi32>
    %43 = arith.addi %32, %42 : vector<32x32xi32>
    %44 = arith.select %41, %43, %32 : vector<32x32xi1>, vector<32x32xi32>
    %c15_i32 = arith.constant 15 : i32
    %45 = vector.broadcast %c15_i32 : i32 to vector<32x32xi32>
    %46 = arith.cmpi ne, %44, %45 : vector<32x32xi32>
    %47 = arith.andi %28, %46 : vector<32x32xi1>
    %48 = arith.extui %47 : vector<32x32xi1> to vector<32x32xi32>
    %49 = arith.sitofp %48 : vector<32x32xi32> to vector<32x32xf32>
    %c0 = arith.constant 0 : index
    %c0_12 = arith.constant 0 : index
    %50 = vector.load %arg1[%c0, %c0_12] : memref<32x48xf32, #tpu.memory_space<vmem>>, vector<32x48xf32>
    %cst = arith.constant dense<0.000000e+00> : vector<32x48xf32>
    %51 = tpu.matmul %25, %50, %cst {dimension_numbers = #tpu.dot_dimension_numbers<[1], [0], [0], [1], [0, 0, 1, 1], [], []>} : vector<32x32xf32>, vector<32x48xf32>, vector<32x48xf32> -> vector<32x48xf32>
    %cst_13 = arith.constant dense<0.000000e+00> : vector<32x48xf32>
    %52 = tpu.matmul %49, %50, %cst_13 {dimension_numbers = #tpu.dot_dimension_numbers<[1], [0], [0], [1], [0, 0, 1, 1], [], []>} : vector<32x32xf32>, vector<32x48xf32>, vector<32x48xf32> -> vector<32x48xf32>
    %53 = tpu.concatenate %51, %50, %52 in 1 : vector<32x48xf32>, vector<32x48xf32>, vector<32x48xf32> -> vector<32x144xf32>
    %c0_14 = arith.constant 0 : index
    %c0_15 = arith.constant 0 : index
    %54 = vector.load %arg2[%c0_14, %c0_15] : memref<144x256xf32, #tpu.memory_space<vmem>>, vector<144x256xf32>
    %cst_16 = arith.constant dense<0.000000e+00> : vector<32x256xf32>
    %55 = tpu.matmul %53, %54, %cst_16 {dimension_numbers = #tpu.dot_dimension_numbers<[1], [0], [0], [1], [0, 0, 1, 1], [], []>} : vector<32x144xf32>, vector<144x256xf32>, vector<32x256xf32> -> vector<32x256xf32>
    %c0_17 = arith.constant 0 : index
    %c0_18 = arith.constant 0 : index
    %56 = vector.load %arg3[%c0_17, %c0_18] : memref<1x256xf32, #tpu.memory_space<vmem>>, vector<1x256xf32>
    %c0_19 = arith.constant 0 : index
    %c0_20 = arith.constant 0 : index
    %57 = vector.load %arg4[%c0_19, %c0_20] : memref<1x256xf32, #tpu.memory_space<vmem>>, vector<1x256xf32>
    %cst_21 = arith.constant dense<0.000000e+00> : vector<256xf32>
    %58 = vector.multi_reduction <add>, %55, %cst_21 [0] : vector<32x256xf32> to vector<256xf32>
    %59 = vector.shape_cast %58 : vector<256xf32> to vector<1x256xf32>
    %60 = arith.mulf %55, %55 : vector<32x256xf32>
    %cst_22 = arith.constant dense<0.000000e+00> : vector<256xf32>
    %61 = vector.multi_reduction <add>, %60, %cst_22 [0] : vector<32x256xf32> to vector<256xf32>
    %62 = vector.shape_cast %61 : vector<256xf32> to vector<1x256xf32>
    %63 = tpu.concatenate %59, %62 in 0 : vector<1x256xf32>, vector<1x256xf32> -> vector<2x256xf32>
    %c16_i32_23 = arith.constant 16 : i32
    %64 = tpu.dynamic_rotate %63 by %c16_i32_23 dim 1 : vector<2x256xf32>, i32 -> vector<2x256xf32>
    %65 = arith.addf %63, %64 : vector<2x256xf32>
    %c32_i32 = arith.constant 32 : i32
    %66 = tpu.dynamic_rotate %65 by %c32_i32 dim 1 : vector<2x256xf32>, i32 -> vector<2x256xf32>
    %67 = arith.addf %65, %66 : vector<2x256xf32>
    %c64_i32 = arith.constant 64 : i32
    %68 = tpu.dynamic_rotate %67 by %c64_i32 dim 1 : vector<2x256xf32>, i32 -> vector<2x256xf32>
    %69 = arith.addf %67, %68 : vector<2x256xf32>
    %c128_i32 = arith.constant 128 : i32
    %70 = tpu.dynamic_rotate %69 by %c128_i32 dim 1 : vector<2x256xf32>, i32 -> vector<2x256xf32>
    %71 = arith.addf %69, %70 : vector<2x256xf32>
    %72 = vector.extract_strided_slice %71 {offsets = [0, 0], sizes = [1, 256], strides = [1, 1]} : vector<2x256xf32> to vector<1x256xf32>
    %cst_24 = arith.constant 5.120000e+02 : f32
    %73 = vector.broadcast %cst_24 : f32 to vector<1x256xf32>
    %74 = arith.divf %72, %73 : vector<1x256xf32>
    %75 = vector.extract_strided_slice %71 {offsets = [1, 0], sizes = [1, 256], strides = [1, 1]} : vector<2x256xf32> to vector<1x256xf32>
    %cst_25 = arith.constant 5.120000e+02 : f32
    %76 = vector.broadcast %cst_25 : f32 to vector<1x256xf32>
    %77 = arith.divf %75, %76 : vector<1x256xf32>
    %78 = arith.mulf %74, %74 : vector<1x256xf32>
    %79 = arith.subf %77, %78 : vector<1x256xf32>
    %cst_26 = arith.constant 0.000000e+00 : f32
    %80 = vector.broadcast %cst_26 : f32 to vector<1x256xf32>
    %81 = arith.maximumf %79, %80 : vector<1x256xf32>
    %cst_27 = arith.constant 9.99999974E-6 : f32
    %82 = vector.broadcast %cst_27 : f32 to vector<1x256xf32>
    %83 = arith.addf %81, %82 : vector<1x256xf32>
    %84 = math.rsqrt %83 : vector<1x256xf32>
    %85 = arith.mulf %56, %84 : vector<1x256xf32>
    %86 = arith.mulf %74, %85 : vector<1x256xf32>
    %87 = arith.subf %57, %86 : vector<1x256xf32>
    %88 = vector.broadcast %85 : vector<1x256xf32> to vector<32x256xf32>
    %89 = arith.mulf %55, %88 : vector<32x256xf32>
    %90 = vector.broadcast %87 : vector<1x256xf32> to vector<32x256xf32>
    %91 = arith.addf %89, %90 : vector<32x256xf32>
    %cst_28 = arith.constant 0.000000e+00 : f32
    %92 = vector.broadcast %cst_28 : f32 to vector<32x256xf32>
    %93 = arith.maximumf %91, %92 : vector<32x256xf32>
    %cst_29 = arith.constant dense<0.000000e+00> : vector<32x256xf32>
    %94 = tpu.matmul %25, %93, %cst_29 {dimension_numbers = #tpu.dot_dimension_numbers<[1], [0], [0], [1], [0, 0, 1, 1], [], []>} : vector<32x32xf32>, vector<32x256xf32>, vector<32x256xf32> -> vector<32x256xf32>
    %cst_30 = arith.constant dense<0.000000e+00> : vector<32x256xf32>
    %95 = tpu.matmul %49, %93, %cst_30 {dimension_numbers = #tpu.dot_dimension_numbers<[1], [0], [0], [1], [0, 0, 1, 1], [], []>} : vector<32x32xf32>, vector<32x256xf32>, vector<32x256xf32> -> vector<32x256xf32>
    %96 = tpu.concatenate %94, %93, %95 in 1 : vector<32x256xf32>, vector<32x256xf32>, vector<32x256xf32> -> vector<32x768xf32>
    tpu.wait_dma2 semaphore(%arg15 : memref<!tpu.dma_semaphore, #tpu.memory_space<semaphore_mem>>) src(%arg5 : memref<768x512xf32, #tpu.memory_space<any>>) dst(%arg14 : memref<768x512xf32, #tpu.memory_space<vmem>>)
    %c0_31 = arith.constant 0 : index
    %c0_32 = arith.constant 0 : index
    %97 = vector.load %arg14[%c0_31, %c0_32] : memref<768x512xf32, #tpu.memory_space<vmem>>, vector<768x512xf32>
    %cst_33 = arith.constant dense<0.000000e+00> : vector<32x512xf32>
    %98 = tpu.matmul %96, %97, %cst_33 {dimension_numbers = #tpu.dot_dimension_numbers<[1], [0], [0], [1], [0, 0, 1, 1], [], []>} : vector<32x768xf32>, vector<768x512xf32>, vector<32x512xf32> -> vector<32x512xf32>
    %c0_34 = arith.constant 0 : index
    %c0_35 = arith.constant 0 : index
    %99 = vector.load %arg6[%c0_34, %c0_35] : memref<1x512xf32, #tpu.memory_space<vmem>>, vector<1x512xf32>
    %c0_36 = arith.constant 0 : index
    %c0_37 = arith.constant 0 : index
    %100 = vector.load %arg7[%c0_36, %c0_37] : memref<1x512xf32, #tpu.memory_space<vmem>>, vector<1x512xf32>
    %cst_38 = arith.constant dense<0.000000e+00> : vector<512xf32>
    %101 = vector.multi_reduction <add>, %98, %cst_38 [0] : vector<32x512xf32> to vector<512xf32>
    %102 = vector.shape_cast %101 : vector<512xf32> to vector<1x512xf32>
    %103 = arith.mulf %98, %98 : vector<32x512xf32>
    %cst_39 = arith.constant dense<0.000000e+00> : vector<512xf32>
    %104 = vector.multi_reduction <add>, %103, %cst_39 [0] : vector<32x512xf32> to vector<512xf32>
    %105 = vector.shape_cast %104 : vector<512xf32> to vector<1x512xf32>
    %106 = tpu.concatenate %102, %105 in 0 : vector<1x512xf32>, vector<1x512xf32> -> vector<2x512xf32>
    %c32_i32_40 = arith.constant 32 : i32
    %107 = tpu.dynamic_rotate %106 by %c32_i32_40 dim 1 : vector<2x512xf32>, i32 -> vector<2x512xf32>
    %108 = arith.addf %106, %107 : vector<2x512xf32>
    %c64_i32_41 = arith.constant 64 : i32
    %109 = tpu.dynamic_rotate %108 by %c64_i32_41 dim 1 : vector<2x512xf32>, i32 -> vector<2x512xf32>
    %110 = arith.addf %108, %109 : vector<2x512xf32>
    %c128_i32_42 = arith.constant 128 : i32
    %111 = tpu.dynamic_rotate %110 by %c128_i32_42 dim 1 : vector<2x512xf32>, i32 -> vector<2x512xf32>
    %112 = arith.addf %110, %111 : vector<2x512xf32>
    %c256_i32 = arith.constant 256 : i32
    %113 = tpu.dynamic_rotate %112 by %c256_i32 dim 1 : vector<2x512xf32>, i32 -> vector<2x512xf32>
    %114 = arith.addf %112, %113 : vector<2x512xf32>
    %115 = vector.extract_strided_slice %114 {offsets = [0, 0], sizes = [1, 512], strides = [1, 1]} : vector<2x512xf32> to vector<1x512xf32>
    %cst_43 = arith.constant 5.120000e+02 : f32
    %116 = vector.broadcast %cst_43 : f32 to vector<1x512xf32>
    %117 = arith.divf %115, %116 : vector<1x512xf32>
    %118 = vector.extract_strided_slice %114 {offsets = [1, 0], sizes = [1, 512], strides = [1, 1]} : vector<2x512xf32> to vector<1x512xf32>
    %cst_44 = arith.constant 5.120000e+02 : f32
    %119 = vector.broadcast %cst_44 : f32 to vector<1x512xf32>
    %120 = arith.divf %118, %119 : vector<1x512xf32>
    %121 = arith.mulf %117, %117 : vector<1x512xf32>
    %122 = arith.subf %120, %121 : vector<1x512xf32>
    %cst_45 = arith.constant 0.000000e+00 : f32
    %123 = vector.broadcast %cst_45 : f32 to vector<1x512xf32>
    %124 = arith.maximumf %122, %123 : vector<1x512xf32>
    %cst_46 = arith.constant 9.99999974E-6 : f32
    %125 = vector.broadcast %cst_46 : f32 to vector<1x512xf32>
    %126 = arith.addf %124, %125 : vector<1x512xf32>
    %127 = math.rsqrt %126 : vector<1x512xf32>
    %128 = arith.mulf %99, %127 : vector<1x512xf32>
    %129 = arith.mulf %117, %128 : vector<1x512xf32>
    %130 = arith.subf %100, %129 : vector<1x512xf32>
    %131 = vector.broadcast %128 : vector<1x512xf32> to vector<32x512xf32>
    %132 = arith.mulf %98, %131 : vector<32x512xf32>
    %133 = vector.broadcast %130 : vector<1x512xf32> to vector<32x512xf32>
    %134 = arith.addf %132, %133 : vector<32x512xf32>
    %cst_47 = arith.constant 0.000000e+00 : f32
    %135 = vector.broadcast %cst_47 : f32 to vector<32x512xf32>
    %136 = arith.maximumf %134, %135 : vector<32x512xf32>
    %137 = vector.shape_cast %136 : vector<32x512xf32> to vector<16x2x512xf32>
    %138 = vector.extract_strided_slice %137 {offsets = [0, 0, 0], sizes = [16, 1, 512], strides = [1, 1, 1]} : vector<16x2x512xf32> to vector<16x1x512xf32>
    %139 = vector.shape_cast %138 : vector<16x1x512xf32> to vector<16x512xf32>
    %140 = vector.extract_strided_slice %137 {offsets = [0, 1, 0], sizes = [16, 1, 512], strides = [1, 1, 1]} : vector<16x2x512xf32> to vector<16x1x512xf32>
    %141 = vector.shape_cast %140 : vector<16x1x512xf32> to vector<16x512xf32>
    %142 = arith.maximumf %139, %141 : vector<16x512xf32>
    %143 = vector.shape_cast %142 : vector<16x512xf32> to vector<16x8x64xf32>
    %144 = vector.extract_strided_slice %143 {offsets = [0, 0, 0], sizes = [16, 8, 32], strides = [1, 1, 1]} : vector<16x8x64xf32> to vector<16x8x32xf32>
    %145 = vector.extract_strided_slice %143 {offsets = [0, 0, 32], sizes = [16, 8, 32], strides = [1, 1, 1]} : vector<16x8x64xf32> to vector<16x8x32xf32>
    %146 = arith.maximumf %144, %145 : vector<16x8x32xf32>
    %147 = vector.shape_cast %146 : vector<16x8x32xf32> to vector<128x32xf32>
    %148 = tpu.transpose %147, [1, 0] : vector<128x32xf32> -> vector<32x128xf32>
    %c0_48 = arith.constant 0 : index
    %c0_49 = arith.constant 0 : index
    %149 = vector.load %arg8[%c0_48, %c0_49] : memref<64x32xf32, #tpu.memory_space<vmem>>, vector<64x32xf32>
    %cst_50 = arith.constant dense<0.000000e+00> : vector<64x128xf32>
    %150 = tpu.matmul %149, %148, %cst_50 {dimension_numbers = #tpu.dot_dimension_numbers<[1], [0], [0], [1], [0, 0, 1, 1], [], []>} : vector<64x32xf32>, vector<32x128xf32>, vector<64x128xf32> -> vector<64x128xf32>
    %cst_51 = arith.constant dense<0.000000e+00> : vector<64xf32>
    %151 = vector.multi_reduction <add>, %150, %cst_51 [1] : vector<64x128xf32> to vector<64xf32>
    %152 = vector.shape_cast %151 : vector<64xf32> to vector<64x1xf32>
    %153 = arith.mulf %150, %150 : vector<64x128xf32>
    %cst_52 = arith.constant dense<0.000000e+00> : vector<64xf32>
    %154 = vector.multi_reduction <add>, %153, %cst_52 [1] : vector<64x128xf32> to vector<64xf32>
    %155 = vector.shape_cast %154 : vector<64xf32> to vector<64x1xf32>
    %156 = vector.extract_strided_slice %152 {offsets = [0, 0], sizes = [16, 1], strides = [1, 1]} : vector<64x1xf32> to vector<16x1xf32>
    %157 = vector.extract_strided_slice %152 {offsets = [16, 0], sizes = [16, 1], strides = [1, 1]} : vector<64x1xf32> to vector<16x1xf32>
    %158 = arith.addf %156, %157 : vector<16x1xf32>
    %159 = vector.extract_strided_slice %152 {offsets = [32, 0], sizes = [16, 1], strides = [1, 1]} : vector<64x1xf32> to vector<16x1xf32>
    %160 = arith.addf %158, %159 : vector<16x1xf32>
    %161 = vector.extract_strided_slice %152 {offsets = [48, 0], sizes = [16, 1], strides = [1, 1]} : vector<64x1xf32> to vector<16x1xf32>
    %162 = arith.addf %160, %161 : vector<16x1xf32>
    %cst_53 = arith.constant 5.120000e+02 : f32
    %163 = vector.broadcast %cst_53 : f32 to vector<16x1xf32>
    %164 = arith.divf %162, %163 : vector<16x1xf32>
    %165 = vector.extract_strided_slice %155 {offsets = [0, 0], sizes = [16, 1], strides = [1, 1]} : vector<64x1xf32> to vector<16x1xf32>
    %166 = vector.extract_strided_slice %155 {offsets = [16, 0], sizes = [16, 1], strides = [1, 1]} : vector<64x1xf32> to vector<16x1xf32>
    %167 = arith.addf %165, %166 : vector<16x1xf32>
    %168 = vector.extract_strided_slice %155 {offsets = [32, 0], sizes = [16, 1], strides = [1, 1]} : vector<64x1xf32> to vector<16x1xf32>
    %169 = arith.addf %167, %168 : vector<16x1xf32>
    %170 = vector.extract_strided_slice %155 {offsets = [48, 0], sizes = [16, 1], strides = [1, 1]} : vector<64x1xf32> to vector<16x1xf32>
    %171 = arith.addf %169, %170 : vector<16x1xf32>
    %cst_54 = arith.constant 5.120000e+02 : f32
    %172 = vector.broadcast %cst_54 : f32 to vector<16x1xf32>
    %173 = arith.divf %171, %172 : vector<16x1xf32>
    %174 = arith.mulf %164, %164 : vector<16x1xf32>
    %175 = arith.subf %173, %174 : vector<16x1xf32>
    %cst_55 = arith.constant 0.000000e+00 : f32
    %176 = vector.broadcast %cst_55 : f32 to vector<16x1xf32>
    %177 = arith.maximumf %175, %176 : vector<16x1xf32>
    %c0_56 = arith.constant 0 : index
    %c0_57 = arith.constant 0 : index
    %178 = vector.load %arg9[%c0_56, %c0_57] : memref<16x1xf32, #tpu.memory_space<vmem>>, vector<16x1xf32>
    %cst_58 = arith.constant 9.99999974E-6 : f32
    %179 = vector.broadcast %cst_58 : f32 to vector<16x1xf32>
    %180 = arith.addf %177, %179 : vector<16x1xf32>
    %181 = math.rsqrt %180 : vector<16x1xf32>
    %182 = arith.mulf %178, %181 : vector<16x1xf32>
    %c0_59 = arith.constant 0 : index
    %c0_60 = arith.constant 0 : index
    %183 = vector.load %arg10[%c0_59, %c0_60] : memref<16x1xf32, #tpu.memory_space<vmem>>, vector<16x1xf32>
    %184 = arith.mulf %164, %182 : vector<16x1xf32>
    %185 = arith.subf %183, %184 : vector<16x1xf32>
    %186 = tpu.concatenate %182, %182, %182, %182 in 0 : vector<16x1xf32>, vector<16x1xf32>, vector<16x1xf32>, vector<16x1xf32> -> vector<64x1xf32>
    %187 = vector.broadcast %186 : vector<64x1xf32> to vector<64x128xf32>
    %188 = arith.mulf %150, %187 : vector<64x128xf32>
    %189 = tpu.concatenate %185, %185, %185, %185 in 0 : vector<16x1xf32>, vector<16x1xf32>, vector<16x1xf32>, vector<16x1xf32> -> vector<64x1xf32>
    %190 = vector.broadcast %189 : vector<64x1xf32> to vector<64x128xf32>
    %191 = arith.addf %188, %190 : vector<64x128xf32>
    %cst_61 = arith.constant 0.000000e+00 : f32
    %192 = vector.broadcast %cst_61 : f32 to vector<64x128xf32>
    %193 = arith.maximumf %191, %192 : vector<64x128xf32>
    %c0_62 = arith.constant 0 : index
    %c0_63 = arith.constant 0 : index
    %194 = vector.load %arg11[%c0_62, %c0_63] : memref<4x64xf32, #tpu.memory_space<vmem>>, vector<4x64xf32>
    %cst_64 = arith.constant dense<0.000000e+00> : vector<4x128xf32>
    %195 = tpu.matmul %194, %193, %cst_64 {dimension_numbers = #tpu.dot_dimension_numbers<[1], [0], [0], [1], [0, 0, 1, 1], [], []>} : vector<4x64xf32>, vector<64x128xf32>, vector<4x128xf32> -> vector<4x128xf32>
    %c0_65 = arith.constant 0 : index
    %c0_66 = arith.constant 0 : index
    %196 = vector.load %arg12[%c0_65, %c0_66] : memref<1x1xf32, #tpu.memory_space<vmem>>, vector<1x1xf32>
    %197 = vector.broadcast %196 : vector<1x1xf32> to vector<4x128xf32>
    %198 = arith.addf %195, %197 : vector<4x128xf32>
    %cst_67 = arith.constant 5.000000e-01 : f32
    %199 = vector.broadcast %cst_67 : f32 to vector<4x128xf32>
    %200 = arith.mulf %199, %198 : vector<4x128xf32>
    %201 = math.tanh %200 : vector<4x128xf32>
    %cst_68 = arith.constant 5.000000e-01 : f32
    %202 = vector.broadcast %cst_68 : f32 to vector<4x128xf32>
    %203 = arith.mulf %202, %201 : vector<4x128xf32>
    %cst_69 = arith.constant 5.000000e-01 : f32
    %204 = vector.broadcast %cst_69 : f32 to vector<4x128xf32>
    %205 = arith.addf %203, %204 : vector<4x128xf32>
    %c0_70 = arith.constant 0 : index
    %c0_71 = arith.constant 0 : index
    %206 = vector.load %arg13[%c0_70, %c0_71] : memref<4x128xf32, #tpu.memory_space<vmem>>, vector<4x128xf32>
    tpu.vector_store %arg13[%c0_70, %c0_71], %205 {strides = array<i32>} : memref<4x128xf32, #tpu.memory_space<vmem>>, vector<4x128xf32>,
    return
  }
  func.func @transform_0(%arg0: i32) -> (i32, i32) {
    %c0_i32 = arith.constant 0 : i32
    %c0_i32_0 = arith.constant 0 : i32
    %c0_i32_1 = arith.constant 0 : i32
    return %c0_i32, %c0_i32_0 : i32, i32
  }
  func.func @transform_1(%arg0: i32) -> (i32, i32) {
    %c0_i32 = arith.constant 0 : i32
    %c0_i32_0 = arith.constant 0 : i32
    %c0_i32_1 = arith.constant 0 : i32
    return %c0_i32, %c0_i32_0 : i32, i32
  }
  func.func @transform_2(%arg0: i32) -> (i32, i32) {
    %c0_i32 = arith.constant 0 : i32
    %c0_i32_0 = arith.constant 0 : i32
    %c0_i32_1 = arith.constant 0 : i32
    return %c0_i32, %c0_i32_0 : i32, i32
  }
  func.func @transform_3(%arg0: i32) -> (i32, i32) {
    %c0_i32 = arith.constant 0 : i32
    %c0_i32_0 = arith.constant 0 : i32
    %c0_i32_1 = arith.constant 0 : i32
    return %c0_i32, %c0_i32_0 : i32, i32
  }
  func.func @transform_5(%arg0: i32) -> (i32, i32) {
    %c0_i32 = arith.constant 0 : i32
    %c0_i32_0 = arith.constant 0 : i32
    %c0_i32_1 = arith.constant 0 : i32
    return %c0_i32, %c0_i32_0 : i32, i32
  }
  func.func @transform_6(%arg0: i32) -> (i32, i32) {
    %c0_i32 = arith.constant 0 : i32
    %c0_i32_0 = arith.constant 0 : i32
    %c0_i32_1 = arith.constant 0 : i32
    return %c0_i32, %c0_i32_0 : i32, i32
  }
  func.func @transform_7(%arg0: i32) -> (i32, i32) {
    %c0_i32 = arith.constant 0 : i32
    %c0_i32_0 = arith.constant 0 : i32
    %c0_i32_1 = arith.constant 0 : i32
    return %c0_i32, %c0_i32_0 : i32, i32
  }
  func.func @transform_8(%arg0: i32) -> (i32, i32) {
    %c0_i32 = arith.constant 0 : i32
    %c0_i32_0 = arith.constant 0 : i32
    %c0_i32_1 = arith.constant 0 : i32
    return %c0_i32, %c0_i32_0 : i32, i32
  }
  func.func @transform_9(%arg0: i32) -> (i32, i32) {
    %c0_i32 = arith.constant 0 : i32
    %c0_i32_0 = arith.constant 0 : i32
    %c0_i32_1 = arith.constant 0 : i32
    return %c0_i32, %c0_i32_0 : i32, i32
  }
  func.func @transform_10(%arg0: i32) -> (i32, i32) {
    %c0_i32 = arith.constant 0 : i32
    %c0_i32_0 = arith.constant 0 : i32
    %c0_i32_1 = arith.constant 0 : i32
    return %c0_i32, %c0_i32_0 : i32, i32
  }
  func.func @transform_11(%arg0: i32) -> (i32, i32) {
    %c0_i32 = arith.constant 0 : i32
    %c0_i32_0 = arith.constant 0 : i32
    %c0_i32_1 = arith.constant 0 : i32
    return %c0_i32, %c0_i32_0 : i32, i32
  }
  func.func @transform_12(%arg0: i32) -> (i32, i32) {
    %c0_i32 = arith.constant 0 : i32
    %c0_i32_0 = arith.constant 0 : i32
    %c0_i32_1 = arith.constant 0 : i32
    return %c0_i32, %c0_i32_0 : i32, i32
  }
}

</mosaic_0001>

<bundles_post_ra>
// kernel: tiny_cnn_forward.1
= control target key start
LH: loop header
LB: loop body
LE: loop exit
PB: predicated region body
PF: predicated region fallthrough
CT: control target
= control target key end

     0   :  { %s7297_s0 = inlined_call_operand.vmem [shape: f32[32,48], index: 0, kind: input, shape index: {}]   ;;  %s7298_s1 = inlined_call_operand.hbm [shape: f32[144,256], index: 1, kind: input, shape index: {}]   ;;  %s7299_s2 = inlined_call_operand.hbm [shape: f32[1,256], index: 2, kind: input, shape index: {}]   ;;  %s7300_s3 = inlined_call_operand.hbm [shape: f32[1,256], index: 3, kind: input, shape index: {}]   ;;  %s7301_s4 = inlined_call_operand.hbm [shape: f32[768,512], index: 4, kind: input, shape index: {}]   ;;  %s7302_s5 = inlined_call_operand.hbm [shape: f32[1,512], index: 5, kind: input, shape index: {}]   ;;  %s7303_s6 = inlined_call_operand.hbm [shape: f32[1,512], index: 6, kind: input, shape index: {}]   ;;  %s7304_s7 = inlined_call_operand.vmem [shape: f32[64,32], index: 7, kind: input, shape index: {}]   ;;  %s7305_s8 = inlined_call_operand.vmem [shape: f32[16,1], index: 8, kind: input, shape index: {}]   ;;  %s7306_s9 = inlined_call_operand.vmem [shape: f32[16,1], index: 9, kind: input, shape index: {}]   ;;  %s7307_s10 = inlined_call_operand.hbm [shape: f32[4,64], index: 10, kind: input, shape index: {}]   ;;  %s7308_s11 = inlined_call_operand.<no memory space> [shape: f32[1,1], index: 11, kind: input, shape index: {}]   ;;  %s7309_s12 = inlined_call_operand.vmem [shape: f32[4,128], index: 12, kind: output, shape index: {}]  }
   0x1   :  { %v17_v0 = vstv %s7308_s11 }
   0x2   :  { %18 = vst [vmem:[#allocation4] sm:$0x1] %v17_v0 }
   0x3   :  { %19 = vsyncpa [#allocation6], 0 }
   0x4   :  { %20 = vsyncpa [#allocation8], 0 }
   0x5   :  { %21 = vsyncpa [#allocation11], 0 }
   0x6   :  { %22 = vsyncpa [#allocation14], 0  ;;  %s5365_s23 = smov [#allocation7]   ;;  %s5366_s25 = smov [#allocation10]  }
   0x7   :  { %s43_s24 = sshll.u32 %s5365_s23, 4  ;;  %s63_s26 = sshll.u32 %s5366_s25, 4  ;;  %s44_s24 = int_to_ptr.vmem [resolvable:$true] %s43_s24  ;;  %s64_s26 = int_to_ptr.vmem [resolvable:$true] %s63_s26 }
   0x8   :  { %s5201_s29 = scalar_lea.hbm %s7299_s2, 32 }
   0x9   :  { %p5202_p0 = scmp.ne.s32.totalorder %s7299_s2, %s5201_s29  ;;  %p5205_p1 = scmp.lt.u32.totalorder %s5201_s29, %s7299_s2 }
   0xb   :  { %p5207_p2 = pnand %p5205_p1, %p5202_p0 }
   0xd   :  { %5210 = shalt.err (!%p5207_p2)
}
   0xe   :  { %s5211_s15 = scalar_lea.vmem %s44_s24, 32  ;;  %p5216_p4 = scmp.lt.s32.totalorder %s44_s24, %s44_s24 }
   0xf   :  { %p5212_p3 = scmp.ne.s32.totalorder %s44_s24, %s5211_s15  ;;  %p5217_p5 = scmp.lt.s32.totalorder %s5211_s15, %s5211_s15 }
  0x11   :  { %p5218_p6 = por %p5217_p5, %p5216_p4 }
  0x13   :  { %p5219_p7 = pnand %p5218_p6, %p5212_p3 }
  0x15   :  { %5222 = shalt.err (!%p5219_p7)
}
  0x16   :  { %46 = dma.hbm_to_vmem [thread:$0]  %s7299_s2, 32, %s44_s24, [#allocation8]  }
  0x17   :  { %s5223_s20 = scalar_lea.hbm %s7302_s5, 64 }
  0x18   :  { %p5224_p8 = scmp.ne.s32.totalorder %s7302_s5, %s5223_s20  ;;  %p5227_p9 = scmp.lt.u32.totalorder %s5223_s20, %s7302_s5 }
  0x1a   :  { %p5229_p10 = pnand %p5227_p9, %p5224_p8 }
  0x1c   :  { %5232 = shalt.err (!%p5229_p10)
}
  0x1d   :  { %s5233_s27 = scalar_lea.vmem %s64_s26, 64  ;;  %p5238_p12 = scmp.lt.s32.totalorder %s64_s26, %s64_s26 }
  0x1e   :  { %p5234_p11 = scmp.ne.s32.totalorder %s64_s26, %s5233_s27  ;;  %p5239_p13 = scmp.lt.s32.totalorder %s5233_s27, %s5233_s27 }
  0x20   :  { %p5240_p0 = por %p5239_p13, %p5238_p12 }
  0x22   :  { %p5241_p1 = pnand %p5240_p0, %p5234_p11 }
  0x24   :  { %5244 = shalt.err (!%p5241_p1)
}
  0x25   :  { %66 = dma.hbm_to_vmem [thread:$0]  %s7302_s5, 64, %s64_s26, [#allocation11]  }
  0x26   :  { %s5367_s28 = smov [#allocation5]   ;;  %s5245_s11 = scalar_lea.hbm %s7298_s1, 4608 }
  0x27   :  { %s30_s29 = sshll.u32 %s5367_s28, 4  ;;  %p5246_p2 = scmp.ne.s32.totalorder %s7298_s1, %s5245_s11  ;;  %s31_s29 = int_to_ptr.vmem [resolvable:$true] %s30_s29 }
  0x28   :  { %p5249_p3 = scmp.lt.u32.totalorder %s5245_s11, %s7298_s1 }
  0x2a   :  { %p5251_p4 = pnand %p5249_p3, %p5246_p2 }
  0x2c   :  { %5254 = shalt.err (!%p5251_p4)
}
  0x2d   :  { %s5255_s18 = scalar_lea.vmem %s31_s29, 4608  ;;  %p5260_p6 = scmp.lt.s32.totalorder %s31_s29, %s31_s29 }
  0x2e   :  { %p5256_p5 = scmp.ne.s32.totalorder %s31_s29, %s5255_s18  ;;  %p5261_p7 = scmp.lt.s32.totalorder %s5255_s18, %s5255_s18 }
  0x30   :  { %p5262_p8 = por %p5261_p7, %p5260_p6 }
  0x32   :  { %p5263_p9 = pnand %p5262_p8, %p5256_p5 }
  0x34   :  { %5266 = shalt.err (!%p5263_p9)
}
  0x35   :  { %s5368_s5 = smov 256   ;;  %s5369_s26 = smov 16  }
  0x36   :  { %36 = dma.hbm_to_vmem [thread:$0]  %s7298_s1, 4608, %s31_s29, [#allocation6], %s5368_s5, %s5368_s5, %s5369_s26  }
  0x37   :  { %s5370_s21 = smov [#allocation9]   ;;  %s5371_s23 = smov [#allocation12]  }
  0x38   :  { %s53_s22 = sshll.u32 %s5370_s21, 4  ;;  %s73_s25 = sshll.u32 %s5371_s23, 4  ;;  %s54_s22 = int_to_ptr.vmem [resolvable:$true] %s53_s22  ;;  %s74_s25 = int_to_ptr.vmem [resolvable:$true] %s73_s25 }
  0x39   :  { %s5267_s24 = scalar_lea.hbm %s7300_s3, 32 }
  0x3a   :  { %p5268_p10 = scmp.ne.s32.totalorder %s7300_s3, %s5267_s24  ;;  %p5271_p11 = scmp.lt.u32.totalorder %s5267_s24, %s7300_s3 }
  0x3c   :  { %p5273_p12 = pnand %p5271_p11, %p5268_p10 }
  0x3e   :  { %5276 = shalt.err (!%p5273_p12)
}
  0x3f   :  { %s5277_s1 = scalar_lea.vmem %s54_s22, 32  ;;  %p5282_p0 = scmp.lt.s32.totalorder %s54_s22, %s54_s22 }
  0x40   :  { %p5278_p13 = scmp.ne.s32.totalorder %s54_s22, %s5277_s1  ;;  %p5283_p1 = scmp.lt.s32.totalorder %s5277_s1, %s5277_s1 }
  0x42   :  { %p5284_p2 = por %p5283_p1, %p5282_p0 }
  0x44   :  { %p5285_p3 = pnand %p5284_p2, %p5278_p13 }
  0x46   :  { %5288 = shalt.err (!%p5285_p3)
}
  0x47   :  { %56 = dma.hbm_to_vmem [thread:$0]  %s7300_s3, 32, %s54_s22, [#allocation8]  }
  0x48   :  { %s5289_s17 = scalar_lea.hbm %s7303_s6, 64 }
  0x49   :  { %p5290_p4 = scmp.ne.s32.totalorder %s7303_s6, %s5289_s17  ;;  %p5293_p5 = scmp.lt.u32.totalorder %s5289_s17, %s7303_s6 }
  0x4b   :  { %p5295_p6 = pnand %p5293_p5, %p5290_p4 }
  0x4d   :  { %5298 = shalt.err (!%p5295_p6)
}
  0x4e   :  { %s5299_s21 = scalar_lea.vmem %s74_s25, 64  ;;  %p5304_p8 = scmp.lt.s32.totalorder %s74_s25, %s74_s25 }
  0x4f   :  { %p5300_p7 = scmp.ne.s32.totalorder %s74_s25, %s5299_s21  ;;  %p5305_p9 = scmp.lt.s32.totalorder %s5299_s21, %s5299_s21 }
  0x51   :  { %p5306_p10 = por %p5305_p9, %p5304_p8 }
  0x53   :  { %p5307_p11 = pnand %p5306_p10, %p5300_p7 }
  0x55   :  { %5310 = shalt.err (!%p5307_p11)
}
  0x56   :  { %76 = dma.hbm_to_vmem [thread:$0]  %s7303_s6, 64, %s74_s25, [#allocation11]  }
  0x57   :  { %s5372_s23 = smov [#allocation13]   ;;  %s5311_s28 = scalar_lea.hbm %s7307_s10, 64 }
  0x58   :  { %s89_s27 = sshll.u32 %s5372_s23, 4  ;;  %p5312_p12 = scmp.ne.s32.totalorder %s7307_s10, %s5311_s28  ;;  %s90_s27 = int_to_ptr.vmem [resolvable:$true] %s89_s27 }
  0x59   :  { %p5315_p13 = scmp.lt.u32.totalorder %s5311_s28, %s7307_s10 }
  0x5b   :  { %p5317_p0 = pnand %p5315_p13, %p5312_p12 }
  0x5d   :  { %5320 = shalt.err (!%p5317_p0)
}
  0x5e   :  { %s5321_s29 = scalar_lea.vmem %s90_s27, 64  ;;  %p5326_p2 = scmp.lt.s32.totalorder %s90_s27, %s90_s27 }
  0x5f   :  { %p5322_p1 = scmp.ne.s32.totalorder %s90_s27, %s5321_s29  ;;  %p5327_p3 = scmp.lt.s32.totalorder %s5321_s29, %s5321_s29 }
  0x61   :  { %p5328_p4 = por %p5327_p3, %p5326_p2 }
  0x63   :  { %p5329_p5 = pnand %p5328_p4, %p5322_p1 }
  0x65   :  { %5332 = shalt.err (!%p5329_p5)
}
  0x66   :  { %92 = dma.hbm_to_vmem [thread:$0]  %s7307_s10, 64, %s90_s27, [#allocation14]  }
  0x67   :  { %5355 = dma.done.wait [#allocation6], 4608  }
  0x68   :  { %5356 = vsyncadd [#allocation6], 4294962688 }
  0x69   :  { %5357 = dma.done.wait [#allocation8], 64  }
  0x6a   :  { %5358 = vsyncadd [#allocation8], 4294967232 }
  0x6b   :  { %5359 = dma.done.wait [#allocation11], 128  }
  0x6c   :  { %5360 = vsyncadd [#allocation11], 4294967168 }
  0x6d   :  { %5361 = dma.done.wait [#allocation14], 64  }
  0x6e   :  { %5362 = vsyncadd [#allocation14], 4294967232  ;;  %v124_v1 = vlaneseq  ;;  %v7310_v2 = vmov 0.0   ;;  %v227_v10 = vld [vmem:[%s7297_s0] sm:$0xff]  ;;  %v228_v11 = vld [vmem:[%s7297_s0 + $0x8] sm:$0xff]  ;;  %vm231_vm2 = vcmask 261120  }
  0x6f   :  { %928 = vmatprep.mubr.f32.mxu1 %v7310_v2  ;;  %v5545_v12 = vld [vmem:[%s7297_s0 + $0x10] sm:$0xff]  ;;  %v4623_v14 = vpack.c.bf16 %v228_v11, %v227_v10  ;;  %v5550_v15 = vld [vmem:[%s7297_s0 + $0x18] sm:$0xff]  ;;  %s5374_s20 = smov 48   ;;  %v468_v36 = vld [vmem:[#allocation5] sm:$0xff]  ;;  %s5375_s0 = smov 96  }
  0x70   :  { %v5527_v3 = vshrl.u32 %v124_v1, 7  ;;  %v5529_v4 = vand.u32 127, %v124_v1  ;;  %432 = vrot.lane.b32.xlu1 %v228_v11, %s5374_s20  ;;  %430 = vrot.lane.b32.xlu0 %v227_v10, %s5374_s20  ;;  %v4627_v18 = vpack.c.bf16 %v5550_v15, %v5545_v12  ;;  %v469_v34 = vld [vmem:[#allocation5 + $0x8] sm:$0xff]  ;;  %v471_v35 = vld [vmem:[#allocation5 + $0x18] sm:$0xff]  ;;  %v470_v38 = vld [vmem:[#allocation5 + $0x10] sm:$0xff]  ;;  %s5376_s21 = smov 32  }
  0x71   :  { %4624 = vmatprep.subr.bf16.mxu0 %v4623_v14  ;;  %v4639_v37 = vpack.c.bf16 %v471_v35, %v469_v34  ;;  %v473_v39 = vld [vmem:[#allocation5 + $0x28] sm:$0xff]  ;;  %v475_v40 = vld [vmem:[#allocation5 + $0x38] sm:$0xff]  ;;  %v4641_v41 = vpack.c.bf16 %v470_v38, %v468_v36  ;;  %v472_v43 = vld [vmem:[#allocation5 + $0x20] sm:$0xff]  ;;  %s5379_s3 = smov [#allocation2]   ;;  %s5333_s2 = scalar_lea.hbm %s7301_s4, 49152 }
  0x72   :  { %v4408_v5 = vadd.s32 4294967295, %v5527_v3  ;;  %v143_v6 = vand.u32 15, %v5527_v3  ;;  %v126_v7 = vadd.s32 8, %v5527_v3  ;;  %v127_v8 = vadd.s32 16, %v5527_v3  ;;  %4626 = vmatpush3.bf16.msra.mxu0 %v4623_v14  ;;  %v474_v44 = vld [vmem:[#allocation5 + $0x30] sm:$0xff]  ;;  %v477_v45 = vld [vmem:[#allocation5 + $0x48] sm:$0xff]  ;;  %p5334_p6 = scmp.ne.s32.totalorder %s7301_s4, %s5333_s2  ;;  %p5337_p7 = scmp.lt.u32.totalorder %s5333_s2, %s7301_s4 }
  0x73   :  { %v128_v17 = vadd.s32 24, %v5527_v3  ;;  %4628 = vmatprep.subr.bf16.mxu0 %v4627_v18  ;;  %v203_v21 = vadd.s32 1, %v5527_v3  ;;  %v4643_v42 = vpack.c.bf16 %v475_v40, %v473_v39  ;;  %v479_v46 = vld [vmem:[#allocation5 + $0x58] sm:$0xff]  ;;  %v4645_v47 = vpack.c.bf16 %v474_v44, %v472_v43  ;;  %v476_v49 = vld [vmem:[#allocation5 + $0x40] sm:$0xff]  ;;  %v478_v50 = vld [vmem:[#allocation5 + $0x50] sm:$0xff]  ;;  %s120_s22 = sshll.u32 %s5379_s3, 4  ;;  %s121_s22 = int_to_ptr.vmem [resolvable:$true] %s120_s22 }
  0x74   :  { %vm135_vm0 = vcmp.eq.s32.totalorder %v5529_v4, %v4408_v5  ;;  %vm187_vm1 = vcmp.ne.s32.totalorder %v143_v6, 0  ;;  %v4410_v9 = vadd.s32 4294967295, %v127_v8  ;;  %v157_v13 = vand.u32 15, %v127_v8  ;;  %v481_v51 = vld [vmem:[#allocation5 + $0x68] sm:$0xff]  ;;  %v483_v52 = vld [vmem:[#allocation5 + $0x78] sm:$0xff]  ;;  %v480_v55 = vld [vmem:[#allocation5 + $0x60] sm:$0xff]  ;;  %p5339_p8 = pnand %p5337_p7, %p5334_p6 }
  0x75   :  { %vm191_vm3 = vmand %vm135_vm0, %vm187_vm1  ;;  %v4409_v16 = vadd.s32 4294967295, %v126_v7  ;;  %v4411_v20 = vadd.s32 4294967295, %v128_v17  ;;  %v150_v22 = vand.u32 15, %v126_v7  ;;  %v204_v23 = vadd.s32 1, %v126_v7  ;;  %v482_v56 = vld [vmem:[#allocation5 + $0x70] sm:$0xff]  ;;  %v485_v57 = vld [vmem:[#allocation5 + $0x88] sm:$0xff] }
  0x76   :  { %v5558_v19 = vsel %vm191_vm3, 1.0, %v7310_v2  ;;  %vm137_vm4 = vcmp.eq.s32.totalorder %v5529_v4, %v4410_v9  ;;  %vm189_vm5 = vcmp.ne.s32.totalorder %v157_v13, 0  ;;  %4630 = vmatpush3.bf16.msra.mxu0 %v4627_v18  ;;  %vm207_vm9 = vcmp.eq.s32.totalorder %v5529_v4, %v203_v21  ;;  %v487_v58 = vld [vmem:[#allocation5 + $0x98] sm:$0xff]  ;;  %v484_v61 = vld [vmem:[#allocation5 + $0x80] sm:$0xff]  ;;  %v486_v62 = vld [vmem:[#allocation5 + $0x90] sm:$0xff] }
  0x77   :  { %4540 = vmatprep.mubr.msk.f32.mxu0 %vm231_vm2, %v5558_v19  ;;  %vm136_vm6 = vcmp.eq.s32.totalorder %v5529_v4, %v4409_v16  ;;  %vm193_vm7 = vmand %vm137_vm4, %vm189_vm5  ;;  %4632 = vmatprep.subr.bf16.mxu0 %v4623_v14  ;;  %vm138_vm8 = vcmp.eq.s32.totalorder %v5529_v4, %v4411_v20  ;;  %vm212_vm10 = vcmp.ne.s32.totalorder %v150_v22, 15  ;;  %vm208_vm11 = vcmp.eq.s32.totalorder %v5529_v4, %v204_v23  ;;  %v489_v63 = vld [vmem:[#allocation5 + $0xa8] sm:$0xff]  ;;  %v491_v0 = vld [vmem:[#allocation5 + $0xb8] sm:$0xff] }
  0x78   :  { %v5566_v24 = vsel %vm136_vm6, 1.0, %v7310_v2  ;;  %v5569_v25 = vsel %vm193_vm7, 1.0, %v7310_v2  ;;  %v205_v26 = vadd.s32 1, %v127_v8  ;;  %v164_v27 = vand.u32 15, %v128_v17  ;;  %vm216_vm12 = vmand %vm208_vm11, %vm212_vm10  ;;  %v488_v6 = vld [vmem:[#allocation5 + $0xa0] sm:$0xff]  ;;  %v490_v7 = vld [vmem:[#allocation5 + $0xb0] sm:$0xff] }
  0x79   :  { %v206_v28 = vadd.s32 1, %v128_v17  ;;  %4541 = vmatmul.mubr.msk.f32.vlgmr.msra.gmra.mrb[0].mxu0 %vm231_vm2, %v5566_v24  ;;  %v5579_v29 = vsel %vm138_vm8, 1.0, %v7310_v2  ;;  %v5582_v30 = vsel %vm207_vm9, 1.0, %v7310_v2  ;;  %v5591_v31 = vsel %vm216_vm12, 1.0, %v7310_v2  ;;  %v493_v8 = vld [vmem:[#allocation5 + $0xc8] sm:$0xff]  ;;  %v495_v9 = vld [vmem:[#allocation5 + $0xd8] sm:$0xff] }
  0x7a   :  { %4634 = vmatpush3.bf16.msra.mxu0 %v4623_v14  ;;  %4543 = vmatprep.mubr.msk.f32.mxu0 %vm231_vm2, %v5569_v25  ;;  %vm209_vm13 = vcmp.eq.s32.totalorder %v5529_v4, %v205_v26  ;;  %vm214_vm15 = vcmp.ne.s32.totalorder %v164_v27, 15  ;;  %v4647_v48 = vpack.c.bf16 %v479_v46, %v477_v45  ;;  %v4649_v53 = vpack.c.bf16 %v478_v50, %v476_v49  ;;  %v492_v13 = vld [vmem:[#allocation5 + $0xc0] sm:$0xff]  ;;  %v494_v14 = vld [vmem:[#allocation5 + $0xd0] sm:$0xff]  ;;  %v497_v16 = vld [vmem:[#allocation5 + $0xe8] sm:$0xff] }
  0x7b   :  { %4636 = vmatprep.subr.bf16.mxu0 %v4627_v18  ;;  %vm210_vm14 = vcmp.eq.s32.totalorder %v5529_v4, %v206_v28  ;;  %v5594_v32 = vsel %vm209_vm13, 1.0, %v7310_v2  ;;  %v4651_v54 = vpack.c.bf16 %v483_v52, %v481_v51  ;;  %v4653_v59 = vpack.c.bf16 %v482_v56, %v480_v55  ;;  %v499_v17 = vld [vmem:[#allocation5 + $0xf8] sm:$0xff]  ;;  %v496_v21 = vld [vmem:[#allocation5 + $0xe0] sm:$0xff]  ;;  %v498_v22 = vld [vmem:[#allocation5 + $0xf0] sm:$0xff] }
  0x7c   :  { %vm218_vm0 = vmand %vm210_vm14, %vm214_vm15  ;;  %v4655_v60 = vpack.c.bf16 %v487_v58, %v485_v57  ;;  %v4657_v1 = vpack.c.bf16 %v486_v62, %v484_v61  ;;  %v4659_v5 = vpack.c.bf16 %v491_v0, %v489_v63  ;;  %v4661_v10 = vpack.c.bf16 %v490_v7, %v488_v6  ;;  %v501_v23 = vld [vmem:[#allocation5 + $0x108] sm:$0xff]  ;;  %v503_v26 = vld [vmem:[#allocation5 + $0x118] sm:$0xff] }
  0x7d   :  { %4544 = vmatmul.mubr.msk.f32.gmra.mrb[2].mxu0 %vm231_vm2, %v5579_v29  ;;  %v5601_v33 = vsel %vm218_vm0, 1.0, %v7310_v2  ;;  %v4663_v11 = vpack.c.bf16 %v495_v9, %v493_v8  ;;  %v4667_v20 = vpack.c.bf16 %v499_v17, %v497_v16  ;;  %v4669_v27 = vpack.c.bf16 %v498_v22, %v496_v21  ;;  %v500_v34 = vld [vmem:[#allocation5 + $0x100] sm:$0xff]  ;;  %v502_v35 = vld [vmem:[#allocation5 + $0x110] sm:$0xff] }
  0x7e   :  { %4638 = vmatpush3.bf16.msra.mxu0 %v4627_v18  ;;  %4554 = vmatprep.mubr.msk.f32.mxu0 %vm231_vm2, %v5582_v30  ;;  %v4665_v18 = vpack.c.bf16 %v494_v14, %v492_v13  ;;  %v4671_v28 = vpack.c.bf16 %v503_v26, %v501_v23  ;;  %v4673_v36 = vpack.c.bf16 %v502_v35, %v500_v34  ;;  %vm458_vm1 = vcmask 392192  }
  0x7f   :  { %4640 = vmatprep.subr.bf16.mxu0 %v4639_v37  ;;  %vm463_vm3 = vcmask 785408   ;;  %vm504_vm4 = vcmask 130048   ;;  %vm648_vm5 = vcmask 1040384   ;;  %vm655_vm6 = vcmp.lt.s32.totalorder %v5529_v4, 16 }
  0x80   :  { %vm664_vm7 = vcmp.lt.s32.totalorder %v5529_v4, 32  ;;  %vm673_vm8 = vcmp.lt.s32.totalorder %v5529_v4, 64 }
  0x81   :  { %4555 = vmatmul.mubr.msk.f32.vlgmr.msra.gmra.mrb[4].mxu0 %vm231_vm2, %v5591_v31 }
  0x82   :  { %4557 = vmatprep.mubr.msk.f32.mxu0 %vm231_vm2, %v5594_v32  ;;  %4642 = vmatpush1.bf16.msra.mxu0 %v4641_v41 }
  0x83   :  { %4644 = vmatprep.subr.bf16.mxu0 %v4643_v42 }
  0x85   :  { %4558 = vmatmul.mubr.msk.f32.gmra.mrb[6].mxu0 %vm231_vm2, %v5601_v33 }
  0x86   :  { %4646 = vmatpush1.bf16.msra.mxu0 %v4645_v47 }
  0x87   :  { %4648 = vmatprep.subr.bf16.mxu0 %v4647_v48 }
  0x8a   :  { %4650 = vmatpush1.bf16.msra.mxu0 %v4649_v53 }
  0x8b   :  { %4652 = vmatprep.subr.bf16.mxu0 %v4651_v54 }
  0x8e   :  { %4654 = vmatpush1.bf16.msra.mxu0 %v4653_v59 }
  0x8f   :  { %4656 = vmatprep.subr.bf16.mxu0 %v4655_v60 }
  0x92   :  { %4658 = vmatpush1.bf16.msra.mxu0 %v4657_v1 }
  0x93   :  { %4660 = vmatprep.subr.bf16.mxu0 %v4659_v5 }
  0x96   :  { %4662 = vmatpush1.bf16.msra.mxu0 %v4661_v10 }
  0x97   :  { %4664 = vmatprep.subr.bf16.mxu0 %v4663_v11 }
  0x9a   :  { %4666 = vmatpush1.bf16.msra.mxu0 %v4665_v18 }
  0x9b   :  { %4668 = vmatprep.subr.bf16.mxu0 %v4667_v20 }
  0x9e   :  { %4670 = vmatpush1.bf16.msra.mxu0 %v4669_v27 }
  0x9f   :  { %4672 = vmatprep.subr.bf16.mxu0 %v4671_v28 }
  0xa2   :  { %4674 = vmatpush1.bf16.msra.mxu0 %v4673_v36 }
  0xe2   :  { %v433_v45 = vpop.permute.xlu1 %432  ;;  %v431_v46 = vpop.permute.xlu0 %430 }
 0x14c   :  { %v4542_v37 = vpop.f32.mrb[0].mxu0 }
 0x14d   :  { %v310_v38 = vpop.f32.mrb[1].mxu0 }
 0x14e   :  { %v459_v48 = vsel %vm458_vm1, %v310_v38, %v431_v46 }
 0x150   :  { %v4545_v39 = vpop.f32.mrb[2].mxu0 }
 0x151   :  { %v320_v40 = vpop.f32.mrb[3].mxu0 }
 0x154   :  { %v4556_v41 = vpop.f32.mrb[4].mxu0 }
 0x155   :  { %448 = vrot.lane.b32.xlu1 %v4556_v41, %s5375_s0  ;;  %v407_v42 = vpop.f32.mrb[5].mxu0 }
 0x156   :  { %446 = vrot.lane.b32.xlu0 %v407_v42, %s5375_s0 }
 0x158   :  { %v4559_v43 = vpop.f32.mrb[6].mxu0 }
 0x159   :  { %v417_v44 = vpop.f32.mrb[7].mxu0 }
 0x15a   :  { %434 = vrot.lane.b32.xlu0 %v5545_v12, %s5374_s20  ;;  %450 = vrot.lane.b32.xlu1 %v417_v44, %s5375_s0  ;;  %v460_v12 = vsel %vm458_vm1, %v4542_v37, %v433_v45 }
 0x15e   :  { %436 = vrot.lane.b32.xlu0 %v5550_v15, %s5374_s20  ;;  %452 = vrot.lane.b32.xlu1 %v4559_v43, %s5375_s0 }
 0x1c7   :  { %v449_v47 = vpop.permute.xlu1 %448 }
 0x1c8   :  { %v447_v49 = vpop.permute.xlu0 %446  ;;  %v465_v52 = vsel %vm463_vm3, %v460_v12, %v449_v47 }
 0x1c9   :  { %v464_v50 = vsel %vm463_vm3, %v459_v48, %v447_v49  ;;  %4428 = vmatprep.mubr.msk.f32.mxu0 %vm504_vm4, %v447_v49 }
 0x1ca   :  { %578 = vmatmul.mubr.f32.vlgmr.msra.gmra.mrb[8].mxu0 %v464_v50 }
 0x1cb   :  { %4429 = vmatprep.mubr.msk.f32.mxu0 %vm504_vm4, %v449_v47 }
 0x1cc   :  { %v435_v15 = vpop.permute.xlu0 %434  ;;  %v451_v51 = vpop.permute.xlu1 %450 }
 0x1cd   :  { %v461_v53 = vsel %vm458_vm1, %v320_v40, %v435_v15 }
 0x1ce   :  { %584 = vmatmul.mubr.f32.gmra.mrb[10].mxu0 %v465_v52  ;;  %v466_v55 = vsel %vm463_vm3, %v461_v53, %v451_v51 }
 0x1cf   :  { %4430 = vmatprep.mubr.msk.f32.mxu0 %vm504_vm4, %v451_v51 }
 0x1d0   :  { %v437_v54 = vpop.permute.xlu0 %436  ;;  %v453_v57 = vpop.permute.xlu1 %452 }
 0x1d1   :  { %v462_v56 = vsel %vm458_vm1, %v4545_v39, %v437_v54 }
 0x1d2   :  { %590 = vmatmul.mubr.f32.gmra.mrb[12].mxu0 %v466_v55  ;;  %v467_v58 = vsel %vm463_vm3, %v462_v56, %v453_v57 }
 0x1d3   :  { %4431 = vmatprep.mubr.msk.f32.mxu0 %vm504_vm4, %v453_v57 }
 0x1d6   :  { %596 = vmatmul.mubr.f32.gmra.mrb[14].mxu0 %v467_v58 }
 0x1d7   :  { %839 = vmatprep.mubr.f32.mxu0 %v7310_v2 }
 0x29d   :  { %v5626_v59 = vpop.f32.mrb[8].mxu0 }
 0x29e   :  { %v5628_v60 = vpop.f32.mrb[9].mxu0  ;;  %v622_v62 = vmul.f32 %v5626_v59, %v5626_v59 }
 0x29f   :  { %v623_v5 = vmul.f32 %v5628_v60, %v5628_v60 }
 0x2a1   :  { %v5630_v61 = vpop.f32.mrb[10].mxu0 }
 0x2a2   :  { %v604_v63 = vadd.f32 %v5630_v61, %v5626_v59  ;;  %v624_v0 = vmul.f32 %v5630_v61, %v5630_v61  ;;  %v5638_v1 = vpop.f32.mrb[11].mxu0 }
 0x2a3   :  { %v613_v6 = vadd.f32 %v5638_v1, %v5628_v60  ;;  %v625_v7 = vmul.f32 %v5638_v1, %v5638_v1 }
 0x2a4   :  { %v630_v8 = vadd.f32 %v624_v0, %v622_v62 }
 0x2a5   :  { %v639_v9 = vadd.f32 %v625_v7, %v623_v5  ;;  %v5646_v10 = vpop.f32.mrb[12].mxu0 }
 0x2a6   :  { %v605_v11 = vadd.f32 %v604_v63, %v5646_v10  ;;  %v626_v13 = vmul.f32 %v5646_v10, %v5646_v10  ;;  %v5651_v14 = vpop.f32.mrb[13].mxu0 }
 0x2a7   :  { %v614_v16 = vadd.f32 %v613_v6, %v5651_v14  ;;  %v627_v17 = vmul.f32 %v5651_v14, %v5651_v14 }
 0x2a8   :  { %v631_v18 = vadd.f32 %v630_v8, %v626_v13 }
 0x2a9   :  { %v640_v20 = vadd.f32 %v639_v9, %v627_v17  ;;  %v5656_v21 = vpop.f32.mrb[14].mxu0 }
 0x2aa   :  { %v606_v22 = vadd.f32 %v605_v11, %v5656_v21  ;;  %v628_v23 = vmul.f32 %v5656_v21, %v5656_v21  ;;  %v5661_v26 = vpop.f32.mrb[15].mxu0 }
 0x2ab   :  { %v615_v27 = vadd.f32 %v614_v16, %v5661_v26  ;;  %v629_v28 = vmul.f32 %v5661_v26, %v5661_v26 }
 0x2ac   :  { %v607_v34 = vrot.slane %v606_v22, 4  ;;  %v632_v35 = vadd.f32 %v631_v18, %v628_v23 }
 0x2ad   :  { %v616_v36 = vrot.slane %v615_v27, 4  ;;  %v641_v37 = vadd.f32 %v640_v20, %v629_v28 }
 0x2ae   :  { %v608_v38 = vadd.f32 %v607_v34, %v606_v22  ;;  %v633_v39 = vrot.slane %v632_v35, 4 }
 0x2af   :  { %v617_v40 = vadd.f32 %v616_v36, %v615_v27  ;;  %v642_v41 = vrot.slane %v641_v37, 4 }
 0x2b0   :  { %v609_v42 = vrot.slane %v608_v38, 2  ;;  %v634_v43 = vadd.f32 %v633_v39, %v632_v35 }
 0x2b1   :  { %v618_v44 = vrot.slane %v617_v40, 2  ;;  %v643_v45 = vadd.f32 %v642_v41, %v641_v37 }
 0x2b2   :  { %v610_v46 = vadd.f32 %v609_v42, %v608_v38  ;;  %v635_v47 = vrot.slane %v634_v43, 2  ;;  %v5378_v42 = vmov 1966171168  }
 0x2b3   :  { %v619_v48 = vadd.f32 %v618_v44, %v617_v40  ;;  %v644_v49 = vrot.slane %v643_v45, 2 }
 0x2b4   :  { %v611_v50 = vrot.slane %v610_v46, 1  ;;  %v636_v12 = vadd.f32 %v635_v47, %v634_v43  ;;  %v692_v43 = vunpack.c.l.s4 %v5378_v42 }
 0x2b5   :  { %v620_v15 = vrot.slane %v619_v48, 1  ;;  %v645_v51 = vadd.f32 %v644_v49, %v643_v45 }
 0x2b6   :  { %v637_v52 = vrot.slane %v636_v12, 1  ;;  %v612_v54 = vadd.f32 %v611_v50, %v610_v46  ;;  %v693_v44 = vunpack.c.0.s8 %v692_v43  ;;  %v602_v50 = vld [vmem:[#allocation7] sm:$0x3] }
 0x2b7   :  { %v646_v53 = vrot.slane %v645_v51, 1  ;;  %v621_v56 = vadd.f32 %v620_v15, %v619_v48  ;;  %v5693_v15 = vsub.s32 1, %v5527_v3 }
 0x2b8   :  { %v638_v55 = vadd.f32 %v637_v52, %v636_v12  ;;  %v5686_v45 = vsub.s32 %v693_v44, %v5527_v3  ;;  %v5690_v12 = vsub.s32 0, %v5527_v3 }
 0x2b9   :  { %v647_v57 = vadd.f32 %v646_v53, %v645_v51 }
 0x2ba   :  { %v649_v58 = vsel %vm648_vm5, %v612_v54, %v638_v55 }
 0x2bb   :  { %651 = vrot.lane.b32.xlu0 %v649_v58, %s5369_s26  ;;  %v650_v62 = vsel %vm648_vm5, %v621_v56, %v647_v57 }
 0x2bc   :  { %653 = vrot.lane.b32.xlu1 %v650_v62, %s5369_s26  ;;  %s5377_s26 = smov 64  }
 0x32d   :  { %v652_v63 = vpop.permute.xlu0 %651 }
 0x32e   :  { %v654_v0 = vpop.permute.xlu1 %653 }
 0x32f   :  { %v656_v5 = vsel %vm655_vm6, %v652_v63, %v654_v0  ;;  %v657_v6 = vsel %vm655_vm6, %v654_v0, %v652_v63 }
 0x330   :  { %v658_v7 = vadd.f32 %v657_v6, %v649_v58  ;;  %v659_v8 = vadd.f32 %v656_v5, %v650_v62  ;;  %v603_v62 = vld [vmem:[#allocation9] sm:$0x3] }
 0x332   :  { %660 = vrot.lane.b32.xlu0 %v658_v7, %s5376_s21  ;;  %662 = vrot.lane.b32.xlu1 %v659_v8, %s5376_s21 }
 0x3a4   :  { %v661_v9 = vpop.permute.xlu0 %660  ;;  %v663_v11 = vpop.permute.xlu1 %662 }
 0x3a5   :  { %v665_v13 = vsel %vm664_vm7, %v661_v9, %v663_v11  ;;  %v666_v16 = vsel %vm664_vm7, %v663_v11, %v661_v9 }
 0x3a6   :  { %v667_v17 = vadd.f32 %v666_v16, %v658_v7  ;;  %v668_v18 = vadd.f32 %v665_v13, %v659_v8 }
 0x3a8   :  { %669 = vrot.lane.b32.xlu0 %v667_v17, %s5377_s26  ;;  %671 = vrot.lane.b32.xlu1 %v668_v18, %s5377_s26 }
 0x41a   :  { %v670_v20 = vpop.permute.xlu0 %669  ;;  %v672_v22 = vpop.permute.xlu1 %671 }
 0x41b   :  { %v674_v23 = vsel %vm673_vm8, %v670_v20, %v672_v22  ;;  %v675_v27 = vsel %vm673_vm8, %v672_v22, %v670_v20 }
 0x41c   :  { %v676_v28 = vadd.f32 %v675_v27, %v667_v17  ;;  %v677_v34 = vadd.f32 %v674_v23, %v668_v18 }
 0x41e   :  { %v678_v35 = vadd.f32 %v677_v34, %v676_v28 }
 0x420   :  { %v680_v36 = vmul.f32 0.001953125, %v678_v35 }
 0x422   :  { %v681_v37 = vmul.f32 %v680_v36, %v680_v36 }
 0x424   :  { %v683_v38 = vrot.slane %v681_v37, 7 }
 0x426   :  { %v685_v39 = vsub.f32 %v680_v36, %v683_v38 }
 0x428   :  { %v686_v40 = vmax.f32 %v685_v39, 0.0 }
 0x42a   :  { %v687_v41 = vadd.f32 1e-05, %v686_v40 }
 0x42c   :  { %5187 = vrsqrt.f32 %v687_v41 }
 0x436   :  { %v5188_v46 = vpop.eup %5187 }
 0x437   :  { %v690_v47 = vcombine.low %v5188_v46, %v5188_v46 }
 0x439   :  { %v697_v48 = vrot.slane %v690_v47, %v5686_v45 }
 0x43b   :  { %v698_v49 = vcombine.high %v697_v48, %v697_v48 }
 0x43d   :  { %v705_v51 = vrot.slane %v698_v49, %v5686_v45 }
 0x43f   :  { %v707_v52 = vmul.f32 %v705_v51, %v602_v50 }
 0x441   :  { %v712_v53 = vrot.slane %v707_v52, %v5690_v12  ;;  %v716_v54 = vrot.slane %v707_v52, %v5693_v15 }
 0x443   :  { %v719_v55 = vmul.f32 %v712_v53, %v680_v36  ;;  %v720_v56 = vmul.f32 %v716_v54, %v680_v36  ;;  %v741_v5 = vmul.f32 %v716_v54, %v5628_v60  ;;  %v743_v6 = vmul.f32 %v716_v54, %v5638_v1 }
 0x444   :  { %v740_v8 = vmul.f32 %v712_v53, %v5626_v59  ;;  %v742_v9 = vmul.f32 %v712_v53, %v5630_v61  ;;  %v745_v13 = vmul.f32 %v716_v54, %v5651_v14  ;;  %v747_v16 = vmul.f32 %v716_v54, %v5661_v26 }
 0x445   :  { %v723_v57 = vcombine.low %v719_v55, %v720_v56  ;;  %v744_v17 = vmul.f32 %v712_v53, %v5646_v10  ;;  %v746_v18 = vmul.f32 %v712_v53, %v5656_v21 }
 0x447   :  { %v730_v58 = vrot.slane %v723_v57, %v5686_v45 }
 0x449   :  { %v737_v63 = vrot.slane %v730_v58, %v5686_v45 }
 0x44b   :  { %v739_v0 = vsub.f32 %v603_v62, %v737_v63 }
 0x44d   :  { %v756_v7 = vrot.slane %v739_v0, %v5693_v15  ;;  %v752_v11 = vrot.slane %v739_v0, %v5690_v12 }
 0x44f   :  { %v760_v20 = vadd.f32 %v756_v7, %v741_v5  ;;  %v762_v60 = vadd.f32 %v756_v7, %v743_v6  ;;  %v759_v22 = vadd.f32 %v752_v11, %v740_v8  ;;  %v761_v1 = vadd.f32 %v752_v11, %v742_v9 }
 0x450   :  { %v764_v23 = vadd.f32 %v756_v7, %v745_v13  ;;  %v766_v27 = vadd.f32 %v756_v7, %v747_v16  ;;  %v763_v28 = vadd.f32 %v752_v11, %v744_v17  ;;  %v765_v59 = vadd.f32 %v752_v11, %v746_v18 }
 0x451   :  { %v5710_v34 = vmax.f32 %v760_v20, 0.0  ;;  %v5712_v61 = vmax.f32 %v762_v60, 0.0  ;;  %v5714_v35 = vmax.f32 %v759_v22, 0.0  ;;  %v5716_v14 = vmax.f32 %v761_v1, 0.0 }
 0x452   :  { %v5718_v26 = vmax.f32 %v764_v23, 0.0  ;;  %v5720_v10 = vmax.f32 %v766_v27, 0.0  ;;  %v5722_v21 = vmax.f32 %v763_v28, 0.0  ;;  %v5724_v36 = vmax.f32 %v765_v59, 0.0 }
 0x453   :  { %v4675_v37 = vpack.c.bf16 %v5712_v61, %v5710_v34  ;;  %v4677_v38 = vpack.c.bf16 %v5716_v14, %v5714_v35 }
 0x454   :  { %v4679_v39 = vpack.c.bf16 %v5720_v10, %v5718_v26  ;;  %v4681_v40 = vpack.c.bf16 %v5724_v36, %v5722_v21 }
 0x455   :  { %4676 = vmatprep.subr.bf16.mxu0 %v4675_v37  ;;  %4684 = vmatprep.subr.bf16.mxu1 %v4675_v37 }
 0x456   :  { %4678 = vmatpush1.bf16.msra.mxu0 %v4677_v38  ;;  %4686 = vmatpush1.bf16.msra.mxu1 %v4677_v38 }
 0x457   :  { %4680 = vmatprep.subr.bf16.mxu0 %v4679_v39  ;;  %4688 = vmatprep.subr.bf16.mxu1 %v4679_v39 }
 0x45a   :  { %4682 = vmatpush1.bf16.msra.mxu0 %v4681_v40  ;;  %4690 = vmatpush1.bf16.msra.mxu1 %v4681_v40 }
 0x45d   :  { %4432 = vmatmul.mubr.msk.f32.vlgmr.msra.gmra.mrb[16].mxu0 %vm231_vm2, %v5558_v19  ;;  %4436 = vmatmul.mubr.msk.f32.vlgmr.msra.gmra.mrb[0].mxu1 %vm231_vm2, %v5582_v30 }
 0x45e   :  { %845 = vmatprep.mubr.f32.mxu0 %v7310_v2  ;;  %934 = vmatprep.mubr.f32.mxu1 %v7310_v2 }
 0x461   :  { %4433 = vmatmul.mubr.msk.f32.gmra.mrb[18].mxu0 %vm231_vm2, %v5566_v24  ;;  %4437 = vmatmul.mubr.msk.f32.gmra.mrb[2].mxu1 %vm231_vm2, %v5591_v31 }
 0x462   :  { %851 = vmatprep.mubr.f32.mxu0 %v7310_v2  ;;  %940 = vmatprep.mubr.f32.mxu1 %v7310_v2 }
 0x465   :  { %4434 = vmatmul.mubr.msk.f32.gmra.mrb[20].mxu0 %vm231_vm2, %v5569_v25  ;;  %4438 = vmatmul.mubr.msk.f32.gmra.mrb[4].mxu1 %vm231_vm2, %v5594_v32 }
 0x466   :  { %857 = vmatprep.mubr.f32.mxu0 %v7310_v2  ;;  %946 = vmatprep.mubr.f32.mxu1 %v7310_v2 }
 0x469   :  { %4435 = vmatmul.mubr.msk.f32.gmra.mrb[22].mxu0 %vm231_vm2, %v5579_v29  ;;  %4439 = vmatmul.mubr.msk.f32.gmra.mrb[6].mxu1 %vm231_vm2, %v5601_v33 }
 0x46a   :  { %5342 = shalt.err (!%p5339_p8)  }
 0x46b   :  { %s5343_s11 = scalar_lea.vmem %s121_s22, 49152  ;;  %p5348_p10 = scmp.lt.s32.totalorder %s121_s22, %s121_s22 }
 0x46c   :  { %p5344_p9 = scmp.ne.s32.totalorder %s121_s22, %s5343_s11  ;;  %p5349_p11 = scmp.lt.s32.totalorder %s5343_s11, %s5343_s11 }
 0x46e   :  { %p5350_p12 = por %p5349_p11, %p5348_p10 }
 0x470   :  { %p5351_p13 = pnand %p5350_p12, %p5344_p9 }
 0x472   :  { %5354 = shalt.err (!%p5351_p13)  }
 0x473   :  { %123 = dma.hbm_to_vmem [thread:$0]  %s7301_s4, 49152, %s121_s22, [#allocation3] }
 0x530   :  { %v5768_v19 = vpop.f32.mrb[16].mxu0  ;;  %v5770_v24 = vpop.f32.mrb[0].mxu1 }
 0x531   :  { %v843_v25 = vpop.f32.mrb[17].mxu0  ;;  %v5772_v29 = vpop.f32.mrb[1].mxu1 }
 0x534   :  { %v5774_v30 = vpop.f32.mrb[18].mxu0  ;;  %v5776_v31 = vpop.f32.mrb[2].mxu1 }
 0x535   :  { %v5778_v32 = vpop.f32.mrb[19].mxu0  ;;  %v5780_v33 = vpop.f32.mrb[3].mxu1 }
 0x538   :  { %v5782_v41 = vpop.f32.mrb[20].mxu0  ;;  %v5784_v42 = vpop.f32.mrb[4].mxu1 }
 0x539   :  { %v5786_v43 = vpop.f32.mrb[21].mxu0  ;;  %v5788_v44 = vpop.f32.mrb[5].mxu1 }
 0x53c   :  { %v5790_v46 = vpop.f32.mrb[22].mxu0  ;;  %v5792_v47 = vpop.f32.mrb[6].mxu1 }
 0x53d   :  { %v5794_v48 = vpop.f32.mrb[23].mxu0  ;;  %v5796_v49 = vpop.f32.mrb[7].mxu1 }
 0x53e   :  { %5363 = dma.done.wait [#allocation3], 49152 }
 0x53f   :  { %5364 = vsyncadd [#allocation3], 4294918144  ;;  %1405 = vmatprep.mubr.f32.mxu1 %v843_v25  ;;  %1672 = vmatprep.mubr.f32.mxu0 %v843_v25  ;;  %v958_v50 = vld [vmem:[#allocation2 + $0x8] sm:$0xff]  ;;  %v960_v52 = vld [vmem:[#allocation2 + $0x18] sm:$0xff]  ;;  %vm2558_vm9 = vcmask 1041409   ;;  %vm2560_vm10 = vcmask 1043459  }
 0x540   :  { %v962_v51 = vld [vmem:[#allocation2 + $0x28] sm:$0xff]  ;;  %v964_v54 = vld [vmem:[#allocation2 + $0x38] sm:$0xff]  ;;  %v957_v55 = vld [vmem:[#allocation2] sm:$0xff]  ;;  %vm2562_vm11 = vcmask 1045509   ;;  %vm2564_vm12 = vcmask 1047559   ;;  %vm4315_vm14 = vcmask 523264  }
 0x541   :  { %v4691_v53 = vpack.c.bf16 %v962_v51, %v958_v50  ;;  %v961_v56 = vld [vmem:[#allocation2 + $0x20] sm:$0xff]  ;;  %v4883_v57 = vpack.c.bf16 %v964_v54, %v960_v52  ;;  %v959_v62 = vld [vmem:[#allocation2 + $0x10] sm:$0xff]  ;;  %v966_v0 = vld [vmem:[#allocation2 + $0x48] sm:$0xff] }
 0x542   :  { %v4693_v58 = vpack.c.bf16 %v961_v56, %v957_v55  ;;  %v963_v63 = vld [vmem:[#allocation2 + $0x30] sm:$0xff]  ;;  %v970_v6 = vld [vmem:[#allocation2 + $0x68] sm:$0xff]  ;;  %v968_v7 = vld [vmem:[#allocation2 + $0x58] sm:$0xff] }
 0x543   :  { %4692 = vmatprep.subr.bf16.mxu1 %v4691_v53  ;;  %v4885_v5 = vpack.c.bf16 %v963_v63, %v959_v62  ;;  %v972_v8 = vld [vmem:[#allocation2 + $0x78] sm:$0xff]  ;;  %4884 = vmatprep.subr.bf16.mxu0 %v4883_v57  ;;  %v4695_v9 = vpack.c.bf16 %v970_v6, %v966_v0  ;;  %v965_v13 = vld [vmem:[#allocation2 + $0x40] sm:$0xff]  ;;  %v967_v17 = vld [vmem:[#allocation2 + $0x50] sm:$0xff] }
 0x544   :  { %4694 = vmatpush1.bf16.msra.mxu1 %v4693_v58  ;;  %v4887_v11 = vpack.c.bf16 %v972_v8, %v968_v7  ;;  %v969_v16 = vld [vmem:[#allocation2 + $0x60] sm:$0xff]  ;;  %v971_v20 = vld [vmem:[#allocation2 + $0x70] sm:$0xff]  ;;  %v974_v60 = vld [vmem:[#allocation2 + $0x88] sm:$0xff] }
 0x545   :  { %4886 = vmatpush1.bf16.msra.mxu0 %v4885_v5  ;;  %v4697_v18 = vpack.c.bf16 %v969_v16, %v965_v13  ;;  %v978_v22 = vld [vmem:[#allocation2 + $0xa8] sm:$0xff]  ;;  %4696 = vmatprep.subr.bf16.mxu1 %v4695_v9  ;;  %v4889_v1 = vpack.c.bf16 %v971_v20, %v967_v17  ;;  %v976_v27 = vld [vmem:[#allocation2 + $0x98] sm:$0xff]  ;;  %v973_v59 = vld [vmem:[#allocation2 + $0x80] sm:$0xff] }
 0x546   :  { %4888 = vmatprep.subr.bf16.mxu0 %v4887_v11  ;;  %v4699_v23 = vpack.c.bf16 %v978_v22, %v974_v60  ;;  %v980_v28 = vld [vmem:[#allocation2 + $0xb8] sm:$0xff]  ;;  %v977_v38 = vld [vmem:[#allocation2 + $0xa0] sm:$0xff]  ;;  %v975_v39 = vld [vmem:[#allocation2 + $0x90] sm:$0xff] }
 0x547   :  { %v4891_v37 = vpack.c.bf16 %v980_v28, %v976_v27  ;;  %v979_v40 = vld [vmem:[#allocation2 + $0xb0] sm:$0xff]  ;;  %v4701_v25 = vpack.c.bf16 %v977_v38, %v973_v59  ;;  %v982_v50 = vld [vmem:[#allocation2 + $0xc8] sm:$0xff]  ;;  %v984_v52 = vld [vmem:[#allocation2 + $0xd8] sm:$0xff] }
 0x548   :  { %4698 = vmatpush1.bf16.msra.mxu1 %v4697_v18  ;;  %v986_v51 = vld [vmem:[#allocation2 + $0xe8] sm:$0xff]  ;;  %v4893_v53 = vpack.c.bf16 %v979_v40, %v975_v39  ;;  %v988_v55 = vld [vmem:[#allocation2 + $0xf8] sm:$0xff]  ;;  %v981_v56 = vld [vmem:[#allocation2 + $0xc0] sm:$0xff] }
 0x549   :  { %4890 = vmatpush1.bf16.msra.mxu0 %v4889_v1  ;;  %4700 = vmatprep.subr.bf16.mxu1 %v4699_v23  ;;  %v4703_v54 = vpack.c.bf16 %v986_v51, %v982_v50  ;;  %v985_v57 = vld [vmem:[#allocation2 + $0xe0] sm:$0xff]  ;;  %v4895_v58 = vpack.c.bf16 %v988_v55, %v984_v52  ;;  %v983_v62 = vld [vmem:[#allocation2 + $0xd0] sm:$0xff]  ;;  %v990_v0 = vld [vmem:[#allocation2 + $0x108] sm:$0xff] }
 0x54a   :  { %4892 = vmatprep.subr.bf16.mxu0 %v4891_v37  ;;  %v987_v63 = vld [vmem:[#allocation2 + $0xf0] sm:$0xff]  ;;  %v994_v5 = vld [vmem:[#allocation2 + $0x128] sm:$0xff]  ;;  %v992_v6 = vld [vmem:[#allocation2 + $0x118] sm:$0xff]  ;;  %v4705_v8 = vpack.c.bf16 %v985_v57, %v981_v56 }
 0x54b   :  { %v996_v7 = vld [vmem:[#allocation2 + $0x138] sm:$0xff]  ;;  %v4897_v9 = vpack.c.bf16 %v987_v63, %v983_v62  ;;  %v4707_v11 = vpack.c.bf16 %v994_v5, %v990_v0  ;;  %v989_v13 = vld [vmem:[#allocation2 + $0x100] sm:$0xff]  ;;  %v991_v17 = vld [vmem:[#allocation2 + $0x110] sm:$0xff] }
 0x54c   :  { %4702 = vmatpush1.bf16.msra.mxu1 %v4701_v25  ;;  %v993_v16 = vld [vmem:[#allocation2 + $0x120] sm:$0xff]  ;;  %v4899_v18 = vpack.c.bf16 %v996_v7, %v992_v6  ;;  %v995_v20 = vld [vmem:[#allocation2 + $0x130] sm:$0xff]  ;;  %v998_v60 = vld [vmem:[#allocation2 + $0x148] sm:$0xff] }
 0x54d   :  { %4894 = vmatpush1.bf16.msra.mxu0 %v4893_v53  ;;  %4704 = vmatprep.subr.bf16.mxu1 %v4703_v54  ;;  %v1002_v22 = vld [vmem:[#allocation2 + $0x168] sm:$0xff]  ;;  %v1000_v1 = vld [vmem:[#allocation2 + $0x158] sm:$0xff]  ;;  %v4709_v27 = vpack.c.bf16 %v993_v16, %v989_v13  ;;  %v4901_v28 = vpack.c.bf16 %v995_v20, %v991_v17  ;;  %v997_v37 = vld [vmem:[#allocation2 + $0x140] sm:$0xff] }
 0x54e   :  { %4896 = vmatprep.subr.bf16.mxu0 %v4895_v58  ;;  %v1004_v23 = vld [vmem:[#allocation2 + $0x178] sm:$0xff]  ;;  %v4711_v59 = vpack.c.bf16 %v1002_v22, %v998_v60  ;;  %v1001_v38 = vld [vmem:[#allocation2 + $0x160] sm:$0xff]  ;;  %v999_v39 = vld [vmem:[#allocation2 + $0x150] sm:$0xff] }
 0x54f   :  { %v4903_v40 = vpack.c.bf16 %v1004_v23, %v1000_v1  ;;  %v1003_v25 = vld [vmem:[#allocation2 + $0x170] sm:$0xff]  ;;  %v1006_v50 = vld [vmem:[#allocation2 + $0x188] sm:$0xff]  ;;  %v1008_v52 = vld [vmem:[#allocation2 + $0x198] sm:$0xff]  ;;  %v4713_v54 = vpack.c.bf16 %v1001_v38, %v997_v37 }
 0x550   :  { %4706 = vmatpush1.bf16.msra.mxu1 %v4705_v8  ;;  %v1010_v51 = vld [vmem:[#allocation2 + $0x1a8] sm:$0xff]  ;;  %v1012_v53 = vld [vmem:[#allocation2 + $0x1b8] sm:$0xff]  ;;  %v4905_v55 = vpack.c.bf16 %v1003_v25, %v999_v39  ;;  %v1005_v57 = vld [vmem:[#allocation2 + $0x180] sm:$0xff] }
 0x551   :  { %4898 = vmatpush1.bf16.msra.mxu0 %v4897_v9  ;;  %4708 = vmatprep.subr.bf16.mxu1 %v4707_v11  ;;  %v4715_v56 = vpack.c.bf16 %v1010_v51, %v1006_v50  ;;  %v1009_v58 = vld [vmem:[#allocation2 + $0x1a0] sm:$0xff]  ;;  %v1007_v62 = vld [vmem:[#allocation2 + $0x190] sm:$0xff]  ;;  %v4907_v63 = vpack.c.bf16 %v1012_v53, %v1008_v52  ;;  %v1014_v5 = vld [vmem:[#allocation2 + $0x1c8] sm:$0xff] }
 0x552   :  { %4900 = vmatprep.subr.bf16.mxu0 %v4899_v18  ;;  %v1011_v0 = vld [vmem:[#allocation2 + $0x1b0] sm:$0xff]  ;;  %v1018_v6 = vld [vmem:[#allocation2 + $0x1e8] sm:$0xff]  ;;  %v1016_v7 = vld [vmem:[#allocation2 + $0x1d8] sm:$0xff]  ;;  %v4717_v9 = vpack.c.bf16 %v1009_v58, %v1005_v57 }
 0x553   :  { %v1020_v8 = vld [vmem:[#allocation2 + $0x1f8] sm:$0xff]  ;;  %v4909_v11 = vpack.c.bf16 %v1011_v0, %v1007_v62  ;;  %v4719_v13 = vpack.c.bf16 %v1018_v6, %v1014_v5  ;;  %v1013_v16 = vld [vmem:[#allocation2 + $0x1c0] sm:$0xff]  ;;  %v1015_v18 = vld [vmem:[#allocation2 + $0x1d0] sm:$0xff] }
 0x554   :  { %4710 = vmatpush1.bf16.msra.mxu1 %v4709_v27  ;;  %v1017_v17 = vld [vmem:[#allocation2 + $0x1e0] sm:$0xff]  ;;  %v4911_v20 = vpack.c.bf16 %v1020_v8, %v1016_v7  ;;  %v1019_v60 = vld [vmem:[#allocation2 + $0x1f0] sm:$0xff]  ;;  %v1022_v22 = vld [vmem:[#allocation2 + $0x208] sm:$0xff] }
 0x555   :  { %4902 = vmatpush1.bf16.msra.mxu0 %v4901_v28  ;;  %4712 = vmatprep.subr.bf16.mxu1 %v4711_v59  ;;  %v1026_v1 = vld [vmem:[#allocation2 + $0x228] sm:$0xff]  ;;  %v1024_v23 = vld [vmem:[#allocation2 + $0x218] sm:$0xff]  ;;  %v4721_v28 = vpack.c.bf16 %v1017_v17, %v1013_v16  ;;  %v4913_v59 = vpack.c.bf16 %v1019_v60, %v1015_v18  ;;  %v1021_v38 = vld [vmem:[#allocation2 + $0x200] sm:$0xff] }
 0x556   :  { %4904 = vmatprep.subr.bf16.mxu0 %v4903_v40  ;;  %v1028_v27 = vld [vmem:[#allocation2 + $0x238] sm:$0xff]  ;;  %v4723_v37 = vpack.c.bf16 %v1026_v1, %v1022_v22  ;;  %v1025_v39 = vld [vmem:[#allocation2 + $0x220] sm:$0xff]  ;;  %v1023_v40 = vld [vmem:[#allocation2 + $0x210] sm:$0xff] }
 0x557   :  { %v4915_v25 = vpack.c.bf16 %v1028_v27, %v1024_v23  ;;  %v1027_v50 = vld [vmem:[#allocation2 + $0x230] sm:$0xff]  ;;  %v1030_v51 = vld [vmem:[#allocation2 + $0x248] sm:$0xff]  ;;  %v1032_v53 = vld [vmem:[#allocation2 + $0x258] sm:$0xff] }
 0x558   :  { %4714 = vmatpush1.bf16.msra.mxu1 %v4713_v54  ;;  %v1034_v52 = vld [vmem:[#allocation2 + $0x268] sm:$0xff]  ;;  %v1036_v54 = vld [vmem:[#allocation2 + $0x278] sm:$0xff]  ;;  %v1029_v58 = vld [vmem:[#allocation2 + $0x240] sm:$0xff] }
 0x559   :  { %4906 = vmatpush1.bf16.msra.mxu0 %v4905_v55  ;;  %4716 = vmatprep.subr.bf16.mxu1 %v4715_v56  ;;  %v4725_v55 = vpack.c.bf16 %v1025_v39, %v1021_v38  ;;  %v4917_v56 = vpack.c.bf16 %v1027_v50, %v1023_v40  ;;  %v4727_v57 = vpack.c.bf16 %v1034_v52, %v1030_v51  ;;  %v1033_v62 = vld [vmem:[#allocation2 + $0x260] sm:$0xff]  ;;  %v1035_v5 = vld [vmem:[#allocation2 + $0x270] sm:$0xff]  ;;  %v1038_v6 = vld [vmem:[#allocation2 + $0x288] sm:$0xff] }
 0x55a   :  { %4908 = vmatprep.subr.bf16.mxu0 %v4907_v63  ;;  %v1031_v63 = vld [vmem:[#allocation2 + $0x250] sm:$0xff]  ;;  %v4919_v0 = vpack.c.bf16 %v1036_v54, %v1032_v53  ;;  %v1042_v7 = vld [vmem:[#allocation2 + $0x2a8] sm:$0xff]  ;;  %v1040_v8 = vld [vmem:[#allocation2 + $0x298] sm:$0xff] }
 0x55b   :  { %v4731_v16 = vpack.c.bf16 %v1042_v7, %v1038_v6  ;;  %v1037_v17 = vld [vmem:[#allocation2 + $0x280] sm:$0xff]  ;;  %v1043_v22 = vld [vmem:[#allocation2 + $0x2b0] sm:$0xff]  ;;  %v1046_v1 = vld [vmem:[#allocation2 + $0x2c8] sm:$0xff] }
 0x55c   :  { %4718 = vmatpush1.bf16.msra.mxu1 %v4717_v9  ;;  %v1044_v9 = vld [vmem:[#allocation2 + $0x2b8] sm:$0xff]  ;;  %v1041_v18 = vld [vmem:[#allocation2 + $0x2a0] sm:$0xff]  ;;  %v1050_v23 = vld [vmem:[#allocation2 + $0x2e8] sm:$0xff] }
 0x55d   :  { %4910 = vmatpush1.bf16.msra.mxu0 %v4909_v11  ;;  %4720 = vmatprep.subr.bf16.mxu1 %v4719_v13  ;;  %v4729_v11 = vpack.c.bf16 %v1033_v62, %v1029_v58  ;;  %v4921_v13 = vpack.c.bf16 %v1035_v5, %v1031_v63  ;;  %v4923_v60 = vpack.c.bf16 %v1044_v9, %v1040_v8  ;;  %v1048_v27 = vld [vmem:[#allocation2 + $0x2d8] sm:$0xff]  ;;  %v1045_v39 = vld [vmem:[#allocation2 + $0x2c0] sm:$0xff]  ;;  %v1051_v51 = vld [vmem:[#allocation2 + $0x2f0] sm:$0xff] }
 0x55e   :  { %4912 = vmatprep.subr.bf16.mxu0 %v4911_v20  ;;  %v1039_v20 = vld [vmem:[#allocation2 + $0x290] sm:$0xff]  ;;  %v4735_v38 = vpack.c.bf16 %v1050_v23, %v1046_v1  ;;  %v1049_v40 = vld [vmem:[#allocation2 + $0x2e0] sm:$0xff]  ;;  %v1054_v52 = vld [vmem:[#allocation2 + $0x308] sm:$0xff] }
 0x55f   :  { %v1058_v53 = vld [vmem:[#allocation2 + $0x328] sm:$0xff]  ;;  %v1056_v54 = vld [vmem:[#allocation2 + $0x318] sm:$0xff]  ;;  %v1053_v62 = vld [vmem:[#allocation2 + $0x300] sm:$0xff] }
 0x560   :  { %4722 = vmatpush1.bf16.msra.mxu1 %v4721_v28  ;;  %v1052_v28 = vld [vmem:[#allocation2 + $0x2f8] sm:$0xff]  ;;  %v4739_v58 = vpack.c.bf16 %v1058_v53, %v1054_v52  ;;  %v1057_v63 = vld [vmem:[#allocation2 + $0x320] sm:$0xff]  ;;  %v1059_v6 = vld [vmem:[#allocation2 + $0x330] sm:$0xff] }
 0x561   :  { %4914 = vmatpush1.bf16.msra.mxu0 %v4913_v59  ;;  %4724 = vmatprep.subr.bf16.mxu1 %v4723_v37  ;;  %v4733_v59 = vpack.c.bf16 %v1041_v18, %v1037_v17  ;;  %v4925_v37 = vpack.c.bf16 %v1043_v22, %v1039_v20  ;;  %v4927_v50 = vpack.c.bf16 %v1052_v28, %v1048_v27  ;;  %v1062_v7 = vld [vmem:[#allocation2 + $0x348] sm:$0xff]  ;;  %v1064_v9 = vld [vmem:[#allocation2 + $0x358] sm:$0xff]  ;;  %v1061_v18 = vld [vmem:[#allocation2 + $0x340] sm:$0xff] }
 0x562   :  { %4916 = vmatprep.subr.bf16.mxu0 %v4915_v25  ;;  %v1047_v25 = vld [vmem:[#allocation2 + $0x2d0] sm:$0xff]  ;;  %v1066_v8 = vld [vmem:[#allocation2 + $0x368] sm:$0xff]  ;;  %v1065_v20 = vld [vmem:[#allocation2 + $0x360] sm:$0xff] }
 0x563   :  { %v4743_v17 = vpack.c.bf16 %v1066_v8, %v1062_v7  ;;  %v1067_v1 = vld [vmem:[#allocation2 + $0x370] sm:$0xff]  ;;  %v1070_v23 = vld [vmem:[#allocation2 + $0x388] sm:$0xff]  ;;  %v1072_v28 = vld [vmem:[#allocation2 + $0x398] sm:$0xff] }
 0x564   :  { %4726 = vmatpush1.bf16.msra.mxu1 %v4725_v55  ;;  %v1060_v55 = vld [vmem:[#allocation2 + $0x338] sm:$0xff]  ;;  %v1074_v27 = vld [vmem:[#allocation2 + $0x3a8] sm:$0xff]  ;;  %v1075_v52 = vld [vmem:[#allocation2 + $0x3b0] sm:$0xff] }
 0x565   :  { %4918 = vmatpush1.bf16.msra.mxu0 %v4917_v56  ;;  %4728 = vmatprep.subr.bf16.mxu1 %v4727_v57  ;;  %v4737_v56 = vpack.c.bf16 %v1049_v40, %v1045_v39  ;;  %v4929_v57 = vpack.c.bf16 %v1051_v51, %v1047_v25  ;;  %v4931_v5 = vpack.c.bf16 %v1060_v55, %v1056_v54  ;;  %v1069_v40 = vld [vmem:[#allocation2 + $0x380] sm:$0xff]  ;;  %v1078_v53 = vld [vmem:[#allocation2 + $0x3c8] sm:$0xff]  ;;  %v1080_v55 = vld [vmem:[#allocation2 + $0x3d8] sm:$0xff] }
 0x566   :  { %4920 = vmatprep.subr.bf16.mxu0 %v4919_v0  ;;  %v1055_v0 = vld [vmem:[#allocation2 + $0x310] sm:$0xff]  ;;  %v4747_v39 = vpack.c.bf16 %v1074_v27, %v1070_v23  ;;  %v1073_v25 = vld [vmem:[#allocation2 + $0x3a0] sm:$0xff]  ;;  %v1082_v54 = vld [vmem:[#allocation2 + $0x3e8] sm:$0xff] }
 0x567   :  { %v1083_v7 = vld [vmem:[#allocation2 + $0x3f0] sm:$0xff]  ;;  %v1086_v8 = vld [vmem:[#allocation2 + $0x408] sm:$0xff]  ;;  %vm7077_vm13 = vmpackc.low %vm231_vm2, %vm231_vm2 }
 0x568   :  { %4730 = vmatpush1.bf16.msra.mxu1 %v4729_v11  ;;  %v1068_v11 = vld [vmem:[#allocation2 + $0x378] sm:$0xff]  ;;  %v1091_v23 = vld [vmem:[#allocation2 + $0x430] sm:$0xff]  ;;  %v1094_v27 = vld [vmem:[#allocation2 + $0x448] sm:$0xff] }
 0x569   :  { %4922 = vmatpush1.bf16.msra.mxu0 %v4921_v13  ;;  %4732 = vmatprep.subr.bf16.mxu1 %v4731_v16  ;;  %v4741_v13 = vpack.c.bf16 %v1057_v63, %v1053_v62  ;;  %v4933_v16 = vpack.c.bf16 %v1059_v6, %v1055_v0  ;;  %v4935_v22 = vpack.c.bf16 %v1068_v11, %v1064_v9  ;;  %v1077_v63 = vld [vmem:[#allocation2 + $0x3c0] sm:$0xff]  ;;  %v1090_v9 = vld [vmem:[#allocation2 + $0x428] sm:$0xff]  ;;  %v1088_v11 = vld [vmem:[#allocation2 + $0x418] sm:$0xff] }
 0x56a   :  { %4924 = vmatprep.subr.bf16.mxu0 %v4923_v60  ;;  %v1063_v60 = vld [vmem:[#allocation2 + $0x350] sm:$0xff]  ;;  %v4751_v62 = vpack.c.bf16 %v1082_v54, %v1078_v53  ;;  %v1081_v0 = vld [vmem:[#allocation2 + $0x3e0] sm:$0xff]  ;;  %v1102_v54 = vld [vmem:[#allocation2 + $0x488] sm:$0xff] }
 0x56b   :  { %v1099_v53 = vld [vmem:[#allocation2 + $0x470] sm:$0xff] }
 0x56c   :  { %4734 = vmatpush1.bf16.msra.mxu1 %v4733_v59  ;;  %v1076_v59 = vld [vmem:[#allocation2 + $0x3b8] sm:$0xff] }
 0x56d   :  { %4926 = vmatpush1.bf16.msra.mxu0 %v4925_v37  ;;  %4736 = vmatprep.subr.bf16.mxu1 %v4735_v38  ;;  %v4745_v37 = vpack.c.bf16 %v1065_v20, %v1061_v18  ;;  %v4937_v38 = vpack.c.bf16 %v1067_v1, %v1063_v60  ;;  %v4939_v51 = vpack.c.bf16 %v1076_v59, %v1072_v28  ;;  %v1085_v20 = vld [vmem:[#allocation2 + $0x400] sm:$0xff]  ;;  %v1098_v28 = vld [vmem:[#allocation2 + $0x468] sm:$0xff]  ;;  %v1096_v59 = vld [vmem:[#allocation2 + $0x458] sm:$0xff] }
 0x56e   :  { %4928 = vmatprep.subr.bf16.mxu0 %v4927_v50  ;;  %v1071_v50 = vld [vmem:[#allocation2 + $0x390] sm:$0xff]  ;;  %v4755_v18 = vpack.c.bf16 %v1090_v9, %v1086_v8  ;;  %v1089_v60 = vld [vmem:[#allocation2 + $0x420] sm:$0xff]  ;;  %v1110_v9 = vld [vmem:[#allocation2 + $0x4c8] sm:$0xff] }
 0x56f   :  { %v1107_v8 = vld [vmem:[#allocation2 + $0x4b0] sm:$0xff] }
 0x570   :  { %4738 = vmatpush1.bf16.msra.mxu1 %v4737_v56  ;;  %v1084_v56 = vld [vmem:[#allocation2 + $0x3f8] sm:$0xff] }
 0x571   :  { %4930 = vmatpush1.bf16.msra.mxu0 %v4929_v57  ;;  %4740 = vmatprep.subr.bf16.mxu1 %v4739_v58  ;;  %v4749_v57 = vpack.c.bf16 %v1073_v25, %v1069_v40  ;;  %v4941_v58 = vpack.c.bf16 %v1075_v52, %v1071_v50  ;;  %v4943_v6 = vpack.c.bf16 %v1084_v56, %v1080_v55  ;;  %v1093_v25 = vld [vmem:[#allocation2 + $0x440] sm:$0xff]  ;;  %v1106_v55 = vld [vmem:[#allocation2 + $0x4a8] sm:$0xff]  ;;  %v1104_v56 = vld [vmem:[#allocation2 + $0x498] sm:$0xff] }
 0x572   :  { %4932 = vmatprep.subr.bf16.mxu0 %v4931_v5  ;;  %v1079_v5 = vld [vmem:[#allocation2 + $0x3d0] sm:$0xff]  ;;  %v4759_v40 = vpack.c.bf16 %v1098_v28, %v1094_v27  ;;  %v1097_v50 = vld [vmem:[#allocation2 + $0x460] sm:$0xff]  ;;  %v1118_v27 = vld [vmem:[#allocation2 + $0x508] sm:$0xff] }
 0x573   :  { %v1122_v28 = vld [vmem:[#allocation2 + $0x528] sm:$0xff] }
 0x574   :  { %4742 = vmatpush1.bf16.msra.mxu1 %v4741_v13  ;;  %v1092_v13 = vld [vmem:[#allocation2 + $0x438] sm:$0xff] }
 0x575   :  { %4934 = vmatpush1.bf16.msra.mxu0 %v4933_v16  ;;  %4744 = vmatprep.subr.bf16.mxu1 %v4743_v17  ;;  %v4753_v16 = vpack.c.bf16 %v1081_v0, %v1077_v63  ;;  %v4945_v17 = vpack.c.bf16 %v1083_v7, %v1079_v5  ;;  %v4947_v1 = vpack.c.bf16 %v1092_v13, %v1088_v11  ;;  %v1101_v0 = vld [vmem:[#allocation2 + $0x480] sm:$0xff]  ;;  %v1114_v11 = vld [vmem:[#allocation2 + $0x4e8] sm:$0xff]  ;;  %v1112_v13 = vld [vmem:[#allocation2 + $0x4d8] sm:$0xff] }
 0x576   :  { %4936 = vmatprep.subr.bf16.mxu0 %v4935_v22  ;;  %v1087_v22 = vld [vmem:[#allocation2 + $0x410] sm:$0xff]  ;;  %v4763_v63 = vpack.c.bf16 %v1106_v55, %v1102_v54  ;;  %v1105_v5 = vld [vmem:[#allocation2 + $0x4a0] sm:$0xff]  ;;  %v1132_v54 = vld [vmem:[#allocation2 + $0x578] sm:$0xff] }
 0x578   :  { %4746 = vmatpush1.bf16.msra.mxu1 %v4745_v37  ;;  %v1100_v37 = vld [vmem:[#allocation2 + $0x478] sm:$0xff] }
 0x579   :  { %4938 = vmatpush1.bf16.msra.mxu0 %v4937_v38  ;;  %4748 = vmatprep.subr.bf16.mxu1 %v4747_v39  ;;  %v4757_v38 = vpack.c.bf16 %v1089_v60, %v1085_v20  ;;  %v4949_v39 = vpack.c.bf16 %v1091_v23, %v1087_v22  ;;  %v4951_v52 = vpack.c.bf16 %v1100_v37, %v1096_v59  ;;  %v1109_v20 = vld [vmem:[#allocation2 + $0x4c0] sm:$0xff]  ;;  %v1111_v22 = vld [vmem:[#allocation2 + $0x4d0] sm:$0xff]  ;;  %v1124_v59 = vld [vmem:[#allocation2 + $0x538] sm:$0xff] }
 0x57a   :  { %4940 = vmatprep.subr.bf16.mxu0 %v4939_v51  ;;  %v1095_v51 = vld [vmem:[#allocation2 + $0x450] sm:$0xff]  ;;  %v1113_v60 = vld [vmem:[#allocation2 + $0x4e0] sm:$0xff] }
 0x57b   :  { %v1115_v23 = vld [vmem:[#allocation2 + $0x4f0] sm:$0xff] }
 0x57c   :  { %4750 = vmatpush1.bf16.msra.mxu1 %v4749_v57  ;;  %v1108_v57 = vld [vmem:[#allocation2 + $0x4b8] sm:$0xff]  ;;  %v4961_v37 = vpack.c.bf16 %v1115_v23, %v1111_v22 }
 0x57d   :  { %4942 = vmatpush1.bf16.msra.mxu0 %v4941_v58  ;;  %4752 = vmatprep.subr.bf16.mxu1 %v4751_v62  ;;  %v4761_v58 = vpack.c.bf16 %v1097_v50, %v1093_v25  ;;  %v4953_v62 = vpack.c.bf16 %v1099_v53, %v1095_v51  ;;  %v4955_v7 = vpack.c.bf16 %v1108_v57, %v1104_v56  ;;  %v1119_v25 = vld [vmem:[#allocation2 + $0x510] sm:$0xff]  ;;  %v1130_v53 = vld [vmem:[#allocation2 + $0x568] sm:$0xff]  ;;  %v1125_v57 = vld [vmem:[#allocation2 + $0x540] sm:$0xff] }
 0x57e   :  { %4944 = vmatprep.subr.bf16.mxu0 %v4943_v6  ;;  %v1103_v6 = vld [vmem:[#allocation2 + $0x490] sm:$0xff]  ;;  %v1148_v22 = vld [vmem:[#allocation2 + $0x5f8] sm:$0xff] }
 0x57f   :  { %v1123_v51 = vld [vmem:[#allocation2 + $0x530] sm:$0xff] }
 0x580   :  { %4754 = vmatpush1.bf16.msra.mxu1 %v4753_v16  ;;  %v1116_v16 = vld [vmem:[#allocation2 + $0x4f8] sm:$0xff]  ;;  %v4965_v55 = vpack.c.bf16 %v1123_v51, %v1119_v25 }
 0x581   :  { %4946 = vmatpush1.bf16.msra.mxu0 %v4945_v17  ;;  %4756 = vmatprep.subr.bf16.mxu1 %v4755_v18  ;;  %v4957_v17 = vpack.c.bf16 %v1107_v8, %v1103_v6  ;;  %v4767_v18 = vpack.c.bf16 %v1114_v11, %v1110_v9  ;;  %v1138_v6 = vld [vmem:[#allocation2 + $0x5a8] sm:$0xff]  ;;  %v1133_v11 = vld [vmem:[#allocation2 + $0x580] sm:$0xff] }
 0x582   :  { %4948 = vmatprep.subr.bf16.mxu0 %v4947_v1  ;;  %v4959_v1 = vpack.c.bf16 %v1116_v16, %v1112_v13  ;;  %v1137_v13 = vld [vmem:[#allocation2 + $0x5a0] sm:$0xff]  ;;  %v1135_v16 = vld [vmem:[#allocation2 + $0x590] sm:$0xff] }
 0x583   :  { %1406 = vmatmul.mubr.f32.vlgmr.msra.gmra.mrb[8].mxu1 %v5768_v19 }
 0x584   :  { %4758 = vmatpush1.bf16.msra.mxu1 %v4757_v38  ;;  %1673 = vmatmul.mubr.f32.vlgmr.msra.gmra.mrb[24].mxu0 %v5768_v19  ;;  %v4765_v19 = vpack.c.bf16 %v1105_v5, %v1101_v0  ;;  %v4771_v38 = vpack.c.bf16 %v1122_v28, %v1118_v27  ;;  %v1131_v0 = vld [vmem:[#allocation2 + $0x570] sm:$0xff]  ;;  %v1134_v5 = vld [vmem:[#allocation2 + $0x588] sm:$0xff]  ;;  %v1141_v27 = vld [vmem:[#allocation2 + $0x5c0] sm:$0xff] }
 0x585   :  { %4950 = vmatpush1.bf16.msra.mxu0 %v4949_v39  ;;  %4760 = vmatprep.subr.bf16.mxu1 %v4759_v40  ;;  %v1117_v39 = vld [vmem:[#allocation2 + $0x500] sm:$0xff]  ;;  %v4779_v9 = vpack.c.bf16 %v1138_v6, %v1134_v5 }
 0x586   :  { %4952 = vmatprep.subr.bf16.mxu0 %v4951_v52  ;;  %1411 = vmatprep.mubr.f32.mxu1 %v5778_v32  ;;  %v1121_v40 = vld [vmem:[#allocation2 + $0x520] sm:$0xff]  ;;  %v1126_v52 = vld [vmem:[#allocation2 + $0x548] sm:$0xff] }
 0x587   :  { %1678 = vmatprep.mubr.f32.mxu0 %v5778_v32  ;;  %1412 = vmatmul.mubr.f32.gmra.mrb[10].mxu1 %v5774_v30  ;;  %v1120_v32 = vld [vmem:[#allocation2 + $0x518] sm:$0xff]  ;;  %v4775_v56 = vpack.c.bf16 %v1130_v53, %v1126_v52  ;;  %v1145_v28 = vld [vmem:[#allocation2 + $0x5e0] sm:$0xff] }
 0x588   :  { %4762 = vmatpush1.bf16.msra.mxu1 %v4761_v58  ;;  %1679 = vmatmul.mubr.f32.gmra.mrb[26].mxu0 %v5774_v30  ;;  %v4769_v30 = vpack.c.bf16 %v1113_v60, %v1109_v20  ;;  %v4963_v50 = vpack.c.bf16 %v1124_v59, %v1120_v32  ;;  %v1129_v58 = vld [vmem:[#allocation2 + $0x560] sm:$0xff]  ;;  %v1146_v20 = vld [vmem:[#allocation2 + $0x5e8] sm:$0xff]  ;;  %v1144_v60 = vld [vmem:[#allocation2 + $0x5d8] sm:$0xff]  ;;  %v4785_v25 = vpack.c.bf16 %v1145_v28, %v1141_v27 }
 0x589   :  { %4954 = vmatpush1.bf16.msra.mxu0 %v4953_v62  ;;  %4764 = vmatprep.subr.bf16.mxu1 %v4763_v63  ;;  %v1127_v62 = vld [vmem:[#allocation2 + $0x550] sm:$0xff]  ;;  %v4975_v59 = vpack.c.bf16 %v1148_v22, %v1144_v60  ;;  %v1149_v52 = vld [vmem:[#allocation2 + $0x600] sm:$0xff]  ;;  %v1176_v27 = vld [vmem:[#allocation2 + $0x6d8] sm:$0xff] }
 0x58a   :  { %4956 = vmatprep.subr.bf16.mxu0 %v4955_v7  ;;  %1417 = vmatprep.mubr.f32.mxu1 %v5786_v43  ;;  %v1140_v7 = vld [vmem:[#allocation2 + $0x5b8] sm:$0xff]  ;;  %v4969_v8 = vpack.c.bf16 %v1131_v0, %v1127_v62  ;;  %v1143_v32 = vld [vmem:[#allocation2 + $0x5d0] sm:$0xff]  ;;  %v1153_v53 = vld [vmem:[#allocation2 + $0x620] sm:$0xff] }
 0x58b   :  { %1684 = vmatprep.mubr.f32.mxu0 %v5786_v43  ;;  %1418 = vmatmul.mubr.f32.gmra.mrb[12].mxu1 %v5782_v41  ;;  %v1128_v43 = vld [vmem:[#allocation2 + $0x558] sm:$0xff]  ;;  %v4789_v62 = vpack.c.bf16 %v1153_v53, %v1149_v52  ;;  %v1157_v5 = vld [vmem:[#allocation2 + $0x640] sm:$0xff]  ;;  %v1167_v60 = vld [vmem:[#allocation2 + $0x690] sm:$0xff] }
 0x58c   :  { %4766 = vmatpush1.bf16.msra.mxu1 %v4765_v19  ;;  %1685 = vmatmul.mubr.f32.gmra.mrb[28].mxu0 %v5782_v41  ;;  %v4773_v41 = vpack.c.bf16 %v1121_v40, %v1117_v39  ;;  %v4967_v63 = vpack.c.bf16 %v1132_v54, %v1128_v43  ;;  %v1152_v39 = vld [vmem:[#allocation2 + $0x618] sm:$0xff]  ;;  %v1151_v43 = vld [vmem:[#allocation2 + $0x610] sm:$0xff]  ;;  %v1161_v6 = vld [vmem:[#allocation2 + $0x660] sm:$0xff] }
 0x58d   :  { %4958 = vmatpush1.bf16.msra.mxu0 %v4957_v17  ;;  %4768 = vmatprep.subr.bf16.mxu1 %v4767_v18  ;;  %v1139_v17 = vld [vmem:[#allocation2 + $0x5b0] sm:$0xff]  ;;  %v1142_v18 = vld [vmem:[#allocation2 + $0x5c8] sm:$0xff]  ;;  %v1156_v40 = vld [vmem:[#allocation2 + $0x638] sm:$0xff] }
 0x58e   :  { %4960 = vmatprep.subr.bf16.mxu0 %v4959_v1  ;;  %1423 = vmatprep.mubr.f32.mxu1 %v5794_v48  ;;  %v4781_v1 = vpack.c.bf16 %v1137_v13, %v1133_v11  ;;  %v4783_v23 = vpack.c.bf16 %v1146_v20, %v1142_v18  ;;  %v4979_v54 = vpack.c.bf16 %v1156_v40, %v1152_v39  ;;  %v1168_v11 = vld [vmem:[#allocation2 + $0x698] sm:$0xff]  ;;  %v1165_v18 = vld [vmem:[#allocation2 + $0x680] sm:$0xff]  ;;  %v1175_v39 = vld [vmem:[#allocation2 + $0x6d0] sm:$0xff] }
 0x58f   :  { %1690 = vmatprep.mubr.f32.mxu0 %v5794_v48  ;;  %1424 = vmatmul.mubr.f32.gmra.mrb[14].mxu1 %v5790_v46  ;;  %v1136_v48 = vld [vmem:[#allocation2 + $0x598] sm:$0xff]  ;;  %v1169_v20 = vld [vmem:[#allocation2 + $0x6a0] sm:$0xff] }
 0x590   :  { %4770 = vmatpush1.bf16.msra.mxu1 %v4769_v30  ;;  %1691 = vmatmul.mubr.f32.gmra.mrb[30].mxu0 %v5790_v46  ;;  %v4777_v46 = vpack.c.bf16 %v1129_v58, %v1125_v57  ;;  %v4971_v19 = vpack.c.bf16 %v1140_v7, %v1136_v48  ;;  %v1147_v30 = vld [vmem:[#allocation2 + $0x5f0] sm:$0xff]  ;;  %v1160_v57 = vld [vmem:[#allocation2 + $0x658] sm:$0xff] }
 0x591   :  { %4962 = vmatpush1.bf16.msra.mxu0 %v4961_v37  ;;  %4772 = vmatprep.subr.bf16.mxu1 %v4771_v38  ;;  %v1150_v37 = vld [vmem:[#allocation2 + $0x608] sm:$0xff]  ;;  %v1164_v58 = vld [vmem:[#allocation2 + $0x678] sm:$0xff]  ;;  %v1159_v48 = vld [vmem:[#allocation2 + $0x650] sm:$0xff] }
 0x592   :  { %4964 = vmatprep.subr.bf16.mxu0 %v4963_v50  ;;  %1494 = vmatprep.mubr.f32.mxu1 %v5710_v34  ;;  %v1154_v38 = vld [vmem:[#allocation2 + $0x628] sm:$0xff]  ;;  %v4977_v50 = vpack.c.bf16 %v1147_v30, %v1143_v32  ;;  %v4983_v7 = vpack.c.bf16 %v1164_v58, %v1160_v57  ;;  %v1172_v13 = vld [vmem:[#allocation2 + $0x6b8] sm:$0xff]  ;;  %v4797_v32 = vpack.c.bf16 %v1169_v20, %v1165_v18  ;;  %v1183_v57 = vld [vmem:[#allocation2 + $0x710] sm:$0xff] }
 0x593   :  { %1761 = vmatprep.mubr.f32.mxu0 %v5710_v34  ;;  %v4973_v34 = vpack.c.bf16 %v1139_v17, %v1135_v16  ;;  %v4787_v51 = vpack.c.bf16 %v1154_v38, %v1150_v37  ;;  %v4793_v16 = vpack.c.bf16 %v1161_v6, %v1157_v5  ;;  %v4987_v22 = vpack.c.bf16 %v1172_v13, %v1168_v11  ;;  %v1180_v28 = vld [vmem:[#allocation2 + $0x6f8] sm:$0xff]  ;;  %v1173_v37 = vld [vmem:[#allocation2 + $0x6c0] sm:$0xff]  ;;  %v1191_v11 = vld [vmem:[#allocation2 + $0x750] sm:$0xff] }
 0x594   :  { %4774 = vmatpush1.bf16.msra.mxu1 %v4773_v41  ;;  %v1155_v41 = vld [vmem:[#allocation2 + $0x630] sm:$0xff]  ;;  %v1177_v38 = vld [vmem:[#allocation2 + $0x6e0] sm:$0xff]  ;;  %v4991_v40 = vpack.c.bf16 %v1180_v28, %v1176_v27  ;;  %v1184_v52 = vld [vmem:[#allocation2 + $0x718] sm:$0xff] }
 0x595   :  { %4966 = vmatpush1.bf16.msra.mxu0 %v4965_v55  ;;  %4776 = vmatprep.subr.bf16.mxu1 %v4775_v56  ;;  %v1158_v55 = vld [vmem:[#allocation2 + $0x648] sm:$0xff]  ;;  %v1188_v53 = vld [vmem:[#allocation2 + $0x738] sm:$0xff]  ;;  %v1199_v27 = vld [vmem:[#allocation2 + $0x790] sm:$0xff] }
 0x596   :  { %4968 = vmatprep.subr.bf16.mxu0 %v4967_v63  ;;  %v1162_v56 = vld [vmem:[#allocation2 + $0x668] sm:$0xff]  ;;  %v4981_v63 = vpack.c.bf16 %v1155_v41, %v1151_v43  ;;  %v4801_v43 = vpack.c.bf16 %v1177_v38, %v1173_v37  ;;  %v4995_v58 = vpack.c.bf16 %v1188_v53, %v1184_v52  ;;  %v1192_v5 = vld [vmem:[#allocation2 + $0x758] sm:$0xff]  ;;  %v1207_v52 = vld [vmem:[#allocation2 + $0x7d0] sm:$0xff] }
 0x597   :  { %v4791_v0 = vpack.c.bf16 %v1162_v56, %v1158_v55  ;;  %v1181_v55 = vld [vmem:[#allocation2 + $0x700] sm:$0xff]  ;;  %v1196_v6 = vld [vmem:[#allocation2 + $0x778] sm:$0xff] }
 0x598   :  { %4778 = vmatpush1.bf16.msra.mxu1 %v4777_v46  ;;  %v1163_v46 = vld [vmem:[#allocation2 + $0x670] sm:$0xff]  ;;  %v1185_v56 = vld [vmem:[#allocation2 + $0x720] sm:$0xff]  ;;  %v4999_v13 = vpack.c.bf16 %v1196_v6, %v1192_v5  ;;  %v1200_v18 = vld [vmem:[#allocation2 + $0x798] sm:$0xff] }
 0x599   :  { %4970 = vmatpush1.bf16.msra.mxu0 %v4969_v8  ;;  %4780 = vmatprep.subr.bf16.mxu1 %v4779_v9  ;;  %v1166_v8 = vld [vmem:[#allocation2 + $0x688] sm:$0xff]  ;;  %v1204_v20 = vld [vmem:[#allocation2 + $0x7b8] sm:$0xff]  ;;  %v1215_v5 = vld [vmem:[#allocation2 + $0x810] sm:$0xff] }
 0x59a   :  { %4972 = vmatprep.subr.bf16.mxu0 %v4971_v19  ;;  %v1170_v9 = vld [vmem:[#allocation2 + $0x6a8] sm:$0xff]  ;;  %v4985_v19 = vpack.c.bf16 %v1163_v46, %v1159_v48  ;;  %v4805_v48 = vpack.c.bf16 %v1185_v56, %v1181_v55  ;;  %v5003_v28 = vpack.c.bf16 %v1204_v20, %v1200_v18  ;;  %v1208_v37 = vld [vmem:[#allocation2 + $0x7d8] sm:$0xff]  ;;  %v1223_v18 = vld [vmem:[#allocation2 + $0x850] sm:$0xff] }
 0x59b   :  { %v4795_v17 = vpack.c.bf16 %v1170_v9, %v1166_v8  ;;  %v1189_v8 = vld [vmem:[#allocation2 + $0x740] sm:$0xff]  ;;  %v1212_v38 = vld [vmem:[#allocation2 + $0x7f8] sm:$0xff] }
 0x59c   :  { %4782 = vmatpush1.bf16.msra.mxu1 %v4781_v1  ;;  %v1171_v1 = vld [vmem:[#allocation2 + $0x6b0] sm:$0xff]  ;;  %v1193_v9 = vld [vmem:[#allocation2 + $0x760] sm:$0xff]  ;;  %v5007_v53 = vpack.c.bf16 %v1212_v38, %v1208_v37  ;;  %v1216_v55 = vld [vmem:[#allocation2 + $0x818] sm:$0xff] }
 0x59d   :  { %4974 = vmatpush1.bf16.msra.mxu0 %v4973_v34  ;;  %4784 = vmatprep.subr.bf16.mxu1 %v4783_v23  ;;  %v1174_v34 = vld [vmem:[#allocation2 + $0x6c8] sm:$0xff]  ;;  %v1220_v56 = vld [vmem:[#allocation2 + $0x838] sm:$0xff]  ;;  %v1231_v37 = vld [vmem:[#allocation2 + $0x890] sm:$0xff] }
 0x59e   :  { %4976 = vmatprep.subr.bf16.mxu0 %v4975_v59  ;;  %v1178_v23 = vld [vmem:[#allocation2 + $0x6e8] sm:$0xff]  ;;  %v4989_v59 = vpack.c.bf16 %v1171_v1, %v1167_v60  ;;  %v4809_v60 = vpack.c.bf16 %v1193_v9, %v1189_v8  ;;  %v5011_v6 = vpack.c.bf16 %v1220_v56, %v1216_v55  ;;  %v1224_v8 = vld [vmem:[#allocation2 + $0x858] sm:$0xff]  ;;  %v1243_v56 = vld [vmem:[#allocation2 + $0x8f0] sm:$0xff] }
 0x59f   :  { %v4799_v30 = vpack.c.bf16 %v1178_v23, %v1174_v34  ;;  %v1197_v34 = vld [vmem:[#allocation2 + $0x780] sm:$0xff]  ;;  %v1228_v9 = vld [vmem:[#allocation2 + $0x878] sm:$0xff] }
 0x5a0   :  { %4786 = vmatpush1.bf16.msra.mxu1 %v4785_v25  ;;  %v1179_v25 = vld [vmem:[#allocation2 + $0x6f0] sm:$0xff]  ;;  %v1201_v23 = vld [vmem:[#allocation2 + $0x7a0] sm:$0xff]  ;;  %v5015_v20 = vpack.c.bf16 %v1228_v9, %v1224_v8  ;;  %v1254_v8 = vld [vmem:[#allocation2 + $0x948] sm:$0xff] }
 0x5a1   :  { %4978 = vmatpush1.bf16.msra.mxu0 %v4977_v50  ;;  %4788 = vmatprep.subr.bf16.mxu1 %v4787_v51  ;;  %v1182_v50 = vld [vmem:[#allocation2 + $0x708] sm:$0xff] }
 0x5a2   :  { %4980 = vmatprep.subr.bf16.mxu0 %v4979_v54  ;;  %v1186_v51 = vld [vmem:[#allocation2 + $0x728] sm:$0xff]  ;;  %v4993_v54 = vpack.c.bf16 %v1179_v25, %v1175_v39  ;;  %v4813_v39 = vpack.c.bf16 %v1201_v23, %v1197_v34  ;;  %v1232_v34 = vld [vmem:[#allocation2 + $0x898] sm:$0xff] }
 0x5a3   :  { %v4803_v41 = vpack.c.bf16 %v1186_v51, %v1182_v50  ;;  %v1205_v50 = vld [vmem:[#allocation2 + $0x7c0] sm:$0xff]  ;;  %v1236_v23 = vld [vmem:[#allocation2 + $0x8b8] sm:$0xff]  ;;  %v1258_v9 = vld [vmem:[#allocation2 + $0x968] sm:$0xff] }
 0x5a4   :  { %4790 = vmatpush1.bf16.msra.mxu1 %v4789_v62  ;;  %v1187_v62 = vld [vmem:[#allocation2 + $0x730] sm:$0xff]  ;;  %v1209_v51 = vld [vmem:[#allocation2 + $0x7e0] sm:$0xff]  ;;  %v5019_v38 = vpack.c.bf16 %v1236_v23, %v1232_v34  ;;  %v1268_v34 = vld [vmem:[#allocation2 + $0x9b8] sm:$0xff] }
 0x5a5   :  { %4982 = vmatpush1.bf16.msra.mxu0 %v4981_v63  ;;  %4792 = vmatprep.subr.bf16.mxu1 %v4791_v0  ;;  %v1190_v63 = vld [vmem:[#allocation2 + $0x748] sm:$0xff] }
 0x5a6   :  { %4984 = vmatprep.subr.bf16.mxu0 %v4983_v7  ;;  %v1194_v0 = vld [vmem:[#allocation2 + $0x768] sm:$0xff]  ;;  %v4997_v7 = vpack.c.bf16 %v1187_v62, %v1183_v57  ;;  %v4817_v57 = vpack.c.bf16 %v1209_v51, %v1205_v50  ;;  %v1240_v50 = vld [vmem:[#allocation2 + $0x8d8] sm:$0xff] }
 0x5a7   :  { %v4807_v46 = vpack.c.bf16 %v1194_v0, %v1190_v63  ;;  %v1213_v63 = vld [vmem:[#allocation2 + $0x800] sm:$0xff]  ;;  %v1244_v51 = vld [vmem:[#allocation2 + $0x8f8] sm:$0xff] }
 0x5a8   :  { %4794 = vmatpush1.bf16.msra.mxu1 %v4793_v16  ;;  %v1195_v16 = vld [vmem:[#allocation2 + $0x770] sm:$0xff]  ;;  %v1217_v0 = vld [vmem:[#allocation2 + $0x820] sm:$0xff]  ;;  %v5023_v55 = vpack.c.bf16 %v1244_v51, %v1240_v50 }
 0x5a9   :  { %4986 = vmatpush1.bf16.msra.mxu0 %v4985_v19  ;;  %4796 = vmatprep.subr.bf16.mxu1 %v4795_v17  ;;  %v1198_v19 = vld [vmem:[#allocation2 + $0x788] sm:$0xff] }
 0x5aa   :  { %4988 = vmatprep.subr.bf16.mxu0 %v4987_v22  ;;  %v1202_v17 = vld [vmem:[#allocation2 + $0x7a8] sm:$0xff]  ;;  %v5001_v22 = vpack.c.bf16 %v1195_v16, %v1191_v11  ;;  %v4821_v11 = vpack.c.bf16 %v1217_v0, %v1213_v63 }
 0x5ab   :  { %v4811_v1 = vpack.c.bf16 %v1202_v17, %v1198_v19  ;;  %v1221_v19 = vld [vmem:[#allocation2 + $0x840] sm:$0xff] }
 0x5ac   :  { %4798 = vmatpush1.bf16.msra.mxu1 %v4797_v32  ;;  %v1203_v32 = vld [vmem:[#allocation2 + $0x7b0] sm:$0xff]  ;;  %v1225_v17 = vld [vmem:[#allocation2 + $0x860] sm:$0xff] }
 0x5ad   :  { %4990 = vmatpush1.bf16.msra.mxu0 %v4989_v59  ;;  %4800 = vmatprep.subr.bf16.mxu1 %v4799_v30  ;;  %v1206_v59 = vld [vmem:[#allocation2 + $0x7c8] sm:$0xff] }
 0x5ae   :  { %4992 = vmatprep.subr.bf16.mxu0 %v4991_v40  ;;  %v1210_v30 = vld [vmem:[#allocation2 + $0x7e8] sm:$0xff]  ;;  %v5005_v40 = vpack.c.bf16 %v1203_v32, %v1199_v27  ;;  %v4825_v27 = vpack.c.bf16 %v1225_v17, %v1221_v19  ;;  %v1253_v19 = vld [vmem:[#allocation2 + $0x940] sm:$0xff] }
 0x5af   :  { %v4815_v25 = vpack.c.bf16 %v1210_v30, %v1206_v59  ;;  %v1229_v59 = vld [vmem:[#allocation2 + $0x880] sm:$0xff] }
 0x5b0   :  { %4802 = vmatpush1.bf16.msra.mxu1 %v4801_v43  ;;  %v1211_v43 = vld [vmem:[#allocation2 + $0x7f0] sm:$0xff]  ;;  %v1233_v30 = vld [vmem:[#allocation2 + $0x8a0] sm:$0xff] }
 0x5b1   :  { %4994 = vmatpush1.bf16.msra.mxu0 %v4993_v54  ;;  %4804 = vmatprep.subr.bf16.mxu1 %v4803_v41  ;;  %v1214_v54 = vld [vmem:[#allocation2 + $0x808] sm:$0xff]  ;;  %v1257_v17 = vld [vmem:[#allocation2 + $0x960] sm:$0xff] }
 0x5b2   :  { %4996 = vmatprep.subr.bf16.mxu0 %v4995_v58  ;;  %v1218_v41 = vld [vmem:[#allocation2 + $0x828] sm:$0xff]  ;;  %v5009_v58 = vpack.c.bf16 %v1211_v43, %v1207_v52  ;;  %v1237_v43 = vld [vmem:[#allocation2 + $0x8c0] sm:$0xff] }
 0x5b3   :  { %v4819_v62 = vpack.c.bf16 %v1218_v41, %v1214_v54  ;;  %v1241_v54 = vld [vmem:[#allocation2 + $0x8e0] sm:$0xff]  ;;  %v1239_v41 = vld [vmem:[#allocation2 + $0x8d0] sm:$0xff] }
 0x5b4   :  { %4806 = vmatpush1.bf16.msra.mxu1 %v4805_v48  ;;  %v1219_v48 = vld [vmem:[#allocation2 + $0x830] sm:$0xff]  ;;  %v5025_v63 = vpack.c.bf16 %v1243_v56, %v1239_v41  ;;  %v1278_v41 = vld [vmem:[#allocation2 + $0xa08] sm:$0xff]  ;;  %v1280_v56 = vld [vmem:[#allocation2 + $0xa18] sm:$0xff] }
 0x5b5   :  { %4998 = vmatpush1.bf16.msra.mxu0 %v4997_v7  ;;  %4808 = vmatprep.subr.bf16.mxu1 %v4807_v46  ;;  %v1222_v7 = vld [vmem:[#allocation2 + $0x848] sm:$0xff] }
 0x5b6   :  { %5000 = vmatprep.subr.bf16.mxu0 %v4999_v13  ;;  %v1226_v46 = vld [vmem:[#allocation2 + $0x868] sm:$0xff]  ;;  %v5013_v13 = vpack.c.bf16 %v1219_v48, %v1215_v5  ;;  %v1245_v5 = vld [vmem:[#allocation2 + $0x900] sm:$0xff]  ;;  %v1247_v48 = vld [vmem:[#allocation2 + $0x910] sm:$0xff] }
 0x5b7   :  { %v4823_v16 = vpack.c.bf16 %v1226_v46, %v1222_v7  ;;  %v1251_v46 = vld [vmem:[#allocation2 + $0x930] sm:$0xff] }
 0x5b8   :  { %4810 = vmatpush1.bf16.msra.mxu1 %v4809_v60  ;;  %v1227_v60 = vld [vmem:[#allocation2 + $0x870] sm:$0xff] }
 0x5b9   :  { %5002 = vmatpush1.bf16.msra.mxu0 %v5001_v22  ;;  %4812 = vmatprep.subr.bf16.mxu1 %v4811_v1  ;;  %v1230_v22 = vld [vmem:[#allocation2 + $0x888] sm:$0xff] }
 0x5ba   :  { %5004 = vmatprep.subr.bf16.mxu0 %v5003_v28  ;;  %v1234_v1 = vld [vmem:[#allocation2 + $0x8a8] sm:$0xff]  ;;  %v5017_v28 = vpack.c.bf16 %v1227_v60, %v1223_v18  ;;  %v1255_v18 = vld [vmem:[#allocation2 + $0x950] sm:$0xff] }
 0x5bb   :  { %v4827_v32 = vpack.c.bf16 %v1234_v1, %v1230_v22  ;;  %v1259_v60 = vld [vmem:[#allocation2 + $0x970] sm:$0xff]  ;;  %v1262_v22 = vld [vmem:[#allocation2 + $0x988] sm:$0xff] }
 0x5bc   :  { %4814 = vmatpush1.bf16.msra.mxu1 %v4813_v39  ;;  %v1235_v39 = vld [vmem:[#allocation2 + $0x8b0] sm:$0xff]  ;;  %v1266_v1 = vld [vmem:[#allocation2 + $0x9a8] sm:$0xff]  ;;  %v5033_v23 = vpack.c.bf16 %v1259_v60, %v1255_v18  ;;  %v1296_v60 = vld [vmem:[#allocation2 + $0xa98] sm:$0xff] }
 0x5bd   :  { %5006 = vmatpush1.bf16.msra.mxu0 %v5005_v40  ;;  %4816 = vmatprep.subr.bf16.mxu1 %v4815_v25  ;;  %v1238_v40 = vld [vmem:[#allocation2 + $0x8c8] sm:$0xff]  ;;  %v5021_v52 = vpack.c.bf16 %v1235_v39, %v1231_v37  ;;  %v1267_v37 = vld [vmem:[#allocation2 + $0x9b0] sm:$0xff] }
 0x5be   :  { %5008 = vmatprep.subr.bf16.mxu0 %v5007_v53  ;;  %v1242_v25 = vld [vmem:[#allocation2 + $0x8e8] sm:$0xff] }
 0x5bf   :  { %v4831_v53 = vpack.c.bf16 %v1242_v25, %v1238_v40  ;;  %v1274_v39 = vld [vmem:[#allocation2 + $0x9e8] sm:$0xff]  ;;  %v1272_v40 = vld [vmem:[#allocation2 + $0x9d8] sm:$0xff] }
 0x5c0   :  { %4818 = vmatpush1.bf16.msra.mxu1 %v4817_v57  ;;  %v1246_v57 = vld [vmem:[#allocation2 + $0x908] sm:$0xff]  ;;  %v1276_v25 = vld [vmem:[#allocation2 + $0x9f8] sm:$0xff] }
 0x5c1   :  { %5010 = vmatpush1.bf16.msra.mxu0 %v5009_v58  ;;  %4820 = vmatprep.subr.bf16.mxu1 %v4819_v62  ;;  %v1250_v58 = vld [vmem:[#allocation2 + $0x928] sm:$0xff]  ;;  %v1252_v62 = vld [vmem:[#allocation2 + $0x938] sm:$0xff] }
 0x5c2   :  { %5012 = vmatprep.subr.bf16.mxu0 %v5011_v6  ;;  %v4835_v0 = vpack.c.bf16 %v1250_v58, %v1246_v57  ;;  %v1249_v6 = vld [vmem:[#allocation2 + $0x920] sm:$0xff]  ;;  %v1284_v57 = vld [vmem:[#allocation2 + $0xa38] sm:$0xff]  ;;  %v1294_v18 = vld [vmem:[#allocation2 + $0xa88] sm:$0xff] }
 0x5c3   :  { %1495 = vmatmul.mubr.f32.vlgmr.msra.gmra.mrb[8].mxu1 %v5714_v35 }
 0x5c4   :  { %4822 = vmatpush1.bf16.msra.mxu1 %v4821_v11  ;;  %1762 = vmatmul.mubr.f32.vlgmr.msra.gmra.mrb[24].mxu0 %v5714_v35  ;;  %v4829_v35 = vpack.c.bf16 %v1233_v30, %v1229_v59  ;;  %v1260_v11 = vld [vmem:[#allocation2 + $0x978] sm:$0xff]  ;;  %v1263_v59 = vld [vmem:[#allocation2 + $0x990] sm:$0xff] }
 0x5c5   :  { %5014 = vmatpush1.bf16.msra.mxu0 %v5013_v13  ;;  %4824 = vmatprep.subr.bf16.mxu1 %v4823_v16  ;;  %v5029_v13 = vpack.c.bf16 %v1251_v46, %v1247_v48  ;;  %v4839_v16 = vpack.c.bf16 %v1258_v9, %v1254_v8  ;;  %v1286_v48 = vld [vmem:[#allocation2 + $0xa48] sm:$0xff]  ;;  %v1288_v46 = vld [vmem:[#allocation2 + $0xa58] sm:$0xff] }
 0x5c6   :  { %5016 = vmatprep.subr.bf16.mxu0 %v5015_v20  ;;  %1500 = vmatprep.mubr.f32.mxu1 %v5712_v61  ;;  %v1292_v8 = vld [vmem:[#allocation2 + $0xa78] sm:$0xff] }
 0x5c7   :  { %1767 = vmatprep.mubr.f32.mxu0 %v5712_v61  ;;  %1501 = vmatmul.mubr.f32.gmra.mrb[10].mxu1 %v5716_v14  ;;  %v1248_v61 = vld [vmem:[#allocation2 + $0x918] sm:$0xff] }
 0x5c8   :  { %4826 = vmatpush1.bf16.msra.mxu1 %v4825_v27  ;;  %1768 = vmatmul.mubr.f32.gmra.mrb[26].mxu0 %v5716_v14  ;;  %v4833_v14 = vpack.c.bf16 %v1241_v54, %v1237_v43  ;;  %v5027_v7 = vpack.c.bf16 %v1252_v62, %v1248_v61  ;;  %v4843_v27 = vpack.c.bf16 %v1266_v1, %v1262_v22  ;;  %v1275_v54 = vld [vmem:[#allocation2 + $0x9f0] sm:$0xff]  ;;  %v1300_v22 = vld [vmem:[#allocation2 + $0xab8] sm:$0xff] }
 0x5c9   :  { %5018 = vmatpush1.bf16.msra.mxu0 %v5017_v28  ;;  %4828 = vmatprep.subr.bf16.mxu1 %v4827_v32  ;;  %v1261_v28 = vld [vmem:[#allocation2 + $0x980] sm:$0xff]  ;;  %v5039_v43 = vpack.c.bf16 %v1276_v25, %v1272_v40 }
 0x5ca   :  { %5020 = vmatprep.subr.bf16.mxu0 %v5019_v38  ;;  %1506 = vmatprep.mubr.f32.mxu1 %v5718_v26  ;;  %v1265_v32 = vld [vmem:[#allocation2 + $0x9a0] sm:$0xff]  ;;  %v1270_v38 = vld [vmem:[#allocation2 + $0x9c8] sm:$0xff] }
 0x5cb   :  { %1773 = vmatprep.mubr.f32.mxu0 %v5718_v26  ;;  %1507 = vmatmul.mubr.f32.gmra.mrb[12].mxu1 %v5722_v21  ;;  %v1256_v26 = vld [vmem:[#allocation2 + $0x958] sm:$0xff]  ;;  %v4845_v50 = vpack.c.bf16 %v1265_v32, %v1261_v28  ;;  %v4847_v51 = vpack.c.bf16 %v1274_v39, %v1270_v38  ;;  %v5051_v28 = vpack.c.bf16 %v1300_v22, %v1296_v60  ;;  %v1299_v32 = vld [vmem:[#allocation2 + $0xab0] sm:$0xff] }
 0x5cc   :  { %4830 = vmatpush1.bf16.msra.mxu1 %v4829_v35  ;;  %1774 = vmatmul.mubr.f32.gmra.mrb[28].mxu0 %v5722_v21  ;;  %v4837_v21 = vpack.c.bf16 %v1249_v6, %v1245_v5  ;;  %v5031_v20 = vpack.c.bf16 %v1260_v11, %v1256_v26  ;;  %v1269_v35 = vld [vmem:[#allocation2 + $0x9c0] sm:$0xff]  ;;  %v5043_v5 = vpack.c.bf16 %v1284_v57, %v1280_v56  ;;  %v1283_v6 = vld [vmem:[#allocation2 + $0xa30] sm:$0xff]  ;;  %v1308_v38 = vld [vmem:[#allocation2 + $0xaf8] sm:$0xff] }
 0x5cd   :  { %5022 = vmatpush1.bf16.msra.mxu0 %v5021_v52  ;;  %4832 = vmatprep.subr.bf16.mxu1 %v4831_v53  ;;  %v1273_v52 = vld [vmem:[#allocation2 + $0x9e0] sm:$0xff]  ;;  %v1271_v53 = vld [vmem:[#allocation2 + $0x9d0] sm:$0xff] }
 0x5ce   :  { %5024 = vmatprep.subr.bf16.mxu0 %v5023_v55  ;;  %1512 = vmatprep.mubr.f32.mxu1 %v5720_v10  ;;  %v1282_v55 = vld [vmem:[#allocation2 + $0xa28] sm:$0xff]  ;;  %v4849_v58 = vpack.c.bf16 %v1273_v52, %v1269_v35  ;;  %v5041_v61 = vpack.c.bf16 %v1275_v54, %v1271_v53  ;;  %v1307_v52 = vld [vmem:[#allocation2 + $0xaf0] sm:$0xff]  ;;  %v1312_v54 = vld [vmem:[#allocation2 + $0xb18] sm:$0xff] }
 0x5cf   :  { %1779 = vmatprep.mubr.f32.mxu0 %v5720_v10  ;;  %1513 = vmatmul.mubr.f32.gmra.mrb[14].mxu1 %v5724_v36  ;;  %v1264_v10 = vld [vmem:[#allocation2 + $0x998] sm:$0xff]  ;;  %v4851_v62 = vpack.c.bf16 %v1282_v55, %v1278_v41  ;;  %v1310_v53 = vld [vmem:[#allocation2 + $0xb08] sm:$0xff] }
 0x5d0   :  { %4834 = vmatpush1.bf16.msra.mxu1 %v4833_v14  ;;  %1780 = vmatmul.mubr.f32.gmra.mrb[30].mxu0 %v5724_v36  ;;  %v4841_v36 = vpack.c.bf16 %v1257_v17, %v1253_v19  ;;  %v5035_v30 = vpack.c.bf16 %v1268_v34, %v1264_v10  ;;  %v1277_v14 = vld [vmem:[#allocation2 + $0xa00] sm:$0xff]  ;;  %v5047_v19 = vpack.c.bf16 %v1292_v8, %v1288_v46  ;;  %v1291_v17 = vld [vmem:[#allocation2 + $0xa70] sm:$0xff]  ;;  %v1316_v41 = vld [vmem:[#allocation2 + $0xb38] sm:$0xff] }
 0x5d1   :  { %5026 = vmatpush1.bf16.msra.mxu0 %v5025_v63  ;;  %4836 = vmatprep.subr.bf16.mxu1 %v4835_v0  ;;  %v1281_v63 = vld [vmem:[#allocation2 + $0xa20] sm:$0xff]  ;;  %v1279_v0 = vld [vmem:[#allocation2 + $0xa10] sm:$0xff] }
 0x5d2   :  { %5028 = vmatprep.subr.bf16.mxu0 %v5027_v7  ;;  %1583 = vmatprep.mubr.f32.mxu1 %v5772_v29  ;;  %v1290_v7 = vld [vmem:[#allocation2 + $0xa68] sm:$0xff]  ;;  %v4853_v9 = vpack.c.bf16 %v1281_v63, %v1277_v14  ;;  %v5045_v26 = vpack.c.bf16 %v1283_v6, %v1279_v0  ;;  %v5059_v14 = vpack.c.bf16 %v1316_v41, %v1312_v54  ;;  %v1315_v63 = vld [vmem:[#allocation2 + $0xb30] sm:$0xff]  ;;  %v1320_v6 = vld [vmem:[#allocation2 + $0xb58] sm:$0xff] }
 0x5d3   :  { %1850 = vmatprep.mubr.f32.mxu0 %v5772_v29  ;;  %v5037_v29 = vpack.c.bf16 %v1267_v37, %v1263_v59  ;;  %v4855_v11 = vpack.c.bf16 %v1290_v7, %v1286_v48  ;;  %v1302_v59 = vld [vmem:[#allocation2 + $0xac8] sm:$0xff]  ;;  %v1304_v37 = vld [vmem:[#allocation2 + $0xad8] sm:$0xff] }
 0x5d4   :  { %4838 = vmatpush1.bf16.msra.mxu1 %v4837_v21  ;;  %v1285_v21 = vld [vmem:[#allocation2 + $0xa40] sm:$0xff]  ;;  %v5055_v35 = vpack.c.bf16 %v1308_v38, %v1304_v37  ;;  %v1318_v0 = vld [vmem:[#allocation2 + $0xb48] sm:$0xff]  ;;  %v1324_v48 = vld [vmem:[#allocation2 + $0xb78] sm:$0xff] }
 0x5d5   :  { %5030 = vmatpush1.bf16.msra.mxu0 %v5029_v13  ;;  %4840 = vmatprep.subr.bf16.mxu1 %v4839_v16  ;;  %v1289_v13 = vld [vmem:[#allocation2 + $0xa60] sm:$0xff]  ;;  %v1287_v16 = vld [vmem:[#allocation2 + $0xa50] sm:$0xff] }
 0x5d6   :  { %5032 = vmatprep.subr.bf16.mxu0 %v5031_v20  ;;  %v1298_v20 = vld [vmem:[#allocation2 + $0xaa8] sm:$0xff]  ;;  %v4857_v1 = vpack.c.bf16 %v1289_v13, %v1285_v21  ;;  %v5049_v10 = vpack.c.bf16 %v1291_v17, %v1287_v16  ;;  %v5063_v21 = vpack.c.bf16 %v1324_v48, %v1320_v6  ;;  %v1323_v13 = vld [vmem:[#allocation2 + $0xb70] sm:$0xff]  ;;  %v1328_v17 = vld [vmem:[#allocation2 + $0xb98] sm:$0xff] }
 0x5d7   :  { %v4859_v34 = vpack.c.bf16 %v1298_v20, %v1294_v18  ;;  %v1326_v16 = vld [vmem:[#allocation2 + $0xb88] sm:$0xff]  ;;  %v1332_v18 = vld [vmem:[#allocation2 + $0xbb8] sm:$0xff] }
 0x5d8   :  { %4842 = vmatpush1.bf16.msra.mxu1 %v4841_v36  ;;  %v1293_v36 = vld [vmem:[#allocation2 + $0xa80] sm:$0xff] }
 0x5d9   :  { %5034 = vmatpush1.bf16.msra.mxu0 %v5033_v23  ;;  %4844 = vmatprep.subr.bf16.mxu1 %v4843_v27  ;;  %v1297_v23 = vld [vmem:[#allocation2 + $0xaa0] sm:$0xff]  ;;  %v1295_v27 = vld [vmem:[#allocation2 + $0xa90] sm:$0xff] }
 0x5da   :  { %5036 = vmatprep.subr.bf16.mxu0 %v5035_v30  ;;  %v1306_v30 = vld [vmem:[#allocation2 + $0xae8] sm:$0xff]  ;;  %v4861_v39 = vpack.c.bf16 %v1297_v23, %v1293_v36  ;;  %v5053_v40 = vpack.c.bf16 %v1299_v32, %v1295_v27  ;;  %v5067_v36 = vpack.c.bf16 %v1332_v18, %v1328_v17  ;;  %v1331_v23 = vld [vmem:[#allocation2 + $0xbb0] sm:$0xff]  ;;  %v1336_v32 = vld [vmem:[#allocation2 + $0xbd8] sm:$0xff] }
 0x5db   :  { %v4863_v25 = vpack.c.bf16 %v1306_v30, %v1302_v59  ;;  %v1334_v27 = vld [vmem:[#allocation2 + $0xbc8] sm:$0xff]  ;;  %v1340_v59 = vld [vmem:[#allocation2 + $0xbf8] sm:$0xff] }
 0x5dc   :  { %4846 = vmatpush1.bf16.msra.mxu1 %v4845_v50  ;;  %v1301_v50 = vld [vmem:[#allocation2 + $0xac0] sm:$0xff] }
 0x5dd   :  { %5038 = vmatpush1.bf16.msra.mxu0 %v5037_v29  ;;  %4848 = vmatprep.subr.bf16.mxu1 %v4847_v51  ;;  %v1305_v29 = vld [vmem:[#allocation2 + $0xae0] sm:$0xff]  ;;  %v1303_v51 = vld [vmem:[#allocation2 + $0xad0] sm:$0xff] }
 0x5de   :  { %5040 = vmatprep.subr.bf16.mxu0 %v5039_v43  ;;  %v1314_v43 = vld [vmem:[#allocation2 + $0xb28] sm:$0xff]  ;;  %v4865_v55 = vpack.c.bf16 %v1305_v29, %v1301_v50  ;;  %v5057_v56 = vpack.c.bf16 %v1307_v52, %v1303_v51  ;;  %v1335_v50 = vld [vmem:[#allocation2 + $0xbd0] sm:$0xff] }
 0x5df   :  { %v4867_v57 = vpack.c.bf16 %v1314_v43, %v1310_v53  ;;  %v1339_v29 = vld [vmem:[#allocation2 + $0xbf0] sm:$0xff] }
 0x5e0   :  { %4850 = vmatpush1.bf16.msra.mxu1 %v4849_v58  ;;  %v1309_v58 = vld [vmem:[#allocation2 + $0xb00] sm:$0xff] }
 0x5e1   :  { %5042 = vmatpush1.bf16.msra.mxu0 %v5041_v61  ;;  %4852 = vmatprep.subr.bf16.mxu1 %v4851_v62  ;;  %v1313_v61 = vld [vmem:[#allocation2 + $0xb20] sm:$0xff]  ;;  %v1311_v62 = vld [vmem:[#allocation2 + $0xb10] sm:$0xff] }
 0x5e2   :  { %5044 = vmatprep.subr.bf16.mxu0 %v5043_v5  ;;  %v1322_v5 = vld [vmem:[#allocation2 + $0xb68] sm:$0xff]  ;;  %v4869_v7 = vpack.c.bf16 %v1313_v61, %v1309_v58  ;;  %v5061_v46 = vpack.c.bf16 %v1315_v63, %v1311_v62 }
 0x5e3   :  { %v4871_v8 = vpack.c.bf16 %v1322_v5, %v1318_v0 }
 0x5e4   :  { %4854 = vmatpush1.bf16.msra.mxu1 %v4853_v9  ;;  %v1317_v9 = vld [vmem:[#allocation2 + $0xb40] sm:$0xff] }
 0x5e5   :  { %5046 = vmatpush1.bf16.msra.mxu0 %v5045_v26  ;;  %4856 = vmatprep.subr.bf16.mxu1 %v4855_v11  ;;  %v1321_v26 = vld [vmem:[#allocation2 + $0xb60] sm:$0xff]  ;;  %v1319_v11 = vld [vmem:[#allocation2 + $0xb50] sm:$0xff] }
 0x5e6   :  { %5048 = vmatprep.subr.bf16.mxu0 %v5047_v19  ;;  %v1330_v19 = vld [vmem:[#allocation2 + $0xba8] sm:$0xff]  ;;  %v4873_v20 = vpack.c.bf16 %v1321_v26, %v1317_v9  ;;  %v5065_v60 = vpack.c.bf16 %v1323_v13, %v1319_v11 }
 0x5e7   :  { %v4875_v22 = vpack.c.bf16 %v1330_v19, %v1326_v16 }
 0x5e8   :  { %4858 = vmatpush1.bf16.msra.mxu1 %v4857_v1  ;;  %v1325_v1 = vld [vmem:[#allocation2 + $0xb80] sm:$0xff] }
 0x5e9   :  { %5050 = vmatpush1.bf16.msra.mxu0 %v5049_v10  ;;  %4860 = vmatprep.subr.bf16.mxu1 %v4859_v34  ;;  %v1329_v10 = vld [vmem:[#allocation2 + $0xba0] sm:$0xff]  ;;  %v1327_v34 = vld [vmem:[#allocation2 + $0xb90] sm:$0xff] }
 0x5ea   :  { %5052 = vmatprep.subr.bf16.mxu0 %v5051_v28  ;;  %v1338_v28 = vld [vmem:[#allocation2 + $0xbe8] sm:$0xff]  ;;  %v4877_v30 = vpack.c.bf16 %v1329_v10, %v1325_v1  ;;  %v5069_v37 = vpack.c.bf16 %v1331_v23, %v1327_v34 }
 0x5eb   :  { %v4879_v38 = vpack.c.bf16 %v1338_v28, %v1334_v27 }
 0x5ec   :  { %4862 = vmatpush1.bf16.msra.mxu1 %v4861_v39  ;;  %v1333_v39 = vld [vmem:[#allocation2 + $0xbc0] sm:$0xff] }
 0x5ed   :  { %5054 = vmatpush1.bf16.msra.mxu0 %v5053_v40  ;;  %4864 = vmatprep.subr.bf16.mxu1 %v4863_v25  ;;  %v1337_v40 = vld [vmem:[#allocation2 + $0xbe0] sm:$0xff]  ;;  %v5071_v25 = vpack.c.bf16 %v1340_v59, %v1336_v32 }
 0x5ee   :  { %5056 = vmatprep.subr.bf16.mxu0 %v5055_v35  ;;  %v4881_v51 = vpack.c.bf16 %v1337_v40, %v1333_v39  ;;  %v5073_v35 = vpack.c.bf16 %v1339_v29, %v1335_v50 }
 0x5f0   :  { %4866 = vmatpush1.bf16.msra.mxu1 %v4865_v55 }
 0x5f1   :  { %5058 = vmatpush1.bf16.msra.mxu0 %v5057_v56  ;;  %4868 = vmatprep.subr.bf16.mxu1 %v4867_v57 }
 0x5f2   :  { %5060 = vmatprep.subr.bf16.mxu0 %v5059_v14 }
 0x5f4   :  { %4870 = vmatpush1.bf16.msra.mxu1 %v4869_v7 }
 0x5f5   :  { %5062 = vmatpush1.bf16.msra.mxu0 %v5061_v46  ;;  %4872 = vmatprep.subr.bf16.mxu1 %v4871_v8 }
 0x5f6   :  { %5064 = vmatprep.subr.bf16.mxu0 %v5063_v21 }
 0x5f8   :  { %4874 = vmatpush1.bf16.msra.mxu1 %v4873_v20 }
 0x5f9   :  { %5066 = vmatpush1.bf16.msra.mxu0 %v5065_v60  ;;  %4876 = vmatprep.subr.bf16.mxu1 %v4875_v22 }
 0x5fa   :  { %5068 = vmatprep.subr.bf16.mxu0 %v5067_v36 }
 0x5fc   :  { %4878 = vmatpush1.bf16.msra.mxu1 %v4877_v30 }
 0x5fd   :  { %5070 = vmatpush1.bf16.msra.mxu0 %v5069_v37  ;;  %4880 = vmatprep.subr.bf16.mxu1 %v4879_v38 }
 0x5fe   :  { %5072 = vmatprep.subr.bf16.mxu0 %v5071_v25 }
 0x600   :  { %4882 = vmatpush1.bf16.msra.mxu1 %v4881_v51 }
 0x601   :  { %5074 = vmatpush1.bf16.msra.mxu0 %v5073_v35 }
 0x603   :  { %1584 = vmatmul.mubr.f32.vlgmr.msra.gmra.mrb[8].mxu1 %v5770_v24 }
 0x604   :  { %1851 = vmatmul.mubr.f32.vlgmr.msra.gmra.mrb[24].mxu0 %v5770_v24  ;;  %1589 = vmatprep.mubr.f32.mxu1 %v5780_v33 }
 0x605   :  { %1856 = vmatprep.mubr.f32.mxu0 %v5780_v33 }
 0x607   :  { %1590 = vmatmul.mubr.f32.gmra.mrb[10].mxu1 %v5776_v31 }
 0x608   :  { %1857 = vmatmul.mubr.f32.gmra.mrb[26].mxu0 %v5776_v31  ;;  %1595 = vmatprep.mubr.f32.mxu1 %v5788_v44 }
 0x609   :  { %1862 = vmatprep.mubr.f32.mxu0 %v5788_v44 }
 0x60b   :  { %1596 = vmatmul.mubr.f32.gmra.mrb[12].mxu1 %v5784_v42 }
 0x60c   :  { %1863 = vmatmul.mubr.f32.gmra.mrb[28].mxu0 %v5784_v42  ;;  %1601 = vmatprep.mubr.f32.mxu1 %v5796_v49 }
 0x60d   :  { %1868 = vmatprep.mubr.f32.mxu0 %v5796_v49 }
 0x60f   :  { %1602 = vmatmul.mubr.f32.gmra.mrb[14].mxu1 %v5792_v47 }
 0x610   :  { %1869 = vmatmul.mubr.f32.gmra.mrb[30].mxu0 %v5792_v47 }
 0x6d6   :  { %v5844_v24 = vpop.f32.mrb[8].mxu1 }
 0x6d7   :  { %v5846_v33 = vpop.f32.mrb[24].mxu0  ;;  %v5848_v31 = vpop.f32.mrb[9].mxu1  ;;  %v1913_v44 = vmul.f32 %v5844_v24, %v5844_v24 }
 0x6d8   :  { %v5850_v52 = vpop.f32.mrb[25].mxu0  ;;  %v1915_v49 = vmul.f32 %v5846_v33, %v5846_v33  ;;  %v1914_v53 = vmul.f32 %v5848_v31, %v5848_v31 }
 0x6d9   :  { %v1916_v62 = vmul.f32 %v5850_v52, %v5850_v52 }
 0x6da   :  { %v5854_v42 = vpop.f32.mrb[10].mxu1 }
 0x6db   :  { %v1877_v47 = vadd.f32 %v5854_v42, %v5844_v24  ;;  %v1917_v43 = vmul.f32 %v5854_v42, %v5854_v42  ;;  %v5864_v54 = vpop.f32.mrb[26].mxu0  ;;  %v5866_v41 = vpop.f32.mrb[11].mxu1 }
 0x6dc   :  { %v1895_v55 = vadd.f32 %v5864_v54, %v5846_v33  ;;  %v1919_v56 = vmul.f32 %v5864_v54, %v5864_v54  ;;  %v1886_v57 = vadd.f32 %v5866_v41, %v5848_v31  ;;  %v1918_v58 = vmul.f32 %v5866_v41, %v5866_v41  ;;  %v5876_v61 = vpop.f32.mrb[27].mxu0 }
 0x6dd   :  { %v1929_v14 = vadd.f32 %v1917_v43, %v1913_v44  ;;  %v1904_v63 = vadd.f32 %v5876_v61, %v5850_v52  ;;  %v1920_v0 = vmul.f32 %v5876_v61, %v5876_v61 }
 0x6de   :  { %v1947_v5 = vadd.f32 %v1919_v56, %v1915_v49  ;;  %v1938_v6 = vadd.f32 %v1918_v58, %v1914_v53  ;;  %v5884_v48 = vpop.f32.mrb[12].mxu1 }
 0x6df   :  { %v1956_v7 = vadd.f32 %v1920_v0, %v1916_v62  ;;  %v1878_v46 = vadd.f32 %v1877_v47, %v5884_v48  ;;  %v1921_v8 = vmul.f32 %v5884_v48, %v5884_v48  ;;  %v5889_v9 = vpop.f32.mrb[28].mxu0  ;;  %v5891_v26 = vpop.f32.mrb[13].mxu1 }
 0x6e0   :  { %v1896_v11 = vadd.f32 %v1895_v55, %v5889_v9  ;;  %v1923_v21 = vmul.f32 %v5889_v9, %v5889_v9  ;;  %v1887_v13 = vadd.f32 %v1886_v57, %v5891_v26  ;;  %v1922_v16 = vmul.f32 %v5891_v26, %v5891_v26  ;;  %v5899_v19 = vpop.f32.mrb[29].mxu0 }
 0x6e1   :  { %v1930_v17 = vadd.f32 %v1929_v14, %v1921_v8  ;;  %v1905_v18 = vadd.f32 %v1904_v63, %v5899_v19  ;;  %v1924_v20 = vmul.f32 %v5899_v19, %v5899_v19 }
 0x6e2   :  { %v1948_v60 = vadd.f32 %v1947_v5, %v1923_v21  ;;  %v1939_v22 = vadd.f32 %v1938_v6, %v1922_v16  ;;  %v5904_v1 = vpop.f32.mrb[14].mxu1 }
 0x6e3   :  { %v1957_v10 = vadd.f32 %v1956_v7, %v1924_v20  ;;  %v1879_v34 = vadd.f32 %v1878_v46, %v5904_v1  ;;  %v1925_v36 = vmul.f32 %v5904_v1, %v5904_v1  ;;  %v5909_v23 = vpop.f32.mrb[30].mxu0  ;;  %v5911_v27 = vpop.f32.mrb[15].mxu1 }
 0x6e4   :  { %v1897_v28 = vadd.f32 %v1896_v11, %v5909_v23  ;;  %v1927_v32 = vmul.f32 %v5909_v23, %v5909_v23  ;;  %v1888_v59 = vadd.f32 %v1887_v13, %v5911_v27  ;;  %v1926_v30 = vmul.f32 %v5911_v27, %v5911_v27  ;;  %v5919_v37 = vpop.f32.mrb[31].mxu0 }
 0x6e5   :  { %v1880_v38 = vrot.slane %v1879_v34, 4  ;;  %v1931_v39 = vadd.f32 %v1930_v17, %v1925_v36  ;;  %v1906_v40 = vadd.f32 %v1905_v18, %v5919_v37  ;;  %v1928_v25 = vmul.f32 %v5919_v37, %v5919_v37 }
 0x6e6   :  { %v1898_v50 = vrot.slane %v1897_v28, 4  ;;  %v1949_v29 = vadd.f32 %v1948_v60, %v1927_v32  ;;  %v1889_v51 = vrot.slane %v1888_v59, 4  ;;  %v1940_v35 = vadd.f32 %v1939_v22, %v1926_v30 }
 0x6e7   :  { %v1881_v44 = vadd.f32 %v1880_v38, %v1879_v34  ;;  %v1932_v49 = vrot.slane %v1931_v39, 4  ;;  %v1907_v53 = vrot.slane %v1906_v40, 4  ;;  %v1958_v47 = vadd.f32 %v1957_v10, %v1928_v25 }
 0x6e8   :  { %v1899_v43 = vadd.f32 %v1898_v50, %v1897_v28  ;;  %v1950_v55 = vrot.slane %v1949_v29, 4  ;;  %v1890_v56 = vadd.f32 %v1889_v51, %v1888_v59  ;;  %v1941_v57 = vrot.slane %v1940_v35, 4 }
 0x6e9   :  { %v1908_v58 = vadd.f32 %v1907_v53, %v1906_v40  ;;  %v1959_v62 = vrot.slane %v1958_v47, 4  ;;  %v1882_v14 = vrot.slane %v1881_v44, 2  ;;  %v1933_v63 = vadd.f32 %v1932_v49, %v1931_v39 }
 0x6ea   :  { %v1900_v0 = vrot.slane %v1899_v43, 2  ;;  %v1951_v5 = vadd.f32 %v1950_v55, %v1949_v29  ;;  %v1891_v6 = vrot.slane %v1890_v56, 2  ;;  %v1942_v7 = vadd.f32 %v1941_v57, %v1940_v35 }
 0x6eb   :  { %v1883_v46 = vadd.f32 %v1882_v14, %v1881_v44  ;;  %v1934_v8 = vrot.slane %v1933_v63, 2  ;;  %v1909_v11 = vrot.slane %v1908_v58, 2  ;;  %v1960_v21 = vadd.f32 %v1959_v62, %v1958_v47 }
 0x6ec   :  { %v1901_v13 = vadd.f32 %v1900_v0, %v1899_v43  ;;  %v1952_v16 = vrot.slane %v1951_v5, 2  ;;  %v1892_v17 = vadd.f32 %v1891_v6, %v1890_v56  ;;  %v1943_v18 = vrot.slane %v1942_v7, 2 }
 0x6ed   :  { %v1884_v20 = vrot.slane %v1883_v46, 1  ;;  %v1935_v60 = vadd.f32 %v1934_v8, %v1933_v63  ;;  %v1910_v22 = vadd.f32 %v1909_v11, %v1908_v58  ;;  %v1961_v10 = vrot.slane %v1960_v21, 2 }
 0x6ee   :  { %v1902_v34 = vrot.slane %v1901_v13, 1  ;;  %v1953_v36 = vadd.f32 %v1952_v16, %v1951_v5  ;;  %v1893_v28 = vrot.slane %v1892_v17, 1  ;;  %v1944_v32 = vadd.f32 %v1943_v18, %v1942_v7 }
 0x6ef   :  { %v1936_v59 = vrot.slane %v1935_v60, 1  ;;  %v1911_v30 = vrot.slane %v1910_v22, 1  ;;  %v1962_v38 = vadd.f32 %v1961_v10, %v1960_v21  ;;  %v1885_v25 = vadd.f32 %v1884_v20, %v1883_v46 }
 0x6f0   :  { %v1954_v39 = vrot.slane %v1953_v36, 1  ;;  %v1945_v40 = vrot.slane %v1944_v32, 1  ;;  %v1903_v51 = vadd.f32 %v1902_v34, %v1901_v13  ;;  %v1894_v44 = vadd.f32 %v1893_v28, %v1892_v17 }
 0x6f1   :  { %v1937_v50 = vadd.f32 %v1936_v59, %v1935_v60  ;;  %v1963_v29 = vrot.slane %v1962_v38, 1  ;;  %v1912_v47 = vadd.f32 %v1911_v30, %v1910_v22 }
 0x6f2   :  { %v1955_v35 = vadd.f32 %v1954_v39, %v1953_v36  ;;  %v1946_v49 = vadd.f32 %v1945_v40, %v1944_v32 }
 0x6f3   :  { %v1965_v53 = vsel %vm648_vm5, %v1885_v25, %v1937_v50  ;;  %v1964_v43 = vadd.f32 %v1963_v29, %v1962_v38 }
 0x6f4   :  { %v1967_v55 = vsel %vm648_vm5, %v1903_v51, %v1955_v35  ;;  %1969 = vrot.lane.b32.xlu0 %v1965_v53, %s5376_s21  ;;  %v1966_v56 = vsel %vm648_vm5, %v1894_v44, %v1946_v49 }
 0x6f5   :  { %1973 = vrot.lane.b32.xlu1 %v1967_v55, %s5376_s21  ;;  %v1968_v57 = vsel %vm648_vm5, %v1912_v47, %v1964_v43 }
 0x6f8   :  { %1971 = vrot.lane.b32.xlu0 %v1966_v56, %s5376_s21 }
 0x6f9   :  { %1975 = vrot.lane.b32.xlu1 %v1968_v57, %s5376_s21 }
 0x766   :  { %v1970_v58 = vpop.permute.xlu0 %1969 }
 0x767   :  { %v1974_v62 = vpop.permute.xlu1 %1973 }
 0x76a   :  { %v1972_v14 = vpop.permute.xlu0 %1971 }
 0x76b   :  { %v1976_v63 = vpop.permute.xlu1 %1975  ;;  %v1979_v0 = vsel %vm664_vm7, %v1970_v58, %v1972_v14  ;;  %v1978_v8 = vsel %vm664_vm7, %v1972_v14, %v1974_v62 }
 0x76c   :  { %v1980_v5 = vsel %vm664_vm7, %v1976_v63, %v1970_v58  ;;  %v1982_v6 = vadd.f32 %v1979_v0, %v1966_v56  ;;  %v1977_v46 = vsel %vm664_vm7, %v1974_v62, %v1976_v63  ;;  %v1983_v21 = vadd.f32 %v1978_v8, %v1967_v55  ;;  %v1875_v0 = vld [vmem:[#allocation10] sm:$0xf] }
 0x76d   :  { %v1981_v7 = vadd.f32 %v1980_v5, %v1965_v53  ;;  %v1984_v11 = vadd.f32 %v1977_v46, %v1968_v57  ;;  %v2056_v5 = vsub.s32 2, %v5527_v3 }
 0x76e   :  { %1987 = vrot.lane.b32.xlu1 %v1982_v6, %s5377_s26 }
 0x76f   :  { %1985 = vrot.lane.b32.xlu0 %v1981_v7, %s5377_s26 }
 0x772   :  { %1991 = vrot.lane.b32.xlu1 %v1984_v11, %s5377_s26 }
 0x773   :  { %1989 = vrot.lane.b32.xlu0 %v1983_v21, %s5377_s26 }
 0x7e0   :  { %v1988_v13 = vpop.permute.xlu1 %1987 }
 0x7e1   :  { %v1986_v16 = vpop.permute.xlu0 %1985 }
 0x7e2   :  { %v1995_v17 = vsel %vm673_vm8, %v1986_v16, %v1988_v13 }
 0x7e3   :  { %v1998_v22 = vadd.f32 %v1995_v17, %v1982_v6  ;;  %v2060_v6 = vsub.s32 3, %v5527_v3 }
 0x7e4   :  { %v1992_v18 = vpop.permute.xlu1 %1991 }
 0x7e5   :  { %v1996_v20 = vsel %vm673_vm8, %v1992_v18, %v1986_v16  ;;  %v1990_v60 = vpop.permute.xlu0 %1989  ;;  %v5380_v16 = vmov 1983009808  }
 0x7e6   :  { %v1997_v10 = vadd.f32 %v1996_v20, %v1981_v7  ;;  %v1993_v34 = vsel %vm673_vm8, %v1990_v60, %v1992_v18  ;;  %v1994_v36 = vsel %vm673_vm8, %v1988_v13, %v1990_v60  ;;  %v2190_v17 = vunpack.c.l.s4 %v5380_v16 }
 0x7e7   :  { %v1999_v28 = vadd.f32 %v1994_v36, %v1983_v21  ;;  %v2000_v32 = vadd.f32 %v1993_v34, %v1984_v11 }
 0x7e8   :  { %v2002_v59 = vadd.f32 %v1998_v22, %v1997_v10 }
 0x7e9   :  { %v2001_v30 = vadd.f32 %v2000_v32, %v1997_v10  ;;  %v2003_v38 = vadd.f32 %v1999_v28, %v1998_v22  ;;  %v2004_v39 = vadd.f32 %v2000_v32, %v1999_v28  ;;  %v2191_v32 = vunpack.c.0.s8 %v2190_v17 }
 0x7eb   :  { %v2005_v40 = vadd.f32 %v2003_v38, %v2001_v30  ;;  %v2006_v25 = vadd.f32 %v2004_v39, %v2002_v59  ;;  %v1876_v30 = vld [vmem:[#allocation12] sm:$0xf] }
 0x7ed   :  { %v2007_v50 = vmul.f32 0.001953125, %v2005_v40  ;;  %v2008_v29 = vmul.f32 0.001953125, %v2006_v25  ;;  %v5963_v40 = vsub.s32 %v2191_v32, %v5527_v3 }
 0x7ef   :  { %v2009_v51 = vmul.f32 %v2007_v50, %v2007_v50  ;;  %v2010_v35 = vmul.f32 %v2008_v29, %v2008_v29  ;;  %7339 = vst [vmem:[#allocation24_spill] sm:$0xff] %v5963_v40 }
 0x7f1   :  { %v2013_v44 = vrot.slane %v2009_v51, 7  ;;  %v2014_v49 = vrot.slane %v2010_v35, 7 }
 0x7f3   :  { %v2017_v53 = vsub.f32 %v2007_v50, %v2013_v44  ;;  %v2018_v47 = vsub.f32 %v2008_v29, %v2014_v49 }
 0x7f5   :  { %v2019_v43 = vmax.f32 %v2017_v53, 0.0  ;;  %v2020_v55 = vmax.f32 %v2018_v47, 0.0 }
 0x7f7   :  { %v2021_v4 = vadd.f32 1e-05, %v2019_v43  ;;  %v2022_v56 = vadd.f32 1e-05, %v2020_v55 }
 0x7f9   :  { %5191 = vrsqrt.f32 %v2021_v4 }
 0x7fa   :  { %5193 = vrsqrt.f32 %v2022_v56 }
 0x803   :  { %v5192_v57 = vpop.eup %5191 }
 0x804   :  { %v5194_v58 = vpop.eup %5193 }
 0x805   :  { %v2027_v62 = vcombine.low %v5192_v57, %v5194_v58 }
 0x807   :  { %v2034_v14 = vrot.slane %v2027_v62, %v5686_v45 }
 0x809   :  { %v2035_v63 = vcombine.high %v2034_v14, %v2034_v14 }
 0x80b   :  { %v2042_v7 = vrot.slane %v2035_v63, %v5686_v45 }
 0x80d   :  { %v2044_v46 = vmul.f32 %v2042_v7, %v1875_v0 }
 0x80f   :  { %v2049_v8 = vrot.slane %v2044_v46, %v5690_v12  ;;  %v2053_v11 = vrot.slane %v2044_v46, %v5693_v15  ;;  %v2057_v21 = vrot.slane %v2044_v46, %v2056_v5  ;;  %v2061_v13 = vrot.slane %v2044_v46, %v2060_v6 }
 0x811   :  { %v2066_v18 = vmul.f32 %v2049_v8, %v2007_v50  ;;  %v2067_v20 = vmul.f32 %v2053_v11, %v2008_v29  ;;  %v2068_v60 = vmul.f32 %v2057_v21, %v2007_v50  ;;  %v2069_v22 = vmul.f32 %v2061_v13, %v2008_v29 }
 0x812   :  { %v2100_v39 = vmul.f32 %v2049_v8, %v5844_v24  ;;  %v2101_v25 = vmul.f32 %v2053_v11, %v5848_v31  ;;  %v2102_v50 = vmul.f32 %v2057_v21, %v5846_v33  ;;  %v2103_v29 = vmul.f32 %v2061_v13, %v5850_v52 }
 0x813   :  { %v2074_v10 = vcombine.low %v2066_v18, %v2067_v20  ;;  %v2075_v34 = vcombine.low %v2068_v60, %v2069_v22  ;;  %v2104_v51 = vmul.f32 %v2049_v8, %v5854_v42  ;;  %v2105_v44 = vmul.f32 %v2053_v11, %v5866_v41 }
 0x814   :  { %v2106_v49 = vmul.f32 %v2057_v21, %v5864_v54  ;;  %v5973_v24 = vmul.f32 %v2049_v8, %v5884_v48  ;;  %v5976_v53 = vmul.f32 %v2053_v11, %v5891_v26  ;;  %v5979_v31 = vmul.f32 %v2057_v21, %v5889_v9 }
 0x815   :  { %v2082_v36 = vrot.slane %v2074_v10, %v5686_v45  ;;  %v2089_v28 = vrot.slane %v2075_v34, %v5686_v45  ;;  %v5982_v33 = vmul.f32 %v2061_v13, %v5899_v19  ;;  %v5998_v48 = vmul.f32 %v2053_v11, %v5911_v27 }
 0x816   :  { %v6001_v9 = vmul.f32 %v2057_v21, %v5909_v23  ;;  %v6004_v26 = vmul.f32 %v2061_v13, %v5919_v37 }
 0x817   :  { %v2090_v59 = vcombine.low %v2082_v36, %v2089_v28 }
 0x819   :  { %v2097_v38 = vrot.slane %v2090_v59, %v5686_v45  ;;  %v2107_v45 = vmul.f32 %v2061_v13, %v5876_v61  ;;  %v5995_v61 = vmul.f32 %v2049_v8, %v5904_v1 }
 0x81b   :  { %v2099_v35 = vsub.f32 %v1876_v30, %v2097_v38 }
 0x81d   :  { %v5985_v52 = vrot.slane %v2099_v35, %v5690_v12  ;;  %v5988_v42 = vrot.slane %v2099_v35, %v5693_v15  ;;  %v5990_v54 = vrot.slane %v2099_v35, %v2056_v5  ;;  %v5992_v41 = vrot.slane %v2099_v35, %v2060_v6 }
 0x81f   :  { %v2137_v12 = vadd.f32 %v5985_v52, %v2100_v39  ;;  %v2138_v15 = vadd.f32 %v5988_v42, %v2101_v25  ;;  %v2139_v19 = vadd.f32 %v5990_v54, %v2102_v50  ;;  %v2140_v47 = vadd.f32 %v5992_v41, %v2103_v29 }
 0x820   :  { %v2141_v1 = vadd.f32 %v5985_v52, %v2104_v51  ;;  %v2142_v43 = vadd.f32 %v5988_v42, %v2105_v44  ;;  %v2143_v27 = vadd.f32 %v5990_v54, %v2106_v49  ;;  %v2144_v23 = vadd.f32 %v5992_v41, %v2107_v45 }
 0x821   :  { %v2153_v55 = vmax.f32 %v2137_v12, 0.0  ;;  %v2154_v4 = vmax.f32 %v2138_v15, 0.0  ;;  %v2155_v37 = vmax.f32 %v2139_v19, 0.0  ;;  %v2156_v56 = vmax.f32 %v2140_v47, 0.0 }
 0x822   :  { %v2157_v57 = vmax.f32 %v2141_v1, 0.0  ;;  %v2158_v58 = vmax.f32 %v2142_v43, 0.0  ;;  %v2159_v62 = vmax.f32 %v2143_v27, 0.0  ;;  %v2160_v14 = vmax.f32 %v2144_v23, 0.0 }
 0x823   :  { %v2185_v63 = vcombine.low %v2153_v55, %v2154_v4  ;;  %v2187_v0 = vcombine.low %v2155_v37, %v2156_v56  ;;  %v2186_v5 = vcombine.high %v2153_v55, %v2154_v4  ;;  %v2188_v6 = vcombine.high %v2155_v37, %v2156_v56 }
 0x824   :  { %v2221_v7 = vcombine.low %v2157_v57, %v2158_v58  ;;  %v2223_v46 = vcombine.low %v2159_v62, %v2160_v14  ;;  %v2222_v8 = vcombine.high %v2157_v57, %v2158_v58  ;;  %v2224_v11 = vcombine.high %v2159_v62, %v2160_v14 }
 0x825   :  { %v2195_v21 = vrot.slane %v2185_v63, %v5963_v40  ;;  %v2209_v13 = vrot.slane %v2187_v0, %v5963_v40  ;;  %v2202_v16 = vrot.slane %v2186_v5, %v5963_v40  ;;  %v2216_v17 = vrot.slane %v2188_v6, %v5963_v40 }
 0x826   :  { %v2231_v18 = vrot.slane %v2221_v7, %v5963_v40  ;;  %v2245_v20 = vrot.slane %v2223_v46, %v5963_v40  ;;  %v2238_v60 = vrot.slane %v2222_v8, %v5963_v40  ;;  %v2252_v22 = vrot.slane %v2224_v11, %v5963_v40 }
 0x827   :  { %v2218_v10 = vcombine.high %v2195_v21, %v2209_v13  ;;  %v2217_v34 = vcombine.low %v2195_v21, %v2209_v13  ;;  %v2220_v36 = vcombine.high %v2202_v16, %v2216_v17  ;;  %v2219_v28 = vcombine.low %v2202_v16, %v2216_v17 }
 0x828   :  { %v2254_v32 = vcombine.high %v2231_v18, %v2245_v20  ;;  %v2253_v59 = vcombine.low %v2231_v18, %v2245_v20  ;;  %v2256_v30 = vcombine.high %v2238_v60, %v2252_v22  ;;  %v2255_v38 = vcombine.low %v2238_v60, %v2252_v22 }
 0x829   :  { %v4441_v39 = vrot.slane %v2218_v10, 9  ;;  %v4440_v25 = vrot.slane %v2217_v34, 9  ;;  %v4443_v50 = vrot.slane %v2220_v36, 9  ;;  %v4442_v29 = vrot.slane %v2219_v28, 9 }
 0x82a   :  { %v4445_v51 = vrot.slane %v2254_v32, 9  ;;  %v4444_v35 = vrot.slane %v2253_v59, 9  ;;  %v4447_v44 = vrot.slane %v2256_v30, 9  ;;  %v4446_v49 = vrot.slane %v2255_v38, 9 }
 0x82b   :  { %v6022_v45 = vmax.f32 %v2218_v10, %v4441_v39  ;;  %v6024_v12 = vmax.f32 %v2217_v34, %v4440_v25  ;;  %v6026_v15 = vmax.f32 %v2220_v36, %v4443_v50  ;;  %v6028_v19 = vmax.f32 %v2219_v28, %v4442_v29 }
 0x82c   :  { %v6030_v47 = vmax.f32 %v2254_v32, %v4445_v51  ;;  %v6032_v1 = vmax.f32 %v2253_v59, %v4444_v35  ;;  %v6034_v43 = vmax.f32 %v2256_v30, %v4447_v44  ;;  %v6036_v27 = vmax.f32 %v2255_v38, %v4446_v49 }
 0x82d   :  { %2443 = vrot.lane.b32.xlu0 %v6022_v45, %s5377_s26  ;;  %2441 = vrot.lane.b32.xlu1 %v6024_v12, %s5377_s26  ;;  %v2145_v23 = vadd.f32 %v5985_v52, %v5973_v24  ;;  %v2146_v55 = vadd.f32 %v5988_v42, %v5976_v53  ;;  %v2147_v4 = vadd.f32 %v5990_v54, %v5979_v31  ;;  %v6049_v37 = vrot.slane %v6022_v45, 7 }
 0x82e   :  { %v2148_v56 = vadd.f32 %v5992_v41, %v5982_v33  ;;  %v2149_v57 = vadd.f32 %v5985_v52, %v5995_v61  ;;  %v2150_v58 = vadd.f32 %v5988_v42, %v5998_v48  ;;  %v2151_v24 = vadd.f32 %v5990_v54, %v6001_v9 }
 0x82f   :  { %v2161_v62 = vmax.f32 %v2145_v23, 0.0  ;;  %v2162_v53 = vmax.f32 %v2146_v55, 0.0  ;;  %v2163_v14 = vmax.f32 %v2147_v4, 0.0  ;;  %v2152_v31 = vadd.f32 %v5992_v41, %v6004_v26 }
 0x830   :  { %v2164_v63 = vmax.f32 %v2148_v56, 0.0  ;;  %v2165_v0 = vmax.f32 %v2149_v57, 0.0  ;;  %v2166_v5 = vmax.f32 %v2150_v58, 0.0  ;;  %v2167_v6 = vmax.f32 %v2151_v24, 0.0 }
 0x831   :  { %2447 = vrot.lane.b32.xlu0 %v6026_v15, %s5377_s26  ;;  %2445 = vrot.lane.b32.xlu1 %v6028_v19, %s5377_s26  ;;  %v2257_v33 = vcombine.low %v2161_v62, %v2162_v53  ;;  %v2258_v52 = vcombine.high %v2161_v62, %v2162_v53  ;;  %v2168_v42 = vmax.f32 %v2152_v31, 0.0  ;;  %v2559_v54 = vsel %vm2558_vm9, %v6049_v37, %v6024_v12 }
 0x832   :  { %v2259_v61 = vcombine.low %v2163_v14, %v2164_v63  ;;  %v2260_v48 = vcombine.high %v2163_v14, %v2164_v63  ;;  %v2293_v41 = vcombine.low %v2165_v0, %v2166_v5  ;;  %v2294_v9 = vcombine.high %v2165_v0, %v2166_v5 }
 0x833   :  { %v2267_v26 = vrot.slane %v2257_v33, %v5963_v40  ;;  %v2274_v7 = vrot.slane %v2258_v52, %v5963_v40  ;;  %v2295_v46 = vcombine.low %v2167_v6, %v2168_v42  ;;  %v2296_v8 = vcombine.high %v2167_v6, %v2168_v42 }
 0x834   :  { %v2281_v11 = vrot.slane %v2259_v61, %v5963_v40  ;;  %v2288_v21 = vrot.slane %v2260_v48, %v5963_v40  ;;  %v2303_v13 = vrot.slane %v2293_v41, %v5963_v40  ;;  %v2310_v16 = vrot.slane %v2294_v9, %v5963_v40 }
 0x835   :  { %2451 = vrot.lane.b32.xlu0 %v6030_v47, %s5377_s26  ;;  %2449 = vrot.lane.b32.xlu1 %v6032_v1, %s5377_s26  ;;  %v2317_v17 = vrot.slane %v2295_v46, %v5963_v40  ;;  %v2324_v18 = vrot.slane %v2296_v8, %v5963_v40  ;;  %v2561_v20 = vsel %vm2560_vm10, %v6049_v37, %v2559_v54  ;;  %v2426_v24 = vrot.slane %v6022_v45, 2 }
 0x836   :  { %v2290_v60 = vcombine.high %v2267_v26, %v2281_v11  ;;  %v2289_v22 = vcombine.low %v2267_v26, %v2281_v11  ;;  %v2292_v10 = vcombine.high %v2274_v7, %v2288_v21  ;;  %v2291_v34 = vcombine.low %v2274_v7, %v2288_v21 }
 0x837   :  { %v2326_v36 = vcombine.high %v2303_v13, %v2317_v17  ;;  %v2325_v28 = vcombine.low %v2303_v13, %v2317_v17  ;;  %v2328_v32 = vcombine.high %v2310_v16, %v2324_v18  ;;  %v2327_v59 = vcombine.low %v2310_v16, %v2324_v18 }
 0x838   :  { %v4449_v30 = vrot.slane %v2290_v60, 9  ;;  %v4448_v38 = vrot.slane %v2289_v22, 9  ;;  %v4451_v39 = vrot.slane %v2292_v10, 9  ;;  %v4450_v25 = vrot.slane %v2291_v34, 9 }
 0x839   :  { %2455 = vrot.lane.b32.xlu0 %v6034_v43, %s5377_s26  ;;  %2453 = vrot.lane.b32.xlu1 %v6036_v27, %s5377_s26  ;;  %v4453_v50 = vrot.slane %v2326_v36, 9  ;;  %v4452_v29 = vrot.slane %v2325_v28, 9  ;;  %v4455_v51 = vrot.slane %v2328_v32, 9  ;;  %v4454_v35 = vrot.slane %v2327_v59, 9 }
 0x83a   :  { %v6086_v44 = vmax.f32 %v2290_v60, %v4449_v30  ;;  %v6088_v49 = vmax.f32 %v2289_v22, %v4448_v38  ;;  %v6090_v23 = vmax.f32 %v2292_v10, %v4451_v39  ;;  %v6092_v55 = vmax.f32 %v2291_v34, %v4450_v25 }
 0x83b   :  { %v6094_v4 = vmax.f32 %v2326_v36, %v4453_v50  ;;  %v6096_v56 = vmax.f32 %v2325_v28, %v4452_v29  ;;  %v6098_v57 = vmax.f32 %v2328_v32, %v4455_v51  ;;  %v2563_v58 = vsel %vm2562_vm11, %v6049_v37, %v2561_v20 }
 0x83c   :  { %v6107_v62 = vmax.f32 %v2327_v59, %v4454_v35  ;;  %v6111_v53 = vsel %vm2564_vm12, %v6049_v37, %v2563_v58  ;;  %v2568_v14 = vrot.slane %v6026_v15, 7  ;;  %v2522_v31 = vrot.slane %v6022_v45, 6 }
 0x83d   :  { %2459 = vrot.lane.b32.xlu0 %v6086_v44, %s5377_s26  ;;  %2457 = vrot.lane.b32.xlu1 %v6088_v49, %s5377_s26  ;;  %v2425_v63 = vrot.slane %v6024_v12, 2  ;;  %v2673_v0 = vrot.slane %v2426_v24, 7  ;;  %v2521_v5 = vrot.slane %v6024_v12, 6  ;;  %v2575_v6 = vrot.slane %v6030_v47, 7 }
 0x83e   :  { %v2569_v33 = vsel %vm2558_vm9, %v2568_v14, %v6028_v19  ;;  %v2897_v52 = vrot.slane %v2522_v31, 7  ;;  %v2427_v42 = vrot.slane %v6028_v19, 2  ;;  %v2428_v37 = vrot.slane %v6026_v15, 2 }
 0x83f   :  { %v2674_v54 = vsel %vm2558_vm9, %v2673_v0, %v2425_v63  ;;  %v2570_v61 = vsel %vm2560_vm10, %v2568_v14, %v2569_v33  ;;  %v2576_v48 = vsel %vm2558_vm9, %v2575_v6, %v6032_v1  ;;  %v2582_v41 = vrot.slane %v6034_v43, 7 }
 0x840   :  { %v2675_v9 = vsel %vm2560_vm10, %v2673_v0, %v2674_v54  ;;  %v2571_v26 = vsel %vm2562_vm11, %v2568_v14, %v2570_v61  ;;  %v2898_v7 = vsel %vm2558_vm9, %v2897_v52, %v2521_v5  ;;  %v2680_v46 = vrot.slane %v2428_v37, 7 }
 0x841   :  { %2463 = vrot.lane.b32.xlu0 %v6090_v23, %s5377_s26  ;;  %2461 = vrot.lane.b32.xlu1 %v6092_v55, %s5377_s26  ;;  %v2676_v8 = vsel %vm2562_vm11, %v2673_v0, %v2675_v9  ;;  %v6136_v11 = vsel %vm2564_vm12, %v2568_v14, %v2571_v26  ;;  %v2899_v21 = vsel %vm2560_vm10, %v2897_v52, %v2898_v7  ;;  %v2523_v32 = vrot.slane %v6028_v19, 6 }
 0x842   :  { %v2577_v13 = vsel %vm2560_vm10, %v2575_v6, %v2576_v48  ;;  %v6141_v16 = vsel %vm2564_vm12, %v2673_v0, %v2676_v8  ;;  %v2900_v17 = vsel %vm2562_vm11, %v2897_v52, %v2899_v21  ;;  %v2681_v20 = vsel %vm2558_vm9, %v2680_v46, %v2427_v42 }
 0x843   :  { %v2578_v18 = vsel %vm2562_vm11, %v2575_v6, %v2577_v13  ;;  %v6147_v60 = vsel %vm2564_vm12, %v2897_v52, %v2900_v17  ;;  %v2682_v10 = vsel %vm2560_vm10, %v2680_v46, %v2681_v20  ;;  %v2583_v34 = vsel %vm2558_vm9, %v2582_v41, %v6036_v27 }
 0x844   :  { %v6150_v22 = vsel %vm2564_vm12, %v2575_v6, %v2578_v18  ;;  %v2683_v36 = vsel %vm2562_vm11, %v2680_v46, %v2682_v10  ;;  %v2584_v28 = vsel %vm2560_vm10, %v2582_v41, %v2583_v34  ;;  %v2524_v59 = vrot.slane %v6026_v15, 6 }
 0x845   :  { %2467 = vrot.lane.b32.xlu0 %v6094_v4, %s5377_s26  ;;  %2465 = vrot.lane.b32.xlu1 %v6096_v56, %s5377_s26  ;;  %v6164_v30 = vsel %vm2564_vm12, %v2680_v46, %v2683_v36  ;;  %v2585_v38 = vsel %vm2562_vm11, %v2582_v41, %v2584_v28  ;;  %v2589_v39 = vrot.slane %v6086_v44, 7  ;;  %v2429_v25 = vrot.slane %v6032_v1, 2 }
 0x846   :  { %v6170_v50 = vsel %vm2564_vm12, %v2582_v41, %v2585_v38  ;;  %v2904_v29 = vrot.slane %v2524_v59, 7  ;;  %v2430_v51 = vrot.slane %v6030_v47, 2  ;;  %v2596_v35 = vrot.slane %v6090_v23, 7 }
 0x847   :  { %v2590_v58 = vsel %vm2558_vm9, %v2589_v39, %v6088_v49  ;;  %v2525_v24 = vrot.slane %v6032_v1, 6  ;;  %v2526_v14 = vrot.slane %v6030_v47, 6  ;;  %v2489_v31 = vrot.slane %v6024_v12, 4 }
 0x848   :  { %v2905_v63 = vsel %vm2558_vm9, %v2904_v29, %v2523_v32  ;;  %v2591_v0 = vsel %vm2560_vm10, %v2589_v39, %v2590_v58  ;;  %v2687_v5 = vrot.slane %v2430_v51, 7  ;;  %v2597_v6 = vsel %vm2558_vm9, %v2596_v35, %v6092_v55 }
 0x849   :  { %2471 = vrot.lane.b32.xlu0 %v6098_v57, %s5377_s26  ;;  %2469 = vrot.lane.b32.xlu1 %v6107_v62, %s5377_s26  ;;  %v2906_v33 = vsel %vm2560_vm10, %v2904_v29, %v2905_v63  ;;  %v2592_v52 = vsel %vm2562_vm11, %v2589_v39, %v2591_v0  ;;  %v2598_v12 = vsel %vm2560_vm10, %v2596_v35, %v2597_v6  ;;  %v2911_v42 = vrot.slane %v2526_v14, 7 }
 0x84a   :  { %v2907_v37 = vsel %vm2562_vm11, %v2904_v29, %v2906_v33  ;;  %v6192_v54 = vsel %vm2564_vm12, %v2589_v39, %v2592_v52  ;;  %v2688_v61 = vsel %vm2558_vm9, %v2687_v5, %v2429_v25  ;;  %v2599_v48 = vsel %vm2562_vm11, %v2596_v35, %v2598_v12 }
 0x84b   :  { %v6197_v41 = vsel %vm2564_vm12, %v2904_v29, %v2907_v37  ;;  %v2689_v9 = vsel %vm2560_vm10, %v2687_v5, %v2688_v61  ;;  %v6201_v26 = vsel %vm2564_vm12, %v2596_v35, %v2599_v48  ;;  %v2912_v7 = vsel %vm2558_vm9, %v2911_v42, %v2525_v24 }
 0x84c   :  { %v2690_v46 = vsel %vm2562_vm11, %v2687_v5, %v2689_v9  ;;  %v2913_v8 = vsel %vm2560_vm10, %v2911_v42, %v2912_v7  ;;  %v2490_v21 = vrot.slane %v6022_v45, 4  ;;  %v2431_v13 = vrot.slane %v6036_v27, 2 }
 0x84d   :  { %v6209_v17 = vsel %vm2564_vm12, %v2687_v5, %v2690_v46  ;;  %v2914_v18 = vsel %vm2562_vm11, %v2911_v42, %v2913_v8  ;;  %v2432_v20 = vrot.slane %v6034_v43, 2  ;;  %v2527_v10 = vrot.slane %v6036_v27, 6 }
 0x84e   :  { %v6215_v34 = vsel %vm2564_vm12, %v2911_v42, %v2914_v18  ;;  %v2785_v36 = vrot.slane %v2490_v21, 7  ;;  %v2528_v28 = vrot.slane %v6034_v43, 6  ;;  %v2491_v32 = vrot.slane %v6028_v19, 4 }
 0x84f   :  { %v2694_v45 = vrot.slane %v2432_v20, 7  ;;  %v2492_v59 = vrot.slane %v6026_v15, 4  ;;  %v2433_v38 = vrot.slane %v6088_v49, 2  ;;  %v2434_v39 = vrot.slane %v6086_v44, 2 }
 0x850   :  { %v2786_v25 = vsel %vm2558_vm9, %v2785_v36, %v2489_v31  ;;  %v2918_v29 = vrot.slane %v2528_v28, 7  ;;  %v2529_v51 = vrot.slane %v6088_v49, 6  ;;  %v2530_v35 = vrot.slane %v6086_v44, 6 }
 0x851   :  { %v2787_v58 = vsel %vm2560_vm10, %v2785_v36, %v2786_v25  ;;  %v2695_v24 = vsel %vm2558_vm9, %v2694_v45, %v2431_v13  ;;  %v2792_v14 = vrot.slane %v2492_v59, 7  ;;  %v2701_v19 = vrot.slane %v2434_v39, 7 }
 0x852   :  { %v2788_v63 = vsel %vm2562_vm11, %v2785_v36, %v2787_v58  ;;  %v2696_v15 = vsel %vm2560_vm10, %v2694_v45, %v2695_v24  ;;  %v2919_v0 = vsel %vm2558_vm9, %v2918_v29, %v2527_v10  ;;  %v2925_v5 = vrot.slane %v2530_v35, 7 }
 0x853   :  { %v6231_v31 = vsel %vm2564_vm12, %v2785_v36, %v2788_v63  ;;  %v2697_v6 = vsel %vm2562_vm11, %v2694_v45, %v2696_v15  ;;  %v2920_v33 = vsel %vm2560_vm10, %v2918_v29, %v2919_v0  ;;  %v2793_v52 = vsel %vm2558_vm9, %v2792_v14, %v2491_v32 }
 0x854   :  { %v6237_v12 = vsel %vm2564_vm12, %v2694_v45, %v2697_v6  ;;  %v2921_v42 = vsel %vm2562_vm11, %v2918_v29, %v2920_v33  ;;  %v2794_v37 = vsel %vm2560_vm10, %v2792_v14, %v2793_v52  ;;  %v2702_v61 = vsel %vm2558_vm9, %v2701_v19, %v2433_v38 }
 0x855   :  { %v6243_v48 = vsel %vm2564_vm12, %v2918_v29, %v2921_v42  ;;  %v2795_v9 = vsel %vm2562_vm11, %v2792_v14, %v2794_v37  ;;  %v2703_v7 = vsel %vm2560_vm10, %v2701_v19, %v2702_v61  ;;  %v2926_v46 = vsel %vm2558_vm9, %v2925_v5, %v2529_v51 }
 0x856   :  { %v6249_v8 = vsel %vm2564_vm12, %v2792_v14, %v2795_v9  ;;  %v2704_v21 = vsel %vm2562_vm11, %v2701_v19, %v2703_v7  ;;  %v2927_v13 = vsel %vm2560_vm10, %v2925_v5, %v2926_v46  ;;  %v2493_v10 = vrot.slane %v6032_v1, 4 }
 0x857   :  { %v6254_v18 = vsel %vm2564_vm12, %v2701_v19, %v2704_v21  ;;  %v2928_v20 = vsel %vm2562_vm11, %v2925_v5, %v2927_v13  ;;  %v2494_v36 = vrot.slane %v6030_v47, 4  ;;  %v2435_v32 = vrot.slane %v6092_v55, 2 }
 0x858   :  { %v6260_v28 = vsel %vm2564_vm12, %v2925_v5, %v2928_v20  ;;  %v2436_v45 = vrot.slane %v6090_v23, 2  ;;  %v2532_v59 = vrot.slane %v6090_v23, 6  ;;  %v2531_v39 = vrot.slane %v6092_v55, 6 }
 0x859   :  { %v2799_v38 = vrot.slane %v2494_v36, 7  ;;  %v2495_v25 = vrot.slane %v6036_v27, 4  ;;  %v2496_v29 = vrot.slane %v6034_v43, 4  ;;  %v2497_v47 = vrot.slane %v6088_v49, 4 }
 0x85a   :  { %v2708_v51 = vrot.slane %v2436_v45, 7  ;;  %v2932_v1 = vrot.slane %v2532_v59, 7  ;;  %v2498_v35 = vrot.slane %v6086_v44, 4  ;;  %v2437_v14 = vrot.slane %v6096_v56, 2 }
 0x85b   :  { %v2800_v58 = vsel %vm2558_vm9, %v2799_v38, %v2493_v10  ;;  %v2806_v24 = vrot.slane %v2496_v29, 7  ;;  %v2438_v19 = vrot.slane %v6094_v4, 2  ;;  %v2500_v20 = vrot.slane %v6090_v23, 4 }
 0x85c   :  { %v2801_v63 = vsel %vm2560_vm10, %v2799_v38, %v2800_v58  ;;  %v2709_v15 = vsel %vm2558_vm9, %v2708_v51, %v2435_v32  ;;  %v2933_v27 = vsel %vm2558_vm9, %v2932_v1, %v2531_v39  ;;  %v2813_v43 = vrot.slane %v2498_v35, 7 }
 0x85d   :  { %v2802_v0 = vsel %vm2562_vm11, %v2799_v38, %v2801_v63  ;;  %v2710_v49 = vsel %vm2560_vm10, %v2708_v51, %v2709_v15  ;;  %v2934_v44 = vsel %vm2560_vm10, %v2932_v1, %v2933_v27  ;;  %v2807_v5 = vsel %vm2558_vm9, %v2806_v24, %v2495_v25 }
 0x85e   :  { %v6281_v6 = vsel %vm2564_vm12, %v2799_v38, %v2802_v0  ;;  %v2711_v33 = vsel %vm2562_vm11, %v2708_v51, %v2710_v49  ;;  %v2935_v52 = vsel %vm2562_vm11, %v2932_v1, %v2934_v44  ;;  %v2808_v42 = vsel %vm2560_vm10, %v2806_v24, %v2807_v5 }
 0x85f   :  { %v6287_v37 = vsel %vm2564_vm12, %v2708_v51, %v2711_v33  ;;  %v6290_v61 = vsel %vm2564_vm12, %v2932_v1, %v2935_v52  ;;  %v2809_v9 = vsel %vm2562_vm11, %v2806_v24, %v2808_v42  ;;  %v2814_v7 = vsel %vm2558_vm9, %v2813_v43, %v2497_v47 }
 0x860   :  { %v6295_v46 = vsel %vm2564_vm12, %v2806_v24, %v2809_v9  ;;  %v2815_v21 = vsel %vm2560_vm10, %v2813_v43, %v2814_v7  ;;  %v2715_v13 = vrot.slane %v2438_v19, 7  ;;  %v2499_v36 = vrot.slane %v6092_v55, 4 }
 0x861   :  { %v2816_v10 = vsel %vm2562_vm11, %v2813_v43, %v2815_v21  ;;  %v2534_v32 = vrot.slane %v6094_v4, 6  ;;  %v2603_v45 = vrot.slane %v6094_v4, 7  ;;  %v2820_v39 = vrot.slane %v2500_v20, 7 }
 0x862   :  { %v6304_v59 = vsel %vm2564_vm12, %v2813_v43, %v2816_v10  ;;  %v2716_v38 = vsel %vm2558_vm9, %v2715_v13, %v2437_v14  ;;  %v2533_v25 = vrot.slane %v6096_v56, 6  ;;  %v2502_v55 = vrot.slane %v6094_v4, 4 }
 0x863   :  { %v2717_v29 = vsel %vm2560_vm10, %v2715_v13, %v2716_v38  ;;  %v2939_v51 = vrot.slane %v2534_v32, 7  ;;  %v2604_v23 = vsel %vm2558_vm9, %v2603_v45, %v6096_v56  ;;  %v2821_v47 = vsel %vm2558_vm9, %v2820_v39, %v2499_v36 }
 0x864   :  { %v2718_v1 = vsel %vm2562_vm11, %v2715_v13, %v2717_v29  ;;  %v2605_v35 = vsel %vm2560_vm10, %v2603_v45, %v2604_v23  ;;  %v2501_v58 = vrot.slane %v6096_v56, 4  ;;  %v2822_v14 = vsel %vm2560_vm10, %v2820_v39, %v2821_v47 }
 0x865   :  { %v6317_v24 = vsel %vm2564_vm12, %v2715_v13, %v2718_v1  ;;  %v2940_v19 = vsel %vm2558_vm9, %v2939_v51, %v2533_v25  ;;  %v2606_v63 = vsel %vm2562_vm11, %v2603_v45, %v2605_v35  ;;  %v2823_v15 = vsel %vm2562_vm11, %v2820_v39, %v2822_v14 }
 0x866   :  { %v2941_v4 = vsel %vm2560_vm10, %v2939_v51, %v2940_v19  ;;  %v6325_v27 = vsel %vm2564_vm12, %v2603_v45, %v2606_v63  ;;  %v2827_v43 = vrot.slane %v2502_v55, 7  ;;  %v6328_v0 = vsel %vm2564_vm12, %v2820_v39, %v2823_v15 }
 0x867   :  { %v2942_v56 = vsel %vm2562_vm11, %v2939_v51, %v2941_v4  ;;  %v2440_v49 = vrot.slane %v6098_v57, 2  ;;  %v2610_v44 = vrot.slane %v6098_v57, 7  ;;  %v2439_v52 = vrot.slane %v6107_v62, 2 }
 0x868   :  { %v6334_v5 = vsel %vm2564_vm12, %v2939_v51, %v2942_v56  ;;  %v2828_v33 = vsel %vm2558_vm9, %v2827_v43, %v2501_v58  ;;  %v2536_v42 = vrot.slane %v6098_v57, 6  ;;  %v2535_v13 = vrot.slane %v6107_v62, 6 }
 0x869   :  { %v2829_v9 = vsel %vm2560_vm10, %v2827_v43, %v2828_v33  ;;  %v2722_v7 = vrot.slane %v2440_v49, 7  ;;  %v2611_v21 = vsel %vm2558_vm9, %v2610_v44, %v6107_v62  ;;  %v2504_v32 = vrot.slane %v6098_v57, 4 }
 0x86a   :  { %v2830_v20 = vsel %vm2562_vm11, %v2827_v43, %v2829_v9  ;;  %v2612_v10 = vsel %vm2560_vm10, %v2610_v44, %v2611_v21  ;;  %v2946_v36 = vrot.slane %v2536_v42, 7  ;;  %v2503_v25 = vrot.slane %v6107_v62, 4 }
 0x86b   :  { %v6347_v45 = vsel %vm2564_vm12, %v2827_v43, %v2830_v20  ;;  %v2723_v38 = vsel %vm2558_vm9, %v2722_v7, %v2439_v52  ;;  %v2613_v39 = vsel %vm2562_vm11, %v2610_v44, %v2612_v10  ;;  %v2834_v55 = vrot.slane %v2504_v32, 7 }
 0x86c   :  { %7340 = vst [vmem:[#allocation25_spill] sm:$0xff] %v6347_v45  ;;  %v2724_v29 = vsel %vm2560_vm10, %v2722_v7, %v2723_v38  ;;  %v6354_v51 = vsel %vm2564_vm12, %v2610_v44, %v2613_v39  ;;  %v2947_v23 = vsel %vm2558_vm9, %v2946_v36, %v2535_v13  ;;  %v5381_v56 = vmov 1934713408  }
 0x86d   :  { %7341 = vst [vmem:[#allocation26_spill] sm:$0xff] %v6354_v51  ;;  %v2725_v1 = vsel %vm2562_vm11, %v2722_v7, %v2724_v29  ;;  %v2948_v57 = vsel %vm2560_vm10, %v2946_v36, %v2947_v23  ;;  %v2835_v58 = vsel %vm2558_vm9, %v2834_v55, %v2503_v25  ;;  %v3073_v49 = vunpack.c.l.s4 %v5381_v56 }
 0x86e   :  { %v6360_v47 = vsel %vm2564_vm12, %v2722_v7, %v2725_v1  ;;  %v2949_v35 = vsel %vm2562_vm11, %v2946_v36, %v2948_v57  ;;  %v2836_v14 = vsel %vm2560_vm10, %v2834_v55, %v2835_v58 }
 0x86f   :  { %7342 = vst [vmem:[#allocation27_spill] sm:$0xff] %v6360_v47  ;;  %v6365_v62 = vsel %vm2564_vm12, %v2946_v36, %v2949_v35  ;;  %v2837_v19 = vsel %vm2562_vm11, %v2834_v55, %v2836_v14  ;;  %v3074_v9 = vunpack.c.0.s8 %v3073_v49 }
 0x870   :  { %7343 = vst [vmem:[#allocation28_spill] sm:$0xff] %v6365_v62  ;;  %v6370_v63 = vsel %vm2564_vm12, %v2834_v55, %v2837_v19 }
 0x871   :  { %7344 = vst [vmem:[#allocation29_spill] sm:$0xff] %v6370_v63  ;;  %v6385_v36 = vsub.s32 %v3074_v9, %v5527_v3 }
 0x89f   :  { %v2444_v15 = vpop.permute.xlu0 %2443  ;;  %v6372_v43 = vpop.permute.xlu1 %2441 }
 0x8a0   :  { %v2617_v4 = vrot.slane %v2444_v15, 7  ;;  %v2474_v42 = vrot.slane %v2444_v15, 2  ;;  %v2473_v32 = vrot.slane %v6372_v43, 2  ;;  %v2538_v25 = vrot.slane %v2444_v15, 6 }
 0x8a2   :  { %v2618_v44 = vsel %vm2558_vm9, %v2617_v4, %v6372_v43  ;;  %v2729_v13 = vrot.slane %v2474_v42, 7  ;;  %v2953_v3 = vrot.slane %v2538_v25, 7 }
 0x8a3   :  { %v2619_v33 = vsel %vm2560_vm10, %v2617_v4, %v2618_v44  ;;  %v6377_v52 = vpop.permute.xlu0 %2447  ;;  %v6382_v10 = vpop.permute.xlu1 %2445 }
 0x8a4   :  { %v2624_v7 = vrot.slane %v6377_v52, 7  ;;  %v2620_v21 = vsel %vm2562_vm11, %v2617_v4, %v2619_v33  ;;  %v2730_v23 = vsel %vm2558_vm9, %v2729_v13, %v2473_v32  ;;  %v2476_v56 = vrot.slane %v6377_v52, 2 }
 0x8a5   :  { %v2621_v20 = vsel %vm2564_vm12, %v2617_v4, %v2620_v21  ;;  %v2731_v35 = vsel %vm2560_vm10, %v2729_v13, %v2730_v23  ;;  %v2537_v4 = vrot.slane %v6372_v43, 6  ;;  %v2506_v32 = vrot.slane %v2444_v15, 4 }
 0x8a6   :  { %v2625_v38 = vsel %vm2558_vm9, %v2624_v7, %v6382_v10  ;;  %v3071_v29 = vcombine.low %v6111_v53, %v2621_v20  ;;  %v2732_v53 = vsel %vm2562_vm11, %v2729_v13, %v2731_v35  ;;  %v2475_v15 = vrot.slane %v6382_v10, 2 }
 0x8a7   :  { %v6390_v39 = vpop.permute.xlu0 %2451  ;;  %v2626_v55 = vsel %vm2560_vm10, %v2624_v7, %v2625_v38  ;;  %v6402_v58 = vpop.permute.xlu1 %2449  ;;  %v2733_v44 = vsel %vm2564_vm12, %v2729_v13, %v2732_v53  ;;  %v2954_v9 = vsel %vm2558_vm9, %v2953_v3, %v2537_v4  ;;  %v2508_v4 = vrot.slane %v6377_v52, 4 }
 0x8a8   :  { %v2631_v1 = vrot.slane %v6390_v39, 7  ;;  %v6397_v57 = vrot.slane %v3071_v29, %v6385_v36  ;;  %v2627_v19 = vsel %vm2562_vm11, %v2624_v7, %v2626_v55  ;;  %v3080_v33 = vcombine.low %v6141_v16, %v2733_v44 }
 0x8a9   :  { %v2628_v42 = vsel %vm2564_vm12, %v2624_v7, %v2627_v19  ;;  %v2736_v29 = vrot.slane %v2476_v56, 7  ;;  %v2540_v16 = vrot.slane %v6377_v52, 6  ;;  %v6440_v19 = vrot.slane %v2506_v32, 7 }
 0x8aa   :  { %3423 = vrot.lane.b32.xlu0 %v6397_v57, %s5375_s0  ;;  %v2632_v49 = vsel %vm2558_vm9, %v2631_v1, %v6402_v58  ;;  %v3107_v20 = vcombine.low %v6136_v11, %v2628_v42  ;;  %v6420_v25 = vrot.slane %v3080_v33, %v6385_v36  ;;  %v2955_v11 = vsel %vm2560_vm10, %v2953_v3, %v2954_v9 }
 0x8ab   :  { %v6404_v14 = vpop.permute.xlu0 %2455  ;;  %v2633_v38 = vsel %vm2560_vm10, %v2631_v1, %v2632_v49  ;;  %v6426_v13 = vpop.permute.xlu1 %2453  ;;  %v2956_v35 = vsel %vm2562_vm11, %v2953_v3, %v2955_v11  ;;  %v2737_v44 = vsel %vm2558_vm9, %v2736_v29, %v2475_v15  ;;  %v2960_v11 = vrot.slane %v2540_v16, 7 }
 0x8ac   :  { %v2638_v21 = vrot.slane %v6404_v14, 7  ;;  %v6423_v23 = vrot.slane %v3107_v20, %v6385_v36  ;;  %3425 = vrot.lane.b32.xlu1 %v6420_v25, %s5375_s0  ;;  %v2634_v53 = vsel %vm2562_vm11, %v2631_v1, %v2633_v38  ;;  %v2957_v56 = vsel %vm2564_vm12, %v2953_v3, %v2956_v35 }
 0x8ad   :  { %v2635_v49 = vsel %vm2564_vm12, %v2631_v1, %v2634_v53  ;;  %v3098_v42 = vcombine.low %v6147_v60, %v2957_v56  ;;  %v2505_v20 = vrot.slane %v6372_v43, 4  ;;  %v2478_v38 = vrot.slane %v6390_v39, 2 }
 0x8ae   :  { %v2639_v55 = vsel %vm2558_vm9, %v2638_v21, %v6426_v13  ;;  %3439 = vrot.lane.b32.xlu0 %v6423_v23, %s5375_s0  ;;  %v3143_v9 = vcombine.low %v6150_v22, %v2635_v49  ;;  %v2507_v60 = vrot.slane %v6382_v10, 4  ;;  %v2539_v22 = vrot.slane %v6382_v10, 6 }
 0x8af   :  { %v6430_v7 = vpop.permute.xlu0 %2459  ;;  %v2640_v32 = vsel %vm2560_vm10, %v2638_v21, %v2639_v55  ;;  %v6453_v52 = vrot.slane %v3098_v42, %v6385_v36  ;;  %v6460_v3 = vsel %vm2558_vm9, %v6440_v19, %v2505_v20  ;;  %v6464_v43 = vpop.permute.xlu1 %2457  ;;  %v2738_v16 = vsel %vm2560_vm10, %v2736_v29, %v2737_v44 }
 0x8b0   :  { %v2645_v33 = vrot.slane %v6430_v7, 7  ;;  %v6456_v1 = vrot.slane %v3143_v9, %v6385_v36  ;;  %v6469_v55 = vrot.slane %v2508_v4, 7  ;;  %v2739_v53 = vsel %vm2562_vm11, %v2736_v29, %v2738_v16 }
 0x8b1   :  { %3429 = vrot.lane.b32.xlu1 %v6453_v52, %s5375_s0  ;;  %v2641_v10 = vsel %vm2562_vm11, %v2638_v21, %v2640_v32  ;;  %v2542_v56 = vrot.slane %v6390_v39, 6  ;;  %v2743_v49 = vrot.slane %v2478_v38, 7  ;;  %v2740_v44 = vsel %vm2564_vm12, %v2736_v29, %v2739_v53 }
 0x8b2   :  { %v2646_v35 = vsel %vm2558_vm9, %v2645_v33, %v6464_v43  ;;  %3455 = vrot.lane.b32.xlu0 %v6456_v1, %s5375_s0  ;;  %v2642_v4 = vsel %vm2564_vm12, %v2638_v21, %v2641_v10  ;;  %v2961_v42 = vsel %vm2558_vm9, %v2960_v11, %v2539_v22  ;;  %v3116_v20 = vcombine.low %v6164_v30, %v2740_v44 }
 0x8b3   :  { %v6466_v15 = vpop.permute.xlu0 %2463  ;;  %v3179_v2 = vcombine.low %v6170_v50, %v2642_v4  ;;  %v2477_v40 = vrot.slane %v6402_v58, 2  ;;  %v2480_v16 = vrot.slane %v6404_v14, 2  ;;  %v2544_v32 = vrot.slane %v6404_v14, 6  ;;  %v6501_v44 = vpop.permute.xlu1 %2461 }
 0x8b4   :  { %v2652_v9 = vrot.slane %v6466_v15, 7  ;;  %v2647_v38 = vsel %vm2560_vm10, %v2645_v33, %v2646_v35  ;;  %v2510_v29 = vrot.slane %v6390_v39, 4  ;;  %v2482_v21 = vrot.slane %v6430_v7, 2 }
 0x8b5   :  { %v6493_v22 = vrot.slane %v3116_v20, %v6385_v36  ;;  %v6496_v53 = vrot.slane %v3179_v2, %v6385_v36  ;;  %v2849_v30 = vsel %vm2558_vm9, %v6469_v55, %v2507_v60  ;;  %v2967_v50 = vrot.slane %v2542_v56, 7 }
 0x8b6   :  { %v2744_v10 = vsel %vm2558_vm9, %v2743_v49, %v2477_v40  ;;  %v2962_v35 = vsel %vm2560_vm10, %v2960_v11, %v2961_v42  ;;  %v2541_v39 = vrot.slane %v6402_v58, 6  ;;  %v2653_v4 = vsel %vm2558_vm9, %v2652_v9, %v6501_v44 }
 0x8b7   :  { %3441 = vrot.lane.b32.xlu1 %v6493_v22, %s5375_s0  ;;  %3471 = vrot.lane.b32.xlu0 %v6496_v53, %s5375_s0  ;;  %v2963_v2 = vsel %vm2562_vm11, %v2960_v11, %v2962_v35  ;;  %v2648_v60 = vsel %vm2562_vm11, %v2645_v33, %v2647_v38  ;;  %v2750_v40 = vrot.slane %v2480_v16, 7  ;;  %v2974_v56 = vrot.slane %v2544_v32, 7 }
 0x8b8   :  { %v2964_v20 = vsel %vm2564_vm12, %v2960_v11, %v2963_v2  ;;  %v2649_v42 = vsel %vm2564_vm12, %v2645_v33, %v2648_v60  ;;  %v2546_v63 = vrot.slane %v6430_v7, 6  ;;  %v6516_v62 = vrot.slane %v2482_v21, 7 }
 0x8b9   :  { %v3134_v51 = vcombine.low %v6197_v41, %v2964_v20  ;;  %v3215_v47 = vcombine.low %v6192_v54, %v2649_v42  ;;  %v6520_v45 = vrot.slane %v2510_v29, 7  ;;  %v2479_v35 = vrot.slane %v6426_v13, 2 }
 0x8ba   :  { %v2543_v38 = vrot.slane %v6426_v13, 6  ;;  %v2654_v16 = vsel %vm2560_vm10, %v2652_v9, %v2653_v4  ;;  %v2968_v11 = vsel %vm2558_vm9, %v2967_v50, %v2541_v39  ;;  %v2481_v33 = vrot.slane %v6464_v43, 2 }
 0x8bb   :  { %v6528_v32 = vrot.slane %v3134_v51, %v6385_v36  ;;  %v6531_v21 = vrot.slane %v3215_v47, %v6385_v36  ;;  %v2509_v54 = vrot.slane %v6402_v58, 4  ;;  %v2751_v41 = vsel %vm2558_vm9, %v2750_v40, %v2479_v35 }
 0x8bc   :  { %v2975_v29 = vsel %vm2558_vm9, %v2974_v56, %v2543_v38  ;;  %v2745_v2 = vsel %vm2560_vm10, %v2743_v49, %v2744_v10  ;;  %v6537_v60 = vrot.slane %v2546_v63, 7  ;;  %v2758_v39 = vsel %vm2558_vm9, %v6516_v62, %v2481_v33 }
 0x8bd   :  { %3445 = vrot.lane.b32.xlu1 %v6528_v32, %s5375_s0  ;;  %3487 = vrot.lane.b32.xlu0 %v6531_v21, %s5375_s0  ;;  %v2746_v51 = vsel %vm2562_vm11, %v2743_v49, %v2745_v2  ;;  %v2655_v47 = vsel %vm2562_vm11, %v2652_v9, %v2654_v16  ;;  %v2969_v63 = vsel %vm2560_vm10, %v2967_v50, %v2968_v11  ;;  %v2484_v16 = vrot.slane %v6466_v15, 2 }
 0x8be   :  { %v2747_v58 = vsel %vm2564_vm12, %v2743_v49, %v2746_v51  ;;  %v2656_v4 = vsel %vm2564_vm12, %v2652_v9, %v2655_v47  ;;  %v2843_v10 = vsel %vm2560_vm10, %v6440_v19, %v6460_v3  ;;  %v2970_v35 = vsel %vm2562_vm11, %v2967_v50, %v2969_v63 }
 0x8bf   :  { %v3152_v20 = vcombine.low %v6209_v17, %v2747_v58  ;;  %v3251_v42 = vcombine.low %v6201_v26, %v2656_v4  ;;  %v2844_v38 = vsel %vm2562_vm11, %v6440_v19, %v2843_v10  ;;  %v2971_v49 = vsel %vm2564_vm12, %v2967_v50, %v2970_v35 }
 0x8c0   :  { %v2845_v9 = vsel %vm2564_vm12, %v6440_v19, %v2844_v38  ;;  %v2752_v11 = vsel %vm2560_vm10, %v2750_v40, %v2751_v41  ;;  %v3170_v26 = vcombine.low %v6215_v34, %v2971_v49  ;;  %v2856_v2 = vsel %vm2558_vm9, %v6520_v45, %v2509_v54 }
 0x8c1   :  { %v6564_v3 = vrot.slane %v3152_v20, %v6385_v36  ;;  %v6567_v17 = vrot.slane %v3251_v42, %v6385_v36  ;;  %v3089_v33 = vcombine.low %v6231_v31, %v2845_v9  ;;  %v2753_v50 = vsel %vm2562_vm11, %v2750_v40, %v2752_v11 }
 0x8c2   :  { %v2976_v51 = vsel %vm2560_vm10, %v2974_v56, %v2975_v29  ;;  %v2850_v19 = vsel %vm2560_vm10, %v6469_v55, %v2849_v30  ;;  %v2512_v41 = vrot.slane %v6404_v14, 4  ;;  %v2545_v47 = vrot.slane %v6464_v43, 6 }
 0x8c3   :  { %v2548_v58 = vrot.slane %v6466_v15, 6  ;;  %3457 = vrot.lane.b32.xlu1 %v6564_v3, %s5375_s0  ;;  %3503 = vrot.lane.b32.xlu0 %v6567_v17, %s5375_s0  ;;  %v2754_v34 = vsel %vm2564_vm12, %v2750_v40, %v2753_v50  ;;  %v2764_v31 = vrot.slane %v2484_v16, 7  ;;  %v2977_v54 = vsel %vm2562_vm11, %v2974_v56, %v2976_v51 }
 0x8c4   :  { %v2851_v30 = vsel %vm2562_vm11, %v6469_v55, %v2850_v19  ;;  %v2759_v14 = vsel %vm2560_vm10, %v6516_v62, %v2758_v39  ;;  %v2982_v29 = vsel %vm2558_vm9, %v6537_v60, %v2545_v47  ;;  %v6593_v4 = vrot.slane %v3170_v26, %v6385_v36 }
 0x8c5   :  { %v6596_v63 = vrot.slane %v3089_v33, %v6385_v36  ;;  %v3188_v40 = vcombine.low %v6237_v12, %v2754_v34  ;;  %v2483_v10 = vrot.slane %v6501_v44, 2  ;;  %v2978_v20 = vsel %vm2564_vm12, %v2974_v56, %v2977_v54 }
 0x8c6   :  { %v2852_v42 = vsel %vm2564_vm12, %v6469_v55, %v2851_v30  ;;  %v2862_v35 = vrot.slane %v2512_v41, 7  ;;  %v2760_v39 = vsel %vm2562_vm11, %v6516_v62, %v2759_v14  ;;  %v2988_v38 = vrot.slane %v2548_v58, 7 }
 0x8c7   :  { %3461 = vrot.lane.b32.xlu1 %v6593_v4, %s5375_s0  ;;  %3427 = vrot.lane.b32.xlu0 %v6596_v63, %s5375_s0  ;;  %v2765_v12 = vsel %vm2558_vm9, %v2764_v31, %v2483_v10  ;;  %v2983_v16 = vsel %vm2560_vm10, %v6537_v60, %v2982_v29  ;;  %v2857_v56 = vsel %vm2560_vm10, %v6520_v45, %v2856_v2  ;;  %v7345_v49 = vmov 0.0  }
 0x8c8   :  { %v6615_v55 = vrot.slane %v3188_v40, %v6385_v36  ;;  %v6619_v9 = vcombine.high %v6397_v57, %v7345_v49  ;;  %v3206_v11 = vcombine.low %v6243_v48, %v2978_v20  ;;  %v3125_v26 = vcombine.low %v6249_v8, %v2852_v42 }
 0x8c9   :  { %v2511_v33 = vrot.slane %v6426_v13, 4  ;;  %v2761_v50 = vsel %vm2564_vm12, %v6516_v62, %v2760_v39  ;;  %v2547_v51 = vrot.slane %v6501_v44, 6  ;;  %v2984_v2 = vsel %vm2562_vm11, %v6537_v60, %v2983_v16 }
 0x8ca   :  { %v2858_v48 = vsel %vm2562_vm11, %v6520_v45, %v2857_v56  ;;  %v2514_v13 = vrot.slane %v6430_v7, 4  ;;  %v2766_v62 = vsel %vm2560_vm10, %v2764_v31, %v2765_v12  ;;  %v6640_v41 = vrot.slane %v3206_v11, %v6385_v36 }
 0x8cb   :  { %3473 = vrot.lane.b32.xlu1 %v6615_v55, %s5375_s0  ;;  %3431 = vrot.lane.b32.xlu0 %v6619_v9, %s5375_s0  ;;  %v2863_v8 = vsel %vm2558_vm9, %v2862_v35, %v2511_v33  ;;  %v2989_v19 = vsel %vm2558_vm9, %v2988_v38, %v2547_v51  ;;  %v6643_v47 = vrot.slane %v3125_v26, %v6385_v36  ;;  %v2513_v42 = vrot.slane %v6464_v43, 4 }
 0x8cc   :  { %v3224_v58 = vcombine.low %v6254_v18, %v2761_v50  ;;  %v2985_v34 = vsel %vm2564_vm12, %v6537_v60, %v2984_v2  ;;  %v2859_v54 = vsel %vm2564_vm12, %v6520_v45, %v2858_v48  ;;  %v2767_v7 = vsel %vm2562_vm11, %v2764_v31, %v2766_v62  ;;  %v6657_v18 = vpop.permute.xlu0 %2467  ;;  %v6692_v50 = vpop.permute.xlu1 %2465 }
 0x8cd   :  { %v2869_v30 = vrot.slane %v2514_v13, 7  ;;  %v2990_v14 = vsel %vm2560_vm10, %v2988_v38, %v2989_v19  ;;  %v2864_v29 = vsel %vm2560_vm10, %v2862_v35, %v2863_v8  ;;  %v6664_v45 = vcombine.high %v6423_v23, %v7345_v49 }
 0x8ce   :  { %v6660_v60 = vrot.slane %v3224_v58, %v6385_v36  ;;  %v3242_v40 = vcombine.low %v6260_v28, %v2985_v34  ;;  %v3161_v10 = vcombine.low %v6281_v6, %v2859_v54  ;;  %v2768_v20 = vsel %vm2564_vm12, %v2764_v31, %v2767_v7 }
 0x8cf   :  { %3477 = vrot.lane.b32.xlu1 %v6640_v41, %s5375_s0  ;;  %3443 = vrot.lane.b32.xlu0 %v6643_v47, %s5375_s0  ;;  %v2991_v39 = vsel %vm2562_vm11, %v2988_v38, %v2990_v14  ;;  %v2865_v12 = vsel %vm2562_vm11, %v2862_v35, %v2864_v29  ;;  %v2516_v16 = vrot.slane %v6466_v15, 4  ;;  %v2486_v28 = vrot.slane %v6657_v18, 2 }
 0x8d0   :  { %v2870_v6 = vsel %vm2558_vm9, %v2869_v30, %v2513_v42  ;;  %v6680_v31 = vrot.slane %v3242_v40, %v6385_v36  ;;  %v6683_v43 = vrot.slane %v3161_v10, %v6385_v36  ;;  %v3260_v56 = vcombine.low %v6287_v37, %v2768_v20 }
 0x8d1   :  { %v2992_v11 = vsel %vm2564_vm12, %v2988_v38, %v2991_v39  ;;  %v2866_v26 = vsel %vm2564_vm12, %v2862_v35, %v2865_v12  ;;  %v2876_v15 = vrot.slane %v2516_v16, 7  ;;  %v2771_v33 = vrot.slane %v2486_v28, 7 }
 0x8d2   :  { %7346 = vst [vmem:[#allocation30_spill] sm:$0xff] %v6680_v31  ;;  %v2871_v51 = vsel %vm2560_vm10, %v2869_v30, %v2870_v6  ;;  %v6696_v2 = vrot.slane %v3260_v56, %v6385_v36  ;;  %v6700_v37 = vcombine.high %v6456_v1, %v7345_v49  ;;  %v3278_v35 = vcombine.low %v6290_v61, %v2992_v11 }
 0x8d3   :  { %3489 = vrot.lane.b32.xlu1 %v6660_v60, %s5375_s0  ;;  %3447 = vrot.lane.b32.xlu0 %v6664_v45, %s5375_s0  ;;  %v3197_v38 = vcombine.low %v6295_v46, %v2866_v26  ;;  %v2515_v48 = vrot.slane %v6501_v44, 4  ;;  %v2485_v8 = vrot.slane %v6692_v50, 2  ;;  %v2872_v13 = vsel %vm2562_vm11, %v2869_v30, %v2871_v51 }
 0x8d4   :  { %v6714_v61 = vrot.slane %v3278_v35, %v6385_v36  ;;  %v2873_v44 = vsel %vm2564_vm12, %v2869_v30, %v2872_v13  ;;  %v2550_v58 = vrot.slane %v6657_v18, 6  ;;  %v6729_v7 = vcombine.high %v6420_v25, %v7345_v49 }
 0x8d5   :  { %v2877_v62 = vsel %vm2558_vm9, %v2876_v15, %v2515_v48  ;;  %v2772_v19 = vsel %vm2558_vm9, %v2771_v33, %v2485_v8  ;;  %v6717_v46 = vrot.slane %v3197_v38, %v6385_v36  ;;  %v6733_v14 = vcombine.high %v6496_v53, %v7345_v49 }
 0x8d6   :  { %v2773_v34 = vsel %vm2560_vm10, %v2771_v33, %v2772_v19  ;;  %v2878_v54 = vsel %vm2560_vm10, %v2876_v15, %v2877_v62  ;;  %v3233_v30 = vcombine.low %v6304_v59, %v2873_v44  ;;  %v2995_v10 = vrot.slane %v2550_v58, 7  ;;  %v2472_v62 = vpop.permute.xlu0 %2471 }
 0x8d7   :  { %3493 = vrot.lane.b32.xlu1 %v6680_v31, %s5375_s0  ;;  %3459 = vrot.lane.b32.xlu0 %v6683_v43, %s5375_s0  ;;  %v2774_v29 = vsel %vm2562_vm11, %v2771_v33, %v2773_v34  ;;  %v2879_v40 = vsel %vm2562_vm11, %v2876_v15, %v2878_v54  ;;  %v6744_v20 = vcombine.high %v6453_v52, %v7345_v49  ;;  %v2549_v59 = vrot.slane %v6692_v50, 6 }
 0x8d8   :  { %v6747_v42 = vrot.slane %v3233_v30, %v6385_v36  ;;  %v2775_v39 = vsel %vm2564_vm12, %v2771_v33, %v2774_v29  ;;  %v2880_v12 = vsel %vm2564_vm12, %v2876_v15, %v2879_v40  ;;  %v2659_v16 = vrot.slane %v6657_v18, 7  ;;  %v2470_v40 = vpop.permute.xlu1 %2469 }
 0x8d9   :  { %v2996_v28 = vsel %vm2558_vm9, %v2995_v10, %v2549_v59  ;;  %v6760_v6 = vcombine.high %v6493_v22, %v7345_v49  ;;  %v6764_v56 = vcombine.high %v6531_v21, %v7345_v49  ;;  %v3296_v11 = vcombine.low %v6317_v24, %v2775_v39 }
 0x8da   :  { %v3269_v26 = vcombine.low %v6328_v0, %v2880_v12  ;;  %v2518_v15 = vrot.slane %v6657_v18, 4  ;;  %v2997_v33 = vsel %vm2560_vm10, %v2995_v10, %v2996_v28  ;;  %v2660_v51 = vsel %vm2558_vm9, %v2659_v16, %v6692_v50 }
 0x8db   :  { %3505 = vrot.lane.b32.xlu1 %v6696_v2, %s5375_s0  ;;  %3463 = vrot.lane.b32.xlu0 %v6700_v37, %s5375_s0  ;;  %7347 = vst [vmem:[#allocation31_spill] sm:$0xff] %v6764_v56  ;;  %v6777_v35 = vrot.slane %v3296_v11, %v6385_v36  ;;  %v2998_v0 = vsel %vm2562_vm11, %v2995_v10, %v2997_v33  ;;  %v2517_v13 = vrot.slane %v6692_v50, 4  ;;  %v2488_v34 = vrot.slane %v2472_v62, 2 }
 0x8dc   :  { %v6780_v24 = vrot.slane %v3269_v26, %v6385_v36  ;;  %v2883_v18 = vrot.slane %v2518_v15, 7  ;;  %v2661_v38 = vsel %vm2560_vm10, %v2659_v16, %v2660_v51  ;;  %v6790_v48 = vcombine.high %v6528_v32, %v7345_v49 }
 0x8dd   :  { %7348 = vst [vmem:[#allocation32_spill] sm:$0xff] %v6777_v35  ;;  %v6794_v8 = vcombine.high %v6596_v63, %v7345_v49  ;;  %v2999_v19 = vsel %vm2564_vm12, %v2995_v10, %v2998_v0  ;;  %v2662_v44 = vsel %vm2562_vm11, %v2659_v16, %v2661_v38  ;;  %v6806_v54 = vcombine.high %v6564_v3, %v7345_v49 }
 0x8de   :  { %v2884_v58 = vsel %vm2558_vm9, %v2883_v18, %v2517_v13  ;;  %v6810_v50 = vcombine.high %v6567_v17, %v7345_v49  ;;  %v3314_v30 = vcombine.low %v6334_v5, %v2999_v19  ;;  %v2663_v29 = vsel %vm2564_vm12, %v2659_v16, %v2662_v44  ;;  %v7352_v19 = vld [vmem:[#allocation25_spill] sm:$0xff] }
 0x8df   :  { %3509 = vrot.lane.b32.xlu1 %v6714_v61, %s5375_s0  ;;  %3475 = vrot.lane.b32.xlu0 %v6717_v46, %s5375_s0  ;;  %v2885_v10 = vsel %vm2560_vm10, %v2883_v18, %v2884_v58  ;;  %v2778_v59 = vrot.slane %v2488_v34, 7  ;;  %v6824_v12 = vcombine.high %v6643_v47, %v7345_v49  ;;  %v3287_v5 = vcombine.low %v6325_v27, %v2663_v29 }
 0x8e0   :  { %7349 = vst [vmem:[#allocation33_spill] sm:$0xff] %v6810_v50  ;;  %v6820_v39 = vrot.slane %v3314_v30, %v6385_v36  ;;  %v2487_v16 = vrot.slane %v2470_v40, 2  ;;  %v2886_v28 = vsel %vm2562_vm11, %v2883_v18, %v2885_v10  ;;  %v6835_v26 = vcombine.high %v6593_v4, %v7345_v49 }
 0x8e1   :  { %v6838_v15 = vrot.slane %v3287_v5, %v6385_v36  ;;  %v2887_v27 = vsel %vm2564_vm12, %v2883_v18, %v2886_v28  ;;  %v2552_v33 = vrot.slane %v2472_v62, 6  ;;  %v2666_v0 = vrot.slane %v2472_v62, 7 }
 0x8e2   :  { %7350 = vst [vmem:[#allocation34_spill] sm:$0xff] %v6820_v39  ;;  %v2779_v11 = vsel %vm2558_vm9, %v2778_v59, %v2487_v16  ;;  %v6848_v38 = vcombine.high %v6615_v55, %v7345_v49  ;;  %v6852_v13 = vcombine.high %v6683_v43, %v7345_v49  ;;  %v3305_v18 = vcombine.low %v7352_v19, %v2887_v27 }
 0x8e3   :  { %3433 = vrot.lane.b32.xlu1 %v6729_v7, %s5375_s0  ;;  %3479 = vrot.lane.b32.xlu0 %v6733_v14, %s5375_s0  ;;  %7351 = vst [vmem:[#allocation35_spill] sm:$0xff] %v6838_v15  ;;  %v2780_v51 = vsel %vm2560_vm10, %v2778_v59, %v2779_v11  ;;  %v2520_v58 = vrot.slane %v2472_v62, 4  ;;  %v3002_v34 = vrot.slane %v2552_v33, 7  ;;  %v2667_v30 = vsel %vm2558_vm9, %v2666_v0, %v2470_v40 }
 0x8e4   :  { %v2781_v44 = vsel %vm2562_vm11, %v2778_v59, %v2780_v51  ;;  %v6863_v29 = vcombine.high %v6640_v41, %v7345_v49  ;;  %v6866_v10 = vrot.slane %v3305_v18, %v6385_v36  ;;  %v2551_v16 = vrot.slane %v2470_v40, 6 }
 0x8e5   :  { %v2782_v5 = vsel %vm2564_vm12, %v2778_v59, %v2781_v44  ;;  %v2890_v62 = vrot.slane %v2520_v58, 7  ;;  %v2668_v28 = vsel %vm2560_vm10, %v2666_v0, %v2667_v30  ;;  %v6877_v27 = vcombine.high %v6660_v60, %v7345_v49  ;;  %v7354_v59 = vld [vmem:[#allocation27_spill] sm:$0xff] }
 0x8e6   :  { %7353 = vst [vmem:[#allocation25_spill] sm:$0xff] %v6866_v10  ;;  %v3003_v11 = vsel %vm2558_vm9, %v3002_v34, %v2551_v16  ;;  %v6881_v33 = vcombine.high %v6717_v46, %v7345_v49  ;;  %v3332_v51 = vcombine.low %v7354_v59, %v2782_v5  ;;  %v2519_v19 = vrot.slane %v2470_v40, 4 }
 0x8e7   :  { %3437 = vrot.lane.b32.xlu1 %v6744_v20, %s5375_s0  ;;  %3491 = vrot.lane.b32.xlu0 %v6747_v42, %s5375_s0  ;;  %v2669_v18 = vsel %vm2562_vm11, %v2666_v0, %v2668_v28  ;;  %v3004_v44 = vsel %vm2560_vm10, %v3002_v34, %v3003_v11  ;;  %v6896_v16 = vcombine.high %v6838_v15, %v7345_v49 }
 0x8e8   :  { %v2891_v58 = vsel %vm2558_vm9, %v2890_v62, %v2519_v19  ;;  %v6892_v30 = vrot.slane %v3332_v51, %v6385_v36  ;;  %v2670_v40 = vsel %vm2564_vm12, %v2666_v0, %v2669_v18  ;;  %v3005_v5 = vsel %vm2562_vm11, %v3002_v34, %v3004_v44  ;;  %v7359_v51 = vld [vmem:[#allocation26_spill] sm:$0xff] }
 0x8e9   :  { %7356 = vst [vmem:[#allocation36_spill] sm:$0xff] %v6896_v16  ;;  %v2892_v28 = vsel %vm2560_vm10, %v2890_v62, %v2891_v58  ;;  %v6907_v11 = vcombine.high %v6680_v31, %v7345_v49  ;;  %v6911_v59 = vcombine.high %v6747_v42, %v7345_v49  ;;  %v3323_v0 = vcombine.low %v7359_v51, %v2670_v40  ;;  %v7365_v51 = vld [vmem:[#allocation29_spill] sm:$0xff] }
 0x8ea   :  { %7355 = vst [vmem:[#allocation27_spill] sm:$0xff] %v6892_v30  ;;  %v3006_v19 = vsel %vm2564_vm12, %v3002_v34, %v3005_v5  ;;  %v2893_v18 = vsel %vm2562_vm11, %v2890_v62, %v2892_v28  ;;  %v6922_v44 = vcombine.high %v6696_v2, %v7345_v49  ;;  %v6938_v28 = vcombine.high %v6780_v24, %v7345_v49 }
 0x8eb   :  { %3449 = vrot.lane.b32.xlu1 %v6760_v6, %s5375_s0  ;;  %3495 = vrot.lane.b32.xlu0 %v6764_v56, %s5375_s0  ;;  %7357 = vst [vmem:[#allocation37_spill] sm:$0xff] %v6907_v11  ;;  %7358 = vst [vmem:[#allocation38_spill] sm:$0xff] %v6911_v59  ;;  %v6925_v58 = vrot.slane %v3323_v0, %v6385_v36  ;;  %v2894_v40 = vsel %vm2564_vm12, %v2890_v62, %v2893_v18  ;;  %v7379_v56 = vld [vmem:[#allocation24_spill] sm:$0xff] }
 0x8ec   :  { %7360 = vst [vmem:[#allocation26_spill] sm:$0xff] %v6922_v44  ;;  %7364 = vst [vmem:[#allocation40_spill] sm:$0xff] %v6938_v28  ;;  %v3341_v0 = vcombine.low %v7365_v51, %v2894_v40  ;;  %v6962_v51 = vcombine.high %v6777_v35, %v7345_v49 }
 0x8ed   :  { %7361 = vst [vmem:[#allocation39_spill] sm:$0xff] %v6925_v58 }
 0x8ee   :  { %7368 = vst [vmem:[#allocation42_spill] sm:$0xff] %v6962_v51 }
 0x8ef   :  { %3521 = vrot.lane.b32.xlu1 %v6777_v35, %s5375_s0  ;;  %3507 = vrot.lane.b32.xlu0 %v6780_v24, %s5375_s0 }
 0x8f3   :  { %3453 = vrot.lane.b32.xlu1 %v6790_v48, %s5375_s0  ;;  %3435 = vrot.lane.b32.xlu0 %v6794_v8, %s5375_s0 }
 0x8f7   :  { %3465 = vrot.lane.b32.xlu1 %v6806_v54, %s5375_s0  ;;  %3511 = vrot.lane.b32.xlu0 %v6810_v50, %s5375_s0 }
 0x8fb   :  { %3525 = vrot.lane.b32.xlu1 %v6820_v39, %s5375_s0  ;;  %3451 = vrot.lane.b32.xlu0 %v6824_v12, %s5375_s0 }
 0x8ff   :  { %3469 = vrot.lane.b32.xlu1 %v6835_v26, %s5375_s0  ;;  %3519 = vrot.lane.b32.xlu0 %v6838_v15, %s5375_s0 }
 0x903   :  { %3481 = vrot.lane.b32.xlu1 %v6848_v38, %s5375_s0  ;;  %3467 = vrot.lane.b32.xlu0 %v6852_v13, %s5375_s0 }
 0x907   :  { %3485 = vrot.lane.b32.xlu1 %v6863_v29, %s5375_s0  ;;  %3523 = vrot.lane.b32.xlu0 %v6866_v10, %s5375_s0 }
 0x90b   :  { %3497 = vrot.lane.b32.xlu1 %v6877_v27, %s5375_s0  ;;  %3483 = vrot.lane.b32.xlu0 %v6881_v33, %s5375_s0 }
 0x90f   :  { %3537 = vrot.lane.b32.xlu1 %v6892_v30, %s5375_s0  ;;  %3527 = vrot.lane.b32.xlu0 %v6896_v16, %s5375_s0  ;;  %v7362_v16 = vld [vmem:[#allocation28_spill] sm:$0xff] }
 0x910   :  { %v3350_v15 = vcombine.low %v7362_v16, %v3006_v19  ;;  %v6947_v16 = vcombine.high %v6714_v61, %v7345_v49 }
 0x912   :  { %v6934_v5 = vrot.slane %v3350_v15, %v6385_v36  ;;  %7366 = vst [vmem:[#allocation29_spill] sm:$0xff] %v6947_v16  ;;  %v6950_v15 = vrot.slane %v3341_v0, %v6385_v36  ;;  %v6966_v36 = vcombine.high %v6866_v10, %v7345_v49  ;;  %v6980_v0 = vcombine.high %v6925_v58, %v7345_v49 }
 0x913   :  { %3501 = vrot.lane.b32.xlu1 %v6907_v11, %s5375_s0  ;;  %3499 = vrot.lane.b32.xlu0 %v6911_v59, %s5375_s0 }
 0x914   :  { %7363 = vst [vmem:[#allocation28_spill] sm:$0xff] %v6934_v5  ;;  %7367 = vst [vmem:[#allocation41_spill] sm:$0xff] %v6950_v15 }
 0x915   :  { %7369 = vst [vmem:[#allocation43_spill] sm:$0xff] %v6966_v36  ;;  %7371 = vst [vmem:[#allocation45_spill] sm:$0xff] %v6980_v0 }
 0x917   :  { %3513 = vrot.lane.b32.xlu1 %v6922_v44, %s5375_s0  ;;  %3535 = vrot.lane.b32.xlu0 %v6925_v58, %s5375_s0 }
 0x91b   :  { %3541 = vrot.lane.b32.xlu1 %v6934_v5, %s5375_s0  ;;  %3515 = vrot.lane.b32.xlu0 %v6938_v28, %s5375_s0 }
 0x91c   :  { %v3424_v34 = vpop.permute.xlu0 %3423 }
 0x91d   :  { %v3615_v19 = vmax.f32 %v6397_v57, %v3424_v34  ;;  %v6976_v34 = vcombine.high %v6820_v39, %v7345_v49 }
 0x91e   :  { %v3426_v62 = vpop.permute.xlu1 %3425 }
 0x91f   :  { %v3616_v18 = vmax.f32 %v6420_v25, %v3426_v62  ;;  %3517 = vrot.lane.b32.xlu1 %v6947_v16, %s5375_s0  ;;  %3539 = vrot.lane.b32.xlu0 %v6950_v15, %s5375_s0  ;;  %7370 = vst [vmem:[#allocation44_spill] sm:$0xff] %v6976_v34  ;;  %v6988_v62 = vcombine.high %v6892_v30, %v7345_v49 }
 0x920   :  { %v3440_v50 = vpop.permute.xlu0 %3439  ;;  %v7004_v30 = vcombine.high %v6934_v5, %v7345_v49 }
 0x921   :  { %v6958_v40 = vcombine.low %v3615_v19, %v3616_v18  ;;  %7372 = vst [vmem:[#allocation46_spill] sm:$0xff] %v6988_v62  ;;  %v6992_v19 = vcombine.high %v6950_v15, %v7345_v49  ;;  %v3623_v35 = vmax.f32 %v6423_v23, %v3440_v50  ;;  %v3679_v15 = vld [vmem:[%s7304_s7] sm:$0xff] }
 0x922   :  { %7374 = vst [vmem:[#allocation48_spill] sm:$0xff] %v7004_v30  ;;  %4592 = vmatprep.mubr.msk.f32.mxu1 %vm231_vm2, %v3679_v15 }
 0x923   :  { %3529 = vrot.lane.b32.xlu1 %v6962_v51, %s5375_s0  ;;  %3531 = vrot.lane.b32.xlu0 %v6966_v36, %s5375_s0  ;;  %v6972_v57 = vpop.permute.xlu1 %3429  ;;  %7373 = vst [vmem:[#allocation47_spill] sm:$0xff] %v6992_v19 }
 0x924   :  { %v3456_v25 = vpop.permute.xlu0 %3455 }
 0x927   :  { %3533 = vrot.lane.b32.xlu1 %v6976_v34, %s5375_s0  ;;  %3543 = vrot.lane.b32.xlu0 %v6980_v0, %s5375_s0 }
 0x929   :  { %v3442_v18 = vpop.permute.xlu1 %3441  ;;  %v3472_v36 = vpop.permute.xlu0 %3471 }
 0x92a   :  { %v3624_v58 = vmax.f32 %v6493_v22, %v3442_v18  ;;  %v3639_v15 = vmax.f32 %v6496_v53, %v3472_v36 }
 0x92b   :  { %3545 = vrot.lane.b32.xlu1 %v6988_v62, %s5375_s0  ;;  %3547 = vrot.lane.b32.xlu0 %v6992_v19, %s5375_s0 }
 0x92c   :  { %v7000_v0 = vcombine.low %v3623_v35, %v3624_v58  ;;  %v3631_v35 = vmax.f32 %v6456_v1, %v3456_v25 }
 0x92f   :  { %3549 = vrot.lane.b32.xlu1 %v7004_v30, %s5375_s0  ;;  %v7012_v23 = vpop.permute.xlu1 %3445  ;;  %v3488_v22 = vpop.permute.xlu0 %3487 }
 0x935   :  { %v3458_v50 = vpop.permute.xlu1 %3457  ;;  %v3504_v18 = vpop.permute.xlu0 %3503 }
 0x936   :  { %v3632_v58 = vmax.f32 %v6564_v3, %v3458_v50  ;;  %v3647_v3 = vmax.f32 %v6531_v21, %v3488_v22 }
 0x938   :  { %v7016_v49 = vcombine.low %v3631_v35, %v3632_v58 }
 0x939   :  { %v7018_v19 = vpop.permute.xlu1 %3461  ;;  %v3428_v62 = vpop.permute.xlu0 %3427 }
 0x93a   :  { %v3617_v44 = vmax.f32 %v6596_v63, %v3428_v62 }
 0x93d   :  { %v3474_v5 = vpop.permute.xlu1 %3473  ;;  %v3432_v34 = vpop.permute.xlu0 %3431 }
 0x93e   :  { %v3640_v30 = vmax.f32 %v6615_v55, %v3474_v5  ;;  %v3655_v55 = vmax.f32 %v6567_v17, %v3504_v18  ;;  %v3619_v59 = vmax.f32 %v6619_v9, %v3432_v34  ;;  %v3759_v9 = vrot.slane %v6958_v40, %v7379_v56 }
 0x940   :  { %v7022_v51 = vcombine.low %v3639_v15, %v3640_v30 }
 0x941   :  { %v7024_v39 = vpop.permute.xlu1 %3477  ;;  %v3444_v10 = vpop.permute.xlu0 %3443 }
 0x945   :  { %v3490_v16 = vpop.permute.xlu1 %3489  ;;  %v3448_v1 = vpop.permute.xlu0 %3447 }
 0x946   :  { %v3648_v25 = vmax.f32 %v6660_v60, %v3490_v16 }
 0x948   :  { %v7028_v50 = vcombine.low %v3647_v3, %v3648_v25 }
 0x949   :  { %v7030_v35 = vpop.permute.xlu1 %3493  ;;  %v7032_v58 = vpop.permute.xlu0 %3459 }
 0x94a   :  { %7375 = vst [vmem:[#allocation49_spill] sm:$0xff] %v7028_v50  ;;  %7376 = vst [vmem:[#allocation50_spill] sm:$0xff] %v7030_v35 }
 0x94d   :  { %v3506_v53 = vpop.permute.xlu1 %3505  ;;  %v7034_v36 = vpop.permute.xlu0 %3463 }
 0x94e   :  { %v3656_v30 = vmax.f32 %v6696_v2, %v3506_v53  ;;  %v3618_v2 = vmax.f32 %v6453_v52, %v6972_v57 }
 0x950   :  { %v3921_v5 = vcombine.low %v3655_v55, %v3656_v30  ;;  %v3752_v30 = vcombine.low %v3617_v44, %v3618_v2 }
 0x951   :  { %v3510_v15 = vpop.permute.xlu1 %3509  ;;  %v7038_v28 = vpop.permute.xlu0 %3475 }
 0x952   :  { %v3658_v18 = vmax.f32 %v6714_v61, %v3510_v15  ;;  %v3766_v61 = vrot.slane %v3752_v30, %v7379_v56  ;;  %v3683_v15 = vld [vmem:[%s7304_s7 + $0x20] sm:$0xff] }
 0x955   :  { %v3434_v21 = vpop.permute.xlu1 %3433  ;;  %v7040_v22 = vpop.permute.xlu0 %3479 }
 0x956   :  { %v3620_v53 = vmax.f32 %v6729_v7, %v3434_v21  ;;  %v3625_v7 = vmax.f32 %v6643_v47, %v3444_v10  ;;  %v3627_v10 = vmax.f32 %v6664_v45, %v3448_v1  ;;  %v3633_v45 = vmax.f32 %v6683_v43, %v7032_v58 }
 0x958   :  { %v3768_v62 = vcombine.low %v3619_v59, %v3620_v53 }
 0x959   :  { %v3438_v60 = vpop.permute.xlu1 %3437  ;;  %v7042_v16 = vpop.permute.xlu0 %3491 }
 0x95d   :  { %v3450_v3 = vpop.permute.xlu1 %3449  ;;  %v7044_v25 = vpop.permute.xlu0 %3495 }
 0x95e   :  { %7377 = vst [vmem:[#allocation51_spill] sm:$0xff] %v7044_v25  ;;  %v3929_v25 = vrot.slane %v3921_v5, %v7379_v56  ;;  %v3767_v5 = vcombine.low %v3759_v9, %v3766_v61 }
 0x961   :  { %v7047_v50 = vpop.permute.xlu1 %3521  ;;  %v3508_v17 = vpop.permute.xlu0 %3507 }
 0x962   :  { %7378 = vst [vmem:[#allocation52_spill] sm:$0xff] %v7047_v50  ;;  %v3657_v55 = vmax.f32 %v6780_v24, %v3508_v17  ;;  %v3622_v50 = vmax.f32 %v6744_v20, %v3438_v60  ;;  %v3626_v20 = vmax.f32 %v6528_v32, %v7012_v23 }
 0x964   :  { %v3922_v11 = vcombine.low %v3657_v55, %v3658_v18  ;;  %v3786_v47 = vcombine.low %v3625_v7, %v3626_v20 }
 0x965   :  { %v3454_v31 = vpop.permute.xlu1 %3453  ;;  %v3436_v63 = vpop.permute.xlu0 %3435 }
 0x966   :  { %v3936_v35 = vrot.slane %v3922_v11, %v7379_v56  ;;  %v3621_v52 = vmax.f32 %v6794_v8, %v3436_v63  ;;  %v3776_v11 = vrot.slane %v3768_v62, %v7379_v56  ;;  %v3628_v8 = vmax.f32 %v6760_v6, %v3450_v3 }
 0x967   :  { %v3630_v23 = vmax.f32 %v6790_v48, %v3454_v31  ;;  %v3800_v60 = vrot.slane %v3786_v47, %v7379_v56  ;;  %v3793_v3 = vrot.slane %v7000_v0, %v7379_v56  ;;  %v3634_v31 = vmax.f32 %v6593_v4, %v7018_v19 }
 0x968   :  { %v7061_v24 = vcombine.low %v3929_v25, %v3936_v35  ;;  %v3769_v44 = vcombine.low %v3621_v52, %v3622_v50  ;;  %v3802_v32 = vcombine.low %v3627_v10, %v3628_v8  ;;  %v3635_v0 = vmax.f32 %v6700_v37, %v7034_v36 }
 0x969   :  { %v3466_v57 = vpop.permute.xlu1 %3465  ;;  %v7065_v34 = vpop.permute.xlu0 %3511  ;;  %v3801_v58 = vcombine.low %v3793_v3, %v3800_v60  ;;  %v3820_v2 = vcombine.low %v3633_v45, %v3634_v31  ;;  %v3827_v37 = vrot.slane %v7016_v49, %v7379_v56  ;;  %v3643_v49 = vmax.f32 %v6733_v14, %v7040_v22  ;;  %v7387_v31 = vld [vmem:[#allocation38_spill] sm:$0xff] }
 0x96a   :  { %v3783_v59 = vrot.slane %v3769_v44, %v7379_v56  ;;  %v3810_v48 = vrot.slane %v3802_v32, %v7379_v56  ;;  %v3636_v43 = vmax.f32 %v6806_v54, %v3466_v57  ;;  %v3641_v54 = vmax.f32 %v6717_v46, %v7038_v28 }
 0x96b   :  { %v3834_v19 = vrot.slane %v3820_v2, %v7379_v56 }
 0x96c   :  { %v3784_v50 = vcombine.low %v3776_v11, %v3783_v59  ;;  %v3836_v30 = vcombine.low %v3635_v0, %v3636_v43 }
 0x96d   :  { %v7073_v35 = vpop.permute.xlu1 %3525  ;;  %v3452_v40 = vpop.permute.xlu0 %3451  ;;  %v3835_v7 = vcombine.low %v3827_v37, %v3834_v19  ;;  %v7389_v19 = vld [vmem:[#allocation26_spill] sm:$0xff]  ;;  %v7390_v37 = vld [vmem:[#allocation33_spill] sm:$0xff] }
 0x96e   :  { %v3629_v6 = vmax.f32 %v6824_v12, %v3452_v40  ;;  %v5075_v21 = vpack.c.bf16 %v3784_v50, %v3767_v5  ;;  %v7382_v50 = vld [vmem:[#allocation50_spill] sm:$0xff] }
 0x96f   :  { %v7383_v40 = vld [vmem:[#allocation30_spill] sm:$0xff] }
 0x970   :  { %v3803_v1 = vcombine.low %v3629_v6, %v3630_v23  ;;  %5077 = vmatprep.subr.msk.bf16.mxu1 %vm7077_vm13, %v5075_v21  ;;  %v3650_v32 = vmax.f32 %v7383_v40, %v7382_v50 }
 0x971   :  { %v3470_v25 = vpop.permute.xlu1 %3469  ;;  %v7090_v17 = vpop.permute.xlu0 %3519  ;;  %5080 = vmatpush3.bf16.xpose.msk.msra.mxu1 %vm7077_vm13, %v5075_v21 }
 0x972   :  { %v3817_v12 = vrot.slane %v3803_v1, %v7379_v56  ;;  %v3638_v63 = vmax.f32 %v6835_v26, %v3470_v25  ;;  %v3642_v26 = vmax.f32 %v6640_v41, %v7024_v39  ;;  %v7386_v25 = vld [vmem:[#allocation37_spill] sm:$0xff] }
 0x974   :  { %v3818_v18 = vcombine.low %v3810_v48, %v3817_v12  ;;  %v3854_v44 = vcombine.low %v3641_v54, %v3642_v26 }
 0x975   :  { %v3482_v53 = vpop.permute.xlu1 %3481  ;;  %v3468_v55 = vpop.permute.xlu0 %3467 }
 0x976   :  { %v3637_v62 = vmax.f32 %v6852_v13, %v3468_v55  ;;  %v5081_v4 = vpack.c.bf16 %v3818_v18, %v3801_v58  ;;  %v3844_v13 = vrot.slane %v3836_v30, %v7379_v56  ;;  %v3644_v46 = vmax.f32 %v6848_v38, %v3482_v53  ;;  %v7388_v53 = vld [vmem:[#allocation49_spill] sm:$0xff] }
 0x977   :  { %v3868_v39 = vrot.slane %v3854_v44, %v7379_v56  ;;  %v3649_v38 = vmax.f32 %v6747_v42, %v7042_v16  ;;  %v7384_v42 = vld [vmem:[#allocation51_spill] sm:$0xff]  ;;  %v3895_v55 = vrot.slane %v7388_v53, %v7379_v56  ;;  %v7392_v44 = vld [vmem:[#allocation29_spill] sm:$0xff] }
 0x978   :  { %v3837_v52 = vcombine.low %v3637_v62, %v3638_v63  ;;  %5083 = vmatprep.subr.msk.bf16.mxu1 %vm7077_vm13, %v5081_v4  ;;  %v3870_v11 = vcombine.low %v3643_v49, %v3644_v46  ;;  %v7385_v16 = vld [vmem:[#allocation31_spill] sm:$0xff] }
 0x979   :  { %v3486_v36 = vpop.permute.xlu1 %3485  ;;  %v7110_v61 = vpop.permute.xlu0 %3523  ;;  %5086 = vmatpush3.bf16.xpose.msk.msra.mxu1 %vm7077_vm13, %v5081_v4  ;;  %v3651_v6 = vmax.f32 %v7385_v16, %v7384_v42  ;;  %v3888_v60 = vcombine.low %v3649_v38, %v3650_v32 }
 0x97a   :  { %v3851_v28 = vrot.slane %v3837_v52, %v7379_v56  ;;  %v3646_v8 = vmax.f32 %v6863_v29, %v3486_v36  ;;  %v3861_v29 = vrot.slane %v7022_v51, %v7379_v56  ;;  %v3659_v36 = vmax.f32 %v7390_v37, %v7065_v34 }
 0x97b   :  { %v3902_v12 = vrot.slane %v3888_v60, %v7379_v56 }
 0x97c   :  { %v3852_v9 = vcombine.low %v3844_v13, %v3851_v28  ;;  %v3869_v23 = vcombine.low %v3861_v29, %v3868_v39  ;;  %v7391_v28 = vld [vmem:[#allocation40_spill] sm:$0xff]  ;;  %v7396_v29 = vld [vmem:[#allocation42_spill] sm:$0xff] }
 0x97d   :  { %v3498_v57 = vpop.permute.xlu1 %3497  ;;  %v3484_v20 = vpop.permute.xlu0 %3483  ;;  %v3903_v63 = vcombine.low %v3895_v55, %v3902_v12  ;;  %v7404_v12 = vld [vmem:[#allocation28_spill] sm:$0xff]  ;;  %v7406_v55 = vld [vmem:[#allocation27_spill] sm:$0xff] }
 0x97e   :  { %v3645_v59 = vmax.f32 %v6881_v33, %v3484_v20  ;;  %v5087_v41 = vpack.c.bf16 %v3852_v9, %v3835_v7  ;;  %v3878_v33 = vrot.slane %v3870_v11, %v7379_v56  ;;  %v3652_v22 = vmax.f32 %v6877_v27, %v3498_v57  ;;  %v7393_v9 = vld [vmem:[#allocation25_spill] sm:$0xff]  ;;  %v7394_v11 = vld [vmem:[#allocation35_spill] sm:$0xff] }
 0x97f   :  { %v3665_v57 = vmax.f32 %v7393_v9, %v7110_v61  ;;  %v3663_v34 = vmax.f32 %v7394_v11, %v7090_v17  ;;  %v7399_v61 = vld [vmem:[#allocation36_spill] sm:$0xff] }
 0x980   :  { %v3871_v5 = vcombine.low %v3645_v59, %v3646_v8  ;;  %5089 = vmatprep.subr.msk.bf16.mxu1 %vm7077_vm13, %v5087_v41  ;;  %v3904_v3 = vcombine.low %v3651_v6, %v3652_v22  ;;  %v7397_v22 = vld [vmem:[#allocation52_spill] sm:$0xff] }
 0x981   :  { %v7128_v47 = vpop.permute.xlu1 %3537  ;;  %v3528_v14 = vpop.permute.xlu0 %3527  ;;  %5092 = vmatpush3.bf16.xpose.msk.msra.mxu1 %vm7077_vm13, %v5087_v41  ;;  %v7395_v41 = vld [vmem:[#allocation34_spill] sm:$0xff] }
 0x982   :  { %v3885_v10 = vrot.slane %v3871_v5, %v7379_v56  ;;  %v3912_v0 = vrot.slane %v3904_v3, %v7379_v56  ;;  %v3666_v39 = vmax.f32 %v7395_v41, %v7073_v35  ;;  %v3667_v32 = vmax.f32 %v7399_v61, %v3528_v14  ;;  %v7401_v35 = vld [vmem:[#allocation44_spill] sm:$0xff]  ;;  %v3684_v41 = vld [vmem:[%s7304_s7 + $0x28] sm:$0xff] }
 0x984   :  { %v3886_v21 = vcombine.low %v3878_v33, %v3885_v10  ;;  %v7398_v10 = vld [vmem:[#allocation32_spill] sm:$0xff]  ;;  %v3956_v40 = vcombine.low %v3665_v57, %v3666_v39 }
 0x985   :  { %v3502_v45 = vpop.permute.xlu1 %3501  ;;  %v3500_v1 = vpop.permute.xlu0 %3499  ;;  %v3664_v50 = vmax.f32 %v7398_v10, %v7397_v22  ;;  %v3685_v39 = vld [vmem:[%s7304_s7 + $0x30] sm:$0xff] }
 0x986   :  { %v3654_v51 = vmax.f32 %v7386_v25, %v3502_v45  ;;  %v3653_v48 = vmax.f32 %v7387_v31, %v3500_v1  ;;  %v5093_v43 = vpack.c.bf16 %v3886_v21, %v3869_v23  ;;  %v7400_v21 = vld [vmem:[#allocation43_spill] sm:$0xff]  ;;  %v3970_v3 = vrot.slane %v3956_v40, %v7379_v56  ;;  %v7402_v25 = vld [vmem:[#allocation41_spill] sm:$0xff] }
 0x987   :  { %v3955_v42 = vcombine.low %v3663_v34, %v3664_v50 }
 0x988   :  { %v3905_v27 = vcombine.low %v3653_v48, %v3654_v51  ;;  %5095 = vmatprep.subr.msk.bf16.mxu1 %vm7077_vm13, %v5093_v43  ;;  %v7403_v48 = vld [vmem:[#allocation39_spill] sm:$0xff] }
 0x989   :  { %v3514_v58 = vpop.permute.xlu1 %3513  ;;  %v3536_v2 = vpop.permute.xlu0 %3535  ;;  %5098 = vmatpush3.bf16.xpose.msk.msra.mxu1 %vm7077_vm13, %v5093_v43  ;;  %v3963_v14 = vrot.slane %v3955_v42, %v7379_v56 }
 0x98a   :  { %v3919_v18 = vrot.slane %v3905_v27, %v7379_v56  ;;  %v3660_v54 = vmax.f32 %v7389_v19, %v3514_v58  ;;  %v3671_v43 = vmax.f32 %v7403_v48, %v3536_v2  ;;  %v7407_v2 = vld [vmem:[#allocation45_spill] sm:$0xff] }
 0x98c   :  { %v3920_v30 = vcombine.low %v3912_v0, %v3919_v18  ;;  %v3938_v46 = vcombine.low %v3659_v36, %v3660_v54  ;;  %v7405_v18 = vld [vmem:[#allocation46_spill] sm:$0xff] }
 0x98d   :  { %v3542_v62 = vpop.permute.xlu1 %3541  ;;  %v3516_v4 = vpop.permute.xlu0 %3515 }
 0x98e   :  { %v5099_v52 = vpack.c.bf16 %v3920_v30, %v3903_v63  ;;  %v3661_v7 = vmax.f32 %v7391_v28, %v3516_v4  ;;  %v3946_v5 = vrot.slane %v3938_v46, %v7379_v56  ;;  %v3674_v58 = vmax.f32 %v7404_v12, %v3542_v62  ;;  %v7409_v46 = vld [vmem:[#allocation48_spill] sm:$0xff] }
 0x98f   :  { %v3672_v30 = vmax.f32 %v7406_v55, %v7128_v47  ;;  %v3971_v4 = vcombine.low %v3963_v14, %v3970_v3 }
 0x990   :  { %5101 = vmatprep.subr.msk.bf16.mxu1 %vm7077_vm13, %v5099_v52 }
 0x991   :  { %v3518_v26 = vpop.permute.xlu1 %3517  ;;  %v3540_v13 = vpop.permute.xlu0 %3539  ;;  %5104 = vmatpush3.bf16.xpose.msk.msra.mxu1 %vm7077_vm13, %v5099_v52  ;;  %v3989_v37 = vcombine.low %v3671_v43, %v3672_v30 }
 0x992   :  { %v3662_v49 = vmax.f32 %v7392_v44, %v3518_v26  ;;  %v3673_v51 = vmax.f32 %v7402_v25, %v3540_v13  ;;  %v7408_v13 = vld [vmem:[#allocation47_spill] sm:$0xff] }
 0x993   :  { %v3997_v47 = vrot.slane %v3989_v37, %v7379_v56 }
 0x994   :  { %v3939_v20 = vcombine.low %v3661_v7, %v3662_v49  ;;  %v3990_v19 = vcombine.low %v3673_v51, %v3674_v58 }
 0x995   :  { %v3530_v8 = vpop.permute.xlu1 %3529  ;;  %v3532_v59 = vpop.permute.xlu0 %3531 }
 0x996   :  { %v3953_v38 = vrot.slane %v3939_v20, %v7379_v56  ;;  %v3668_v33 = vmax.f32 %v7396_v29, %v3530_v8  ;;  %v3669_v60 = vmax.f32 %v7400_v21, %v3532_v59  ;;  %v4004_v44 = vrot.slane %v3990_v19, %v7379_v56  ;;  %v3680_v8 = vld [vmem:[%s7304_s7 + $0x8] sm:$0xff]  ;;  %v3681_v59 = vld [vmem:[%s7304_s7 + $0x10] sm:$0xff] }
 0x998   :  { %v3954_v23 = vcombine.low %v3946_v5, %v3953_v38  ;;  %v3972_v6 = vcombine.low %v3667_v32, %v3668_v33  ;;  %v4005_v20 = vcombine.low %v3997_v47, %v4004_v44  ;;  %v3686_v5 = vld [vmem:[%s7304_s7 + $0x38] sm:$0xff] }
 0x999   :  { %v3534_v17 = vpop.permute.xlu1 %3533  ;;  %v3544_v16 = vpop.permute.xlu0 %3543 }
 0x99a   :  { %v3670_v45 = vmax.f32 %v7401_v35, %v3534_v17  ;;  %v5105_v1 = vpack.c.bf16 %v3954_v23, %v7061_v24  ;;  %v3980_v24 = vrot.slane %v3972_v6, %v7379_v56  ;;  %v3675_v52 = vmax.f32 %v7407_v2, %v3544_v16 }
 0x99b   :  { %v5382_v35 = vmov 0  }
 0x99c   :  { %v3973_v31 = vcombine.low %v3669_v60, %v3670_v45  ;;  %5107 = vmatprep.subr.msk.bf16.mxu1 %vm7077_vm13, %v5105_v1  ;;  %5189 = vset.pattern.permute.xlu1 %v5382_v35 }
 0x99d   :  { %5110 = vmatpush3.bf16.xpose.msk.msra.mxu1 %vm7077_vm13, %v5105_v1  ;;  %v3546_v27 = vpop.permute.xlu1 %3545  ;;  %v3548_v63 = vpop.permute.xlu0 %3547  ;;  %5190 = vset.pattern.permute.xlu0 %v5382_v35 }
 0x99e   :  { %v3987_v0 = vrot.slane %v3973_v31, %v7379_v56  ;;  %v3676_v53 = vmax.f32 %v7405_v18, %v3546_v27  ;;  %v3677_v62 = vmax.f32 %v7408_v13, %v3548_v63 }
 0x9a0   :  { %v3988_v54 = vcombine.low %v3980_v24, %v3987_v0  ;;  %v4006_v26 = vcombine.low %v3675_v52, %v3676_v53 }
 0x9a1   :  { %v3550_v36 = vpop.permute.xlu1 %3549 }
 0x9a2   :  { %v3678_v28 = vmax.f32 %v7409_v46, %v3550_v36  ;;  %v5111_v7 = vpack.c.bf16 %v3988_v54, %v3971_v4  ;;  %v4014_v9 = vrot.slane %v4006_v26, %v7379_v56 }
 0x9a4   :  { %v4007_v49 = vcombine.low %v3677_v62, %v3678_v28  ;;  %5113 = vmatprep.subr.msk.bf16.mxu1 %vm7077_vm13, %v5111_v7 }
 0x9a5   :  { %5116 = vmatpush3.bf16.xpose.msk.msra.mxu1 %vm7077_vm13, %v5111_v7 }
 0x9a6   :  { %v4021_v57 = vrot.slane %v4007_v49, %v7379_v56  ;;  %v3682_v56 = vld [vmem:[%s7304_s7 + $0x18] sm:$0xff] }
 0x9a8   :  { %v4022_v11 = vcombine.low %v4014_v9, %v4021_v57 }
 0x9aa   :  { %v5117_v34 = vpack.c.bf16 %v4022_v11, %v4005_v20 }
 0x9ac   :  { %5119 = vmatprep.subr.msk.bf16.mxu1 %vm7077_vm13, %v5117_v34 }
 0x9ad   :  { %5122 = vmatpush3.bf16.xpose.msk.msra.mxu1 %vm7077_vm13, %v5117_v34 }
 0x9b4   :  { %4593 = vmatmul.mubr.msk.f32.vlgmr.msra.gmra.mrb[16].mxu1 %vm231_vm2, %v3680_v8  ;;  %v4246_v8 = vld [vmem:[%s7305_s8] sm:$0xff] }
 0x9b5   :  { %4595 = vmatprep.mubr.msk.f32.mxu1 %vm231_vm2, %v3681_v59 }
 0x9b8   :  { %4596 = vmatmul.mubr.msk.f32.gmra.mrb[18].mxu1 %vm231_vm2, %v3682_v56 }
 0x9b9   :  { %4598 = vmatprep.mubr.msk.f32.mxu1 %vm231_vm2, %v3683_v15  ;;  %v4254_v15 = vld [vmem:[%s7306_s9] sm:$0xff] }
 0x9bc   :  { %4599 = vmatmul.mubr.msk.f32.gmra.mrb[20].mxu1 %vm231_vm2, %v3684_v41 }
 0x9bd   :  { %4601 = vmatprep.mubr.msk.f32.mxu1 %vm231_vm2, %v3685_v39 }
 0x9c0   :  { %4602 = vmatmul.mubr.msk.f32.gmra.mrb[22].mxu1 %vm231_vm2, %v3686_v5  ;;  %v4247_v5 = vld [vmem:[%s7305_s8 + $0x8] sm:$0xff]  ;;  %vm5384_vm2 = vmmov 0  }
 0xa87   :  { %v7233_v38 = vpop.f32.mrb[16].mxu1 }
 0xa88   :  { %4186 = vadd.xlane.f32.xlu1 %v7233_v38  ;;  %v7236_v29 = vpop.f32.mrb[17].mxu1  ;;  %v4201_v10 = vmul.f32 %v7233_v38, %v7233_v38 }
 0xa89   :  { %4184 = vadd.xlane.f32.xlu0 %v7236_v29  ;;  %v4200_v33 = vmul.f32 %v7236_v29, %v7236_v29 }
 0xa8b   :  { %v7241_v22 = vpop.f32.mrb[18].mxu1 }
 0xa8c   :  { %4208 = vadd.xlane.f32.xlu1 %v4200_v33  ;;  %v7245_v50 = vpop.f32.mrb[19].mxu1  ;;  %v4203_v16 = vmul.f32 %v7241_v22, %v7241_v22 }
 0xa8d   :  { %4210 = vadd.xlane.f32.xlu0 %v4201_v10  ;;  %v4202_v40 = vmul.f32 %v7245_v50, %v7245_v50 }
 0xa8f   :  { %v7249_v61 = vpop.f32.mrb[20].mxu1 }
 0xa90   :  { %4212 = vadd.xlane.f32.xlu1 %v4202_v40  ;;  %v7251_v32 = vpop.f32.mrb[21].mxu1  ;;  %v4205_v21 = vmul.f32 %v7249_v61, %v7249_v61  ;;  %v4255_v40 = vld [vmem:[%s7306_s9 + $0x8] sm:$0xff] }
 0xa91   :  { %4190 = vadd.xlane.f32.xlu0 %v7241_v22  ;;  %v4204_v42 = vmul.f32 %v7251_v32, %v7251_v32 }
 0xa93   :  { %v7254_v23 = vpop.f32.mrb[22].mxu1 }
 0xa94   :  { %4192 = vadd.xlane.f32.xlu1 %v7251_v32  ;;  %v7259_v17 = vpop.f32.mrb[23].mxu1  ;;  %v4207_v60 = vmul.f32 %v7254_v23, %v7254_v23 }
 0xa95   :  { %4188 = vadd.xlane.f32.xlu0 %v7245_v50  ;;  %v4206_v6 = vmul.f32 %v7259_v17, %v7259_v17 }
 0xa98   :  { %4216 = vadd.xlane.f32.xlu1 %v4204_v42 }
 0xa99   :  { %4214 = vadd.xlane.f32.xlu0 %v4203_v16 }
 0xa9c   :  { %4196 = vadd.xlane.f32.xlu1 %v7259_v17 }
 0xa9d   :  { %4194 = vadd.xlane.f32.xlu0 %v7249_v61 }
 0xaa0   :  { %4220 = vadd.xlane.f32.xlu1 %v4206_v6  ;;  %v4480_v6 = vld [vmem:[#allocation4] ss:$0 sm:$0xff] }
 0xaa1   :  { %4218 = vadd.xlane.f32.xlu0 %v4205_v21  ;;  %v5383_v21 = vmov 0.0|0.0  }
 0xaa2   :  { %5123 = vmatprep.subr.bf16.mxu0 %v5383_v21 }
 0xaa5   :  { %4198 = vadd.xlane.f32.xlu0 %v7254_v23 }
 0xaa9   :  { %4222 = vadd.xlane.f32.xlu0 %v4207_v60  ;;  %v7410_v60 = vmov 0.0  }
 0xaaa   :  { %4620 = vmatprep.mubr.msk.f32.mxu0 %vm5384_vm2, %v7410_v60 }
 0xb15   :  { %v4187_v45 = vpop.xlane.xlu1 %4186 }
 0xb16   :  { %v4185_v1 = vpop.xlane.xlu0 %4184 }
 0xb19   :  { %v4209_v3 = vpop.xlane.xlu1 %4208 }
 0xb1a   :  { %v4211_v25 = vpop.xlane.xlu0 %4210 }
 0xb1d   :  { %v4213_v51 = vpop.xlane.xlu1 %4212 }
 0xb1e   :  { %v4191_v31 = vpop.xlane.xlu0 %4190  ;;  %v4232_v0 = vadd.f32 %v4213_v51, %v4209_v3 }
 0xb1f   :  { %v4225_v54 = vadd.f32 %v4191_v31, %v4187_v45 }
 0xb21   :  { %v4193_v14 = vpop.xlane.xlu1 %4192 }
 0xb22   :  { %v4189_v48 = vpop.xlane.xlu0 %4188 }
 0xb23   :  { %v4224_v43 = vadd.f32 %v4189_v48, %v4185_v1 }
 0xb25   :  { %v4217_v27 = vpop.xlane.xlu1 %4216  ;;  %v4226_v58 = vadd.f32 %v4224_v43, %v4193_v14 }
 0xb26   :  { %v4215_v12 = vpop.xlane.xlu0 %4214  ;;  %v4234_v55 = vadd.f32 %v4232_v0, %v4217_v27 }
 0xb27   :  { %v4233_v13 = vadd.f32 %v4215_v12, %v4211_v25 }
 0xb29   :  { %v4197_v24 = vpop.xlane.xlu1 %4196 }
 0xb2a   :  { %v4228_v18 = vadd.f32 %v4226_v58, %v4197_v24  ;;  %v4195_v53 = vpop.xlane.xlu0 %4194 }
 0xb2b   :  { %v4227_v37 = vadd.f32 %v4225_v54, %v4195_v53 }
 0xb2c   :  { %v4230_v30 = vmul.f32 0.001953125, %v4228_v18 }
 0xb2d   :  { %v4221_v63 = vpop.xlane.xlu1 %4220 }
 0xb2e   :  { %v4236_v4 = vadd.f32 %v4234_v55, %v4221_v63  ;;  %v4219_v19 = vpop.xlane.xlu0 %4218  ;;  %v4240_v2 = vmul.f32 %v4230_v30, %v4230_v30 }
 0xb2f   :  { %v4235_v28 = vadd.f32 %v4233_v13, %v4219_v19 }
 0xb30   :  { %v4238_v52 = vmul.f32 0.001953125, %v4236_v4 }
 0xb32   :  { %v4242_v36 = vsub.f32 %v4238_v52, %v4240_v2  ;;  %v4199_v26 = vpop.xlane.xlu0 %4198 }
 0xb33   :  { %v4229_v62 = vadd.f32 %v4227_v37, %v4199_v26 }
 0xb34   :  { %v4244_v46 = vmax.f32 %v4242_v36, 0.0 }
 0xb35   :  { %v4231_v7 = vmul.f32 0.001953125, %v4229_v62 }
 0xb36   :  { %v4248_v44 = vadd.f32 1e-05, %v4244_v46  ;;  %v4223_v49 = vpop.xlane.xlu0 %4222 }
 0xb37   :  { %v4237_v47 = vadd.f32 %v4235_v28, %v4223_v49  ;;  %v4241_v9 = vmul.f32 %v4231_v7, %v4231_v7 }
 0xb38   :  { %5195 = vrsqrt.f32 %v4248_v44 }
 0xb39   :  { %v4239_v57 = vmul.f32 0.001953125, %v4237_v47 }
 0xb3b   :  { %v4243_v20 = vsub.f32 %v4239_v57, %v4241_v9 }
 0xb3d   :  { %v4245_v11 = vmax.f32 %v4243_v20, 0.0 }
 0xb3f   :  { %v4249_v34 = vadd.f32 1e-05, %v4245_v11 }
 0xb41   :  { %5197 = vrsqrt.f32 %v4249_v34 }
 0xb42   :  { %v5196_v59 = vpop.eup %5195 }
 0xb43   :  { %v4252_v56 = vmul.f32 %v5196_v59, %v4246_v8 }
 0xb45   :  { %4262 = vperm.xlu1 %5189, %v4252_v56   ;;  %v4256_v41 = vmul.f32 %v4252_v56, %v4230_v30 }
 0xb47   :  { %v4258_v39 = vsub.f32 %v4254_v15, %v4256_v41 }
 0xb49   :  { %4280 = vperm.xlu1 %5189, %v4258_v39  }
 0xb4b   :  { %v5198_v33 = vpop.eup %5197 }
 0xb4c   :  { %v4253_v10 = vmul.f32 %v5198_v33, %v4247_v5 }
 0xb4e   :  { %4267 = vperm.xlu0 %5190, %v4253_v10   ;;  %v4257_v42 = vmul.f32 %v4253_v10, %v4231_v7 }
 0xb50   :  { %v4259_v16 = vsub.f32 %v4255_v40, %v4257_v42 }
 0xb52   :  { %4285 = vperm.xlu1 %5189, %v4259_v16  }
 0xb56   :  { %4312 = vperm.xlu1 %5189, %v4480_v6  }
 0xbc4   :  { %v4263_v35 = vpop.permute.xlu1 %4262 }
 0xbc5   :  { %v4270_v1 = vmul.f32 %v4263_v35, %v7236_v29  ;;  %v4272_v3 = vmul.f32 %v4263_v35, %v7245_v50  ;;  %v4274_v25 = vmul.f32 %v4263_v35, %v7251_v32  ;;  %v4276_v51 = vmul.f32 %v4263_v35, %v7259_v17 }
 0xbc8   :  { %v4281_v45 = vpop.permute.xlu1 %4280 }
 0xbc9   :  { %v4288_v14 = vadd.f32 %v4281_v45, %v4270_v1  ;;  %v4290_v48 = vadd.f32 %v4281_v45, %v4272_v3  ;;  %v4292_v43 = vadd.f32 %v4281_v45, %v4274_v25  ;;  %v4294_v27 = vadd.f32 %v4281_v45, %v4276_v51 }
 0xbcb   :  { %v4296_v55 = vmax.f32 %v4288_v14, 0.0  ;;  %v4298_v17 = vmax.f32 %v4290_v48, 0.0  ;;  %v4300_v30 = vmax.f32 %v4292_v43, 0.0  ;;  %v4302_v63 = vmax.f32 %v4294_v27, 0.0 }
 0xbcd   :  { %v4268_v31 = vpop.permute.xlu0 %4267 }
 0xbce   :  { %v4271_v12 = vmul.f32 %v7233_v38, %v4268_v31  ;;  %v4273_v58 = vmul.f32 %v7241_v22, %v4268_v31  ;;  %v4275_v24 = vmul.f32 %v7249_v61, %v4268_v31  ;;  %v4277_v0 = vmul.f32 %v7254_v23, %v4268_v31  ;;  %v4304_v61 = vld [vmem:[#allocation13] sm:$0xf] }
 0xbd1   :  { %v4286_v29 = vpop.permute.xlu1 %4285 }
 0xbd2   :  { %v4289_v18 = vadd.f32 %v4286_v29, %v4271_v12  ;;  %v4291_v50 = vadd.f32 %v4286_v29, %v4273_v58  ;;  %v4293_v53 = vadd.f32 %v4286_v29, %v4275_v24  ;;  %v4295_v32 = vadd.f32 %v4286_v29, %v4277_v0 }
 0xbd4   :  { %v4297_v4 = vmax.f32 %v4289_v18, 0.0  ;;  %v4299_v19 = vmax.f32 %v4291_v50, 0.0  ;;  %v4301_v54 = vmax.f32 %v4293_v53, 0.0  ;;  %v4303_v2 = vmax.f32 %v4295_v32, 0.0 }
 0xbd5   :  { %v4313_v23 = vpop.permute.xlu1 %4312 }
 0xbd6   :  { %v5124_v38 = vpack.c.bf16 %v4297_v4, %v4296_v55  ;;  %v5127_v52 = vpack.c.bf16 %v4299_v19, %v4298_v17  ;;  %v5130_v22 = vpack.c.bf16 %v4301_v54, %v4300_v30  ;;  %v5133_v37 = vpack.c.bf16 %v4303_v2, %v4302_v63 }
 0xbd8   :  { %5125 = vmatpush3.bf16.msra.mxu0 %v5124_v38 }
 0xbd9   :  { %5126 = vmatprep.subr.bf16.mxu0 %v5383_v21 }
 0xbdc   :  { %5128 = vmatpush3.bf16.msra.mxu0 %v5127_v52 }
 0xbdd   :  { %5129 = vmatprep.subr.bf16.mxu0 %v5383_v21 }
 0xbe0   :  { %5131 = vmatpush3.bf16.msra.mxu0 %v5130_v22 }
 0xbe1   :  { %5132 = vmatprep.subr.bf16.mxu0 %v5383_v21 }
 0xbe4   :  { %5134 = vmatpush3.bf16.msra.mxu0 %v5133_v37 }
 0xbe7   :  { %4621 = vmatmul.mubr.msk.f32.vlgmr.msra.gmra.mrb[32].mxu0 %vm4315_vm14, %v4304_v61 }
 0xcba   :  { %v4385_v36 = vpop.f32.mrb[32].mxu0 }
 0xcbb   :  { %v4386_v26 = vadd.f32 %v4385_v36, %v4313_v23  ;;  %v4622_v13 = vpop.f32.mrb[33].mxu0 }
 0xcbd   :  { %v4389_v62 = vmul.f32 0.5, %v4386_v26 }
 0xcbf   :  { %5199 = vtanh.f32 %v4389_v62 }
 0xcc9   :  { %v5200_v46 = vpop.eup %5199 }
 0xcca   :  { %v4391_v28 = vmul.f32 0.5, %v5200_v46 }
 0xccc   :  { %v4392_v7 = vadd.f32 0.5, %v4391_v28 }
 0xcce   :  { %4393 = vst [vmem:[%s7309_s12] sm:$0xf] %v4392_v7 }
 0xccf   :  { %4398 = vsyncpa [#allocation6], 1 }
 0xcd0   :  { %4399 = vsyncpa [#allocation8], 1 }
 0xcd1   :  { %4400 = vsyncpa [#allocation11], 1 }
 0xcd2   :  { %4401 = vsyncpa [#allocation14], 1 }
 0xcd3   :  { %4402 = vsyncmov [#allocation3] }
 0xcd6   :  { %s4403_s13 = vpop.sfrf %4402 }
 0xcd7   :  { %p4482_p0 = scmp.ne.s32.totalorder %s4403_s13, 0 }
 0xcd9   :  { %4407 = shalt.err (%p4482_p0)  }

</bundles_post_ra>
